<compile_context>
chip_gen: v7x
topology: tpu7x:2x2x1
jax: 0.10.0
libtpu: 0.0.40
codegen_flags: <defaults>
</compile_context>

<pallas_src>
import functools

import jax
import jax.numpy as jnp
import numpy as np
from jax import lax
from jax.experimental import pallas as pl
from jax.experimental.pallas import tpu as pltpu


# ----------------------------------------------------------------------------
# Fused whole-encoder kernel: for each layer, hoisted projection -> serial
# recurrence (both directions fused via block-diagonal W_hh) -> time-flip
# epilogue, with all intermediate buffers resident in VMEM scratch.
# ----------------------------------------------------------------------------
def _make_encoder_kernel(T, B, H, num_dirs, n_layers):
    DH = num_dirs * H          # width of the concatenated [fwd|rev] state
    G = 4 * DH                 # packed gate width

    def kernel(*refs):
        x_ref = refs[0]                                   # (T, B, E)
        w_refs = refs[1:1 + 3 * n_layers]                 # per layer: wih, whh, b
        out_ref = refs[1 + 3 * n_layers]                  # (T, B, DH)
        hid_ref = refs[2 + 3 * n_layers]                  # (L, B, DH)
        ih_ref = refs[3 + 3 * n_layers]                   # scratch (T, B, G)
        act_ref = refs[4 + 3 * n_layers]                  # scratch (T, B, DH)

        if num_dirs == 2:
            # Forward-direction lanes of the packed gate axis / state axis.
            fwd_g = (lax.broadcasted_iota(jnp.int32, (B, G), 1) % DH) < H
            fwd_s = lax.broadcasted_iota(jnp.int32, (B, DH), 1) < H

        for layer in range(n_layers):
            wih_ref, whh_ref, b_ref = w_refs[3 * layer:3 * layer + 3]
            wih = wih_ref[...]                            # (I_l, G)
            whh = whh_ref[...]                            # (DH, G) block-diag
            bias = jnp.broadcast_to(b_ref[...], (B, G))   # hoisted broadcast
            in_ref = x_ref if layer == 0 else act_ref     # (T, B, I_l)

            # ---- 1) Hoisted input projection (off the serial path). --------
            # Independent per-timestep (B,I)@(I,G) matmuls into the VMEM gate
            # buffer: a parallel prologue the scheduler can pipeline.  Kept
            # per-timestep to avoid in-kernel (T,B,I)<->(T*B,I) relayouts;
            # only the h @ W_hh dot below is on the serial chain.
            for t in range(T):
                ih_ref[t] = (
                    jnp.dot(in_ref[t], wih, preferred_element_type=jnp.float32)
                    + bias)

            # ---- 2) Serial recurrence (both directions fused). -------------
            def step(s, carry):
                h, c = carry
                if num_dirs == 2:
                    # fwd lanes consume time s, rev lanes consume time T-1-s.
                    gx = jnp.where(fwd_g, ih_ref[s], ih_ref[T - 1 - s])
                else:
                    gx = ih_ref[s]
                gates = gx + jnp.dot(h, whh,
                                     preferred_element_type=jnp.float32)
                sig = jax.nn.sigmoid(gates[:, :3 * DH])   # [ i | f | o ]
                g_g = jnp.tanh(gates[:, 3 * DH:])         # [ g ]
                c = sig[:, DH:2 * DH] * c + sig[:, :DH] * g_g
                h = sig[:, 2 * DH:] * jnp.tanh(c)
                act_ref[s] = h        # one full-width (B, DH) store per step
                return h, c

            init = (jnp.zeros((B, DH), jnp.float32),
                    jnp.zeros((B, DH), jnp.float32))
            h_fin, _ = lax.fori_loop(0, T, step, init, unroll=min(T, 8))

            # Final per-layer hidden: [h_fwd(T-1) | h_rev(input t=0)] —
            # matches PyTorch's concatenated per-layer final hidden state.
            hid_ref[layer] = h_fin

            # ---- 3) Epilogue: direction-aware time flip, full-width rows. --
            # out[t,:, :H] = hist[t,:, :H] ; out[t,:, H:] = hist[T-1-t,:, H:]
            dst_ref = out_ref if layer == n_layers - 1 else act_ref
            if num_dirs == 2:
                for t in range((T + 1) // 2):
                    u = act_ref[t]
                    v = act_ref[T - 1 - t]
                    dst_ref[t] = jnp.where(fwd_s, u, v)
                    dst_ref[T - 1 - t] = jnp.where(fwd_s, v, u)
            else:
                if layer == n_layers - 1:
                    dst_ref[...] = act_ref[...]

    return kernel


# ----------------------------------------------------------------------------
# Encoder forward (matches the PyTorch module semantics).
# ----------------------------------------------------------------------------
def encoder_forward(params, src, *, n_layers, hid_dim, bidirectional):
    # Embedding lookup (data-dependent gather) stays in plain JAX.
    # TODO(synk): dropout is identity (rate 0.0 / eval mode); training-mode
    # dropout masks are not implemented in-kernel.
    embedded = jnp.take(params["embedding"], src, axis=0)      # (T, B, E)

    num_dirs = 2 if bidirectional else 1
    T, B, E = embedded.shape
    H = hid_dim
    DH = num_dirs * H
    G = 4 * DH
    L = n_layers

    flat_w = []
    in_specs = [pl.BlockSpec((T, B, E), lambda i: (0, 0, 0))]
    for layer in range(L):
        w_ih_p, w_hh_blk, b_p = params["packed"][layer]
        flat_w += [w_ih_p, w_hh_blk, b_p]
        in_specs += [pl.BlockSpec(w_ih_p.shape, lambda i: (0, 0)),
                     pl.BlockSpec(w_hh_blk.shape, lambda i: (0, 0)),
                     pl.BlockSpec(b_p.shape, lambda i: (0, 0))]

    kernel = _make_encoder_kernel(T, B, H, num_dirs, L)
    out, hid = pl.pallas_call(
        kernel,
        out_shape=(jax.ShapeDtypeStruct((T, B, DH), jnp.float32),
                   jax.ShapeDtypeStruct((L, B, DH), jnp.float32)),
        grid=(1,),
        in_specs=in_specs,
        out_specs=(pl.BlockSpec((T, B, DH), lambda i: (0, 0, 0)),
                   pl.BlockSpec((L, B, DH), lambda i: (0, 0, 0))),
        scratch_shapes=[pltpu.VMEM((T, B, G), jnp.float32),    # gate buffer
                        pltpu.VMEM((T, B, DH), jnp.float32)],  # h history/act
        compiler_params=pltpu.CompilerParams(
            dimension_semantics=("arbitrary",),
            vmem_limit_bytes=32 * 1024 * 1024),
    )(embedded, *flat_w)
    return out, hid


# ----------------------------------------------------------------------------
# Weight packing: PyTorch-style per-(layer, direction) weights -> fused layout.
# Packed gate order [i, f, o, g] (so sigmoid covers the first 3*DH lanes and
# tanh the last DH lanes); W_hh packed block-diagonally over directions so a
# single (B, DH) @ (DH, G) matmul yields both directions' recurrent terms.
# ----------------------------------------------------------------------------
_GATE_SRC = (0, 1, 3, 2)   # packed [i, f, o, g]  <-  source order [i, f, g, o]


def pack_params(raw_rnn, *, n_layers, hid_dim, bidirectional):
    num_dirs = 2 if bidirectional else 1
    H = hid_dim
    DH = num_dirs * H
    G = 4 * DH
    packed = []
    for layer in range(n_layers):
        w_ih_cols, b_parts = [], []
        w_hh_blk = jnp.zeros((DH, G), jnp.float32)
        for kk, k in enumerate(_GATE_SRC):
            for d in range(num_dirs):
                w_ih_d, w_hh_d, b_d = raw_rnn[(layer, d)]
                w_ih_cols.append(w_ih_d[:, k * H:(k + 1) * H])
                b_parts.append(b_d[0, k * H:(k + 1) * H])
                w_hh_blk = w_hh_blk.at[
                    d * H:(d + 1) * H,
                    kk * DH + d * H:kk * DH + (d + 1) * H].set(
                        w_hh_d[:, k * H:(k + 1) * H])
        packed.append((jnp.concatenate(w_ih_cols, axis=1),     # (I, G)
                       w_hh_blk,                               # (DH, G)
                       jnp.concatenate(b_parts)[None, :]))     # (1, G)
    return packed


# ----------------------------------------------------------------------------
# Pure-JAX reference (lax.scan over unpacked per-direction weights).
# ----------------------------------------------------------------------------
def _lstm_dir_ref(x, w_ih, w_hh, b, reverse):
    T, B, _ = x.shape
    H = w_hh.shape[0]
    xs = x[::-1] if reverse else x

    def step(carry, x_t):
        h, c = carry
        gates = x_t @ w_ih + h @ w_hh + b
        i = jax.nn.sigmoid(gates[:, :H])
        f = jax.nn.sigmoid(gates[:, H:2 * H])
        g = jnp.tanh(gates[:, 2 * H:3 * H])
        o = jax.nn.sigmoid(gates[:, 3 * H:])
        c = f * c + i * g
        h = o * jnp.tanh(c)
        return (h, c), h

    (hN, _cN), ys = jax.lax.scan(
        step, (jnp.zeros((B, H), jnp.float32), jnp.zeros((B, H), jnp.float32)), xs)
    if reverse:
        ys = ys[::-1]
    return ys, hN


def encoder_forward_ref(params, src, *, n_layers, bidirectional):
    embedded = jnp.take(params["embedding"], src, axis=0)
    num_dirs = 2 if bidirectional else 1
    layer_in = embedded
    final_h = []
    for layer in range(n_layers):
        outs, hs = [], []
        for d in range(num_dirs):
            w_ih, w_hh, b = params["rnn"][(layer, d)]
            o, h = _lstm_dir_ref(layer_in, w_ih, w_hh, b, reverse=(d == 1))
            outs.append(o)
            hs.append(h)
        layer_in = jnp.concatenate(outs, axis=-1)
        final_h.append(hs)
    if bidirectional:
        hidden = jnp.stack(
            [jnp.concatenate([final_h[l][0], final_h[l][1]], axis=-1)
             for l in range(n_layers)], axis=0)
    else:
        hidden = jnp.stack([final_h[l][0] for l in range(n_layers)], axis=0)
    return layer_in, hidden


# ----------------------------------------------------------------------------
# Deterministic parameter init (PyTorch-like shapes / init ranges).
# ----------------------------------------------------------------------------
def init_params(key, *, input_dim, emb_dim, hid_dim, n_layers, bidirectional):
    num_dirs = 2 if bidirectional else 1
    k_emb, k_rnn = jax.random.split(key)
    params = {
        "embedding": jax.random.normal(k_emb, (input_dim, emb_dim), jnp.float32),
        "rnn": {},
    }
    bound = 1.0 / np.sqrt(hid_dim)
    keys = jax.random.split(k_rnn, n_layers * num_dirs * 4)
    ki = 0
    for layer in range(n_layers):
        in_size = emb_dim if layer == 0 else num_dirs * hid_dim
        for d in range(num_dirs):
            w_ih = jax.random.uniform(keys[ki], (in_size, 4 * hid_dim),
                                      jnp.float32, -bound, bound); ki += 1
            w_hh = jax.random.uniform(keys[ki], (hid_dim, 4 * hid_dim),
                                      jnp.float32, -bound, bound); ki += 1
            b_ih = jax.random.uniform(keys[ki], (4 * hid_dim,),
                                      jnp.float32, -bound, bound); ki += 1
            b_hh = jax.random.uniform(keys[ki], (4 * hid_dim,),
                                      jnp.float32, -bound, bound); ki += 1
            params["rnn"][(layer, d)] = (w_ih, w_hh, (b_ih + b_hh)[None, :])
    params["packed"] = pack_params(params["rnn"], n_layers=n_layers,
                                   hid_dim=hid_dim, bidirectional=bidirectional)
    return params


if __name__ == "__main__":
    # Module hyperparameters (small, forward-consistent shapes).
    INPUT_DIM = 50      # vocab size
    EMB_DIM = 32
    HID_DIM = 32
    N_LAYERS = 2
    BIDIRECTIONAL = True
    DROPOUT = 0.0       # identity (eval-mode dropout)

    SEQ_LEN = 8
    BATCH = 2           # NOTE: B >= 8 (multiple sequences) is needed to fill
                        # vreg sublanes / MXU rows; that is a caller-side
                        # batching decision, not a kernel change.

    key = jax.random.PRNGKey(0)
    k_param, k_src = jax.random.split(key)
    params = init_params(k_param, input_dim=INPUT_DIM, emb_dim=EMB_DIM,
                         hid_dim=HID_DIM, n_layers=N_LAYERS,
                         bidirectional=BIDIRECTIONAL)
    src = jax.random.randint(k_src, (SEQ_LEN, BATCH), 0, INPUT_DIM, jnp.int32)

    fwd = functools.partial(encoder_forward, n_layers=N_LAYERS,
                            hid_dim=HID_DIM, bidirectional=BIDIRECTIONAL)
    outputs, hidden = jax.jit(fwd)(params, src)
    jax.block_until_ready((outputs, hidden))

    # Sanity check against a pure-JAX lax.scan reference on the raw weights.
    ref_out, ref_hid = encoder_forward_ref(params, src, n_layers=N_LAYERS,
                                           bidirectional=BIDIRECTIONAL)
    np.testing.assert_allclose(np.asarray(outputs), np.asarray(ref_out),
                               rtol=1e-4, atol=1e-5)
    np.testing.assert_allclose(np.asarray(hidden), np.asarray(ref_hid),
                               rtol=1e-4, atol=1e-5)

    assert outputs.shape == (SEQ_LEN, BATCH, (2 if BIDIRECTIONAL else 1) * HID_DIM)
    assert hidden.shape == (N_LAYERS, BATCH,
                            (2 if BIDIRECTIONAL else 1) * HID_DIM)

    print("KERNEL_OK")
</pallas_src>

<mosaic_0001>
module attributes {stable_mosaic.version = 11 : i64} {
  func.func @kernel(%arg0: i32, %arg1: memref<8x2x32xf32, #tpu.memory_space<vmem>>, %arg2: memref<32x256xf32, #tpu.memory_space<vmem>>, %arg3: memref<64x256xf32, #tpu.memory_space<vmem>>, %arg4: memref<1x256xf32, #tpu.memory_space<vmem>>, %arg5: memref<64x256xf32, #tpu.memory_space<vmem>>, %arg6: memref<64x256xf32, #tpu.memory_space<vmem>>, %arg7: memref<1x256xf32, #tpu.memory_space<vmem>>, %arg8: memref<8x2x64xf32, #tpu.memory_space<vmem>>, %arg9: memref<2x2x64xf32, #tpu.memory_space<vmem>>, %arg10: memref<8x2x256xf32, #tpu.memory_space<vmem>>, %arg11: memref<8x2x64xf32, #tpu.memory_space<vmem>>) attributes {dimension_semantics = [#tpu.dimension_semantics<arbitrary>], iteration_bounds = array<i64: 1>, scalar_prefetch = 0 : i64, scratch_operands = 2 : i64, tpu.core_type = #tpu.core_type<tc>, window_params = [{pipeline_mode = #tpu.pipeline_mode<synchronous>, transform_indices = @transform_0, window_bounds = array<i64: 8, 2, 32>}, {pipeline_mode = #tpu.pipeline_mode<synchronous>, transform_indices = @transform_1, window_bounds = array<i64: 32, 256>}, {pipeline_mode = #tpu.pipeline_mode<synchronous>, transform_indices = @transform_2, window_bounds = array<i64: 64, 256>}, {pipeline_mode = #tpu.pipeline_mode<synchronous>, transform_indices = @transform_3, window_bounds = array<i64: 1, 256>}, {pipeline_mode = #tpu.pipeline_mode<synchronous>, transform_indices = @transform_4, window_bounds = array<i64: 64, 256>}, {pipeline_mode = #tpu.pipeline_mode<synchronous>, transform_indices = @transform_5, window_bounds = array<i64: 64, 256>}, {pipeline_mode = #tpu.pipeline_mode<synchronous>, transform_indices = @transform_6, window_bounds = array<i64: 1, 256>}, {pipeline_mode = #tpu.pipeline_mode<synchronous>, transform_indices = @transform_7, window_bounds = array<i64: 8, 2, 64>}, {pipeline_mode = #tpu.pipeline_mode<synchronous>, transform_indices = @transform_8, window_bounds = array<i64: 2, 2, 64>}]} {
    %0 = tpu.iota {dimensions = array<i32: 1>} : vector<2x256xi32>
    %c64_i32 = arith.constant 64 : i32
    %c0_i32 = arith.constant 0 : i32
    %1 = arith.cmpi eq, %c64_i32, %c0_i32 : i32
    %c1_i32 = arith.constant 1 : i32
    %2 = arith.select %1, %c1_i32, %c64_i32 : i32
    %3 = vector.broadcast %2 : i32 to vector<2x256xi32>
    %4 = arith.remsi %0, %3 : vector<2x256xi32>
    %c0_i32_0 = arith.constant 0 : i32
    %5 = vector.broadcast %c0_i32_0 : i32 to vector<2x256xi32>
    %6 = arith.cmpi ne, %4, %5 : vector<2x256xi32>
    %c0_i32_1 = arith.constant 0 : i32
    %7 = vector.broadcast %c0_i32_1 : i32 to vector<2x256xi32>
    %8 = arith.cmpi slt, %4, %7 : vector<2x256xi32>
    %c0_i32_2 = arith.constant 0 : i32
    %9 = arith.cmpi slt, %2, %c0_i32_2 : i32
    %10 = vector.broadcast %9 : i1 to vector<2x256xi1>
    %11 = vector.broadcast %10 : vector<2x256xi1> to vector<2x256xi1>
    %12 = arith.xori %8, %11 : vector<2x256xi1>
    %13 = arith.andi %12, %6 : vector<2x256xi1>
    %14 = vector.broadcast %2 : i32 to vector<2x256xi32>
    %15 = arith.addi %4, %14 : vector<2x256xi32>
    %16 = arith.select %13, %15, %4 : vector<2x256xi1>, vector<2x256xi32>
    %c32_i32 = arith.constant 32 : i32
    %17 = vector.broadcast %c32_i32 : i32 to vector<2x256xi32>
    %18 = arith.cmpi slt, %16, %17 : vector<2x256xi32>
    %19 = tpu.iota {dimensions = array<i32: 1>} : vector<2x64xi32>
    %c32_i32_3 = arith.constant 32 : i32
    %20 = vector.broadcast %c32_i32_3 : i32 to vector<2x64xi32>
    %21 = arith.cmpi slt, %19, %20 : vector<2x64xi32>
    %c0 = arith.constant 0 : index
    %c0_4 = arith.constant 0 : index
    %22 = vector.load %arg2[%c0, %c0_4] : memref<32x256xf32, #tpu.memory_space<vmem>>, vector<32x256xf32>
    %c0_5 = arith.constant 0 : index
    %c0_6 = arith.constant 0 : index
    %23 = vector.load %arg3[%c0_5, %c0_6] : memref<64x256xf32, #tpu.memory_space<vmem>>, vector<64x256xf32>
    %c0_7 = arith.constant 0 : index
    %c0_8 = arith.constant 0 : index
    %24 = vector.load %arg4[%c0_7, %c0_8] : memref<1x256xf32, #tpu.memory_space<vmem>>, vector<1x256xf32>
    %25 = vector.shape_cast %24 : vector<1x256xf32> to vector<1x256xf32>
    %26 = vector.broadcast %25 : vector<1x256xf32> to vector<2x256xf32>
    %c0_9 = arith.constant 0 : index
    %c0_10 = arith.constant 0 : index
    %c0_11 = arith.constant 0 : index
    %27 = vector.load %arg1[%c0_9, %c0_10, %c0_11] : memref<8x2x32xf32, #tpu.memory_space<vmem>>, vector<1x2x32xf32>
    %28 = vector.shape_cast %27 : vector<1x2x32xf32> to vector<2x32xf32>
    %cst = arith.constant dense<0.000000e+00> : vector<2x256xf32>
    %29 = tpu.matmul %28, %22, %cst {dimension_numbers = #tpu.dot_dimension_numbers<[1], [0], [0], [1], [0, 0, 1, 1], [], []>} : vector<2x32xf32>, vector<32x256xf32>, vector<2x256xf32> -> vector<2x256xf32>
    %30 = arith.addf %29, %26 : vector<2x256xf32>
    %c0_12 = arith.constant 0 : index
    %c0_13 = arith.constant 0 : index
    %c0_14 = arith.constant 0 : index
    %31 = vector.load %arg10[%c0_12, %c0_13, %c0_14] : memref<8x2x256xf32, #tpu.memory_space<vmem>>, vector<1x2x256xf32>
    %32 = vector.shape_cast %31 : vector<1x2x256xf32> to vector<2x256xf32>
    %33 = vector.shape_cast %30 : vector<2x256xf32> to vector<1x2x256xf32>
    tpu.vector_store %arg10[%c0_12, %c0_13, %c0_14], %33 {strides = array<i32>} : memref<8x2x256xf32, #tpu.memory_space<vmem>>, vector<1x2x256xf32>,
    %c1 = arith.constant 1 : index
    %c0_15 = arith.constant 0 : index
    %c0_16 = arith.constant 0 : index
    %34 = vector.load %arg1[%c1, %c0_15, %c0_16] : memref<8x2x32xf32, #tpu.memory_space<vmem>>, vector<1x2x32xf32>
    %35 = vector.shape_cast %34 : vector<1x2x32xf32> to vector<2x32xf32>
    %cst_17 = arith.constant dense<0.000000e+00> : vector<2x256xf32>
    %36 = tpu.matmul %35, %22, %cst_17 {dimension_numbers = #tpu.dot_dimension_numbers<[1], [0], [0], [1], [0, 0, 1, 1], [], []>} : vector<2x32xf32>, vector<32x256xf32>, vector<2x256xf32> -> vector<2x256xf32>
    %37 = arith.addf %36, %26 : vector<2x256xf32>
    %c1_18 = arith.constant 1 : index
    %c0_19 = arith.constant 0 : index
    %c0_20 = arith.constant 0 : index
    %38 = vector.load %arg10[%c1_18, %c0_19, %c0_20] : memref<8x2x256xf32, #tpu.memory_space<vmem>>, vector<1x2x256xf32>
    %39 = vector.shape_cast %38 : vector<1x2x256xf32> to vector<2x256xf32>
    %40 = vector.shape_cast %37 : vector<2x256xf32> to vector<1x2x256xf32>
    tpu.vector_store %arg10[%c1_18, %c0_19, %c0_20], %40 {strides = array<i32>} : memref<8x2x256xf32, #tpu.memory_space<vmem>>, vector<1x2x256xf32>,
    %c2 = arith.constant 2 : index
    %c0_21 = arith.constant 0 : index
    %c0_22 = arith.constant 0 : index
    %41 = vector.load %arg1[%c2, %c0_21, %c0_22] : memref<8x2x32xf32, #tpu.memory_space<vmem>>, vector<1x2x32xf32>
    %42 = vector.shape_cast %41 : vector<1x2x32xf32> to vector<2x32xf32>
    %cst_23 = arith.constant dense<0.000000e+00> : vector<2x256xf32>
    %43 = tpu.matmul %42, %22, %cst_23 {dimension_numbers = #tpu.dot_dimension_numbers<[1], [0], [0], [1], [0, 0, 1, 1], [], []>} : vector<2x32xf32>, vector<32x256xf32>, vector<2x256xf32> -> vector<2x256xf32>
    %44 = arith.addf %43, %26 : vector<2x256xf32>
    %c2_24 = arith.constant 2 : index
    %c0_25 = arith.constant 0 : index
    %c0_26 = arith.constant 0 : index
    %45 = vector.load %arg10[%c2_24, %c0_25, %c0_26] : memref<8x2x256xf32, #tpu.memory_space<vmem>>, vector<1x2x256xf32>
    %46 = vector.shape_cast %45 : vector<1x2x256xf32> to vector<2x256xf32>
    %47 = vector.shape_cast %44 : vector<2x256xf32> to vector<1x2x256xf32>
    tpu.vector_store %arg10[%c2_24, %c0_25, %c0_26], %47 {strides = array<i32>} : memref<8x2x256xf32, #tpu.memory_space<vmem>>, vector<1x2x256xf32>,
    %c3 = arith.constant 3 : index
    %c0_27 = arith.constant 0 : index
    %c0_28 = arith.constant 0 : index
    %48 = vector.load %arg1[%c3, %c0_27, %c0_28] : memref<8x2x32xf32, #tpu.memory_space<vmem>>, vector<1x2x32xf32>
    %49 = vector.shape_cast %48 : vector<1x2x32xf32> to vector<2x32xf32>
    %cst_29 = arith.constant dense<0.000000e+00> : vector<2x256xf32>
    %50 = tpu.matmul %49, %22, %cst_29 {dimension_numbers = #tpu.dot_dimension_numbers<[1], [0], [0], [1], [0, 0, 1, 1], [], []>} : vector<2x32xf32>, vector<32x256xf32>, vector<2x256xf32> -> vector<2x256xf32>
    %51 = arith.addf %50, %26 : vector<2x256xf32>
    %c3_30 = arith.constant 3 : index
    %c0_31 = arith.constant 0 : index
    %c0_32 = arith.constant 0 : index
    %52 = vector.load %arg10[%c3_30, %c0_31, %c0_32] : memref<8x2x256xf32, #tpu.memory_space<vmem>>, vector<1x2x256xf32>
    %53 = vector.shape_cast %52 : vector<1x2x256xf32> to vector<2x256xf32>
    %54 = vector.shape_cast %51 : vector<2x256xf32> to vector<1x2x256xf32>
    tpu.vector_store %arg10[%c3_30, %c0_31, %c0_32], %54 {strides = array<i32>} : memref<8x2x256xf32, #tpu.memory_space<vmem>>, vector<1x2x256xf32>,
    %c4 = arith.constant 4 : index
    %c0_33 = arith.constant 0 : index
    %c0_34 = arith.constant 0 : index
    %55 = vector.load %arg1[%c4, %c0_33, %c0_34] : memref<8x2x32xf32, #tpu.memory_space<vmem>>, vector<1x2x32xf32>
    %56 = vector.shape_cast %55 : vector<1x2x32xf32> to vector<2x32xf32>
    %cst_35 = arith.constant dense<0.000000e+00> : vector<2x256xf32>
    %57 = tpu.matmul %56, %22, %cst_35 {dimension_numbers = #tpu.dot_dimension_numbers<[1], [0], [0], [1], [0, 0, 1, 1], [], []>} : vector<2x32xf32>, vector<32x256xf32>, vector<2x256xf32> -> vector<2x256xf32>
    %58 = arith.addf %57, %26 : vector<2x256xf32>
    %c4_36 = arith.constant 4 : index
    %c0_37 = arith.constant 0 : index
    %c0_38 = arith.constant 0 : index
    %59 = vector.load %arg10[%c4_36, %c0_37, %c0_38] : memref<8x2x256xf32, #tpu.memory_space<vmem>>, vector<1x2x256xf32>
    %60 = vector.shape_cast %59 : vector<1x2x256xf32> to vector<2x256xf32>
    %61 = vector.shape_cast %58 : vector<2x256xf32> to vector<1x2x256xf32>
    tpu.vector_store %arg10[%c4_36, %c0_37, %c0_38], %61 {strides = array<i32>} : memref<8x2x256xf32, #tpu.memory_space<vmem>>, vector<1x2x256xf32>,
    %c5 = arith.constant 5 : index
    %c0_39 = arith.constant 0 : index
    %c0_40 = arith.constant 0 : index
    %62 = vector.load %arg1[%c5, %c0_39, %c0_40] : memref<8x2x32xf32, #tpu.memory_space<vmem>>, vector<1x2x32xf32>
    %63 = vector.shape_cast %62 : vector<1x2x32xf32> to vector<2x32xf32>
    %cst_41 = arith.constant dense<0.000000e+00> : vector<2x256xf32>
    %64 = tpu.matmul %63, %22, %cst_41 {dimension_numbers = #tpu.dot_dimension_numbers<[1], [0], [0], [1], [0, 0, 1, 1], [], []>} : vector<2x32xf32>, vector<32x256xf32>, vector<2x256xf32> -> vector<2x256xf32>
    %65 = arith.addf %64, %26 : vector<2x256xf32>
    %c5_42 = arith.constant 5 : index
    %c0_43 = arith.constant 0 : index
    %c0_44 = arith.constant 0 : index
    %66 = vector.load %arg10[%c5_42, %c0_43, %c0_44] : memref<8x2x256xf32, #tpu.memory_space<vmem>>, vector<1x2x256xf32>
    %67 = vector.shape_cast %66 : vector<1x2x256xf32> to vector<2x256xf32>
    %68 = vector.shape_cast %65 : vector<2x256xf32> to vector<1x2x256xf32>
    tpu.vector_store %arg10[%c5_42, %c0_43, %c0_44], %68 {strides = array<i32>} : memref<8x2x256xf32, #tpu.memory_space<vmem>>, vector<1x2x256xf32>,
    %c6 = arith.constant 6 : index
    %c0_45 = arith.constant 0 : index
    %c0_46 = arith.constant 0 : index
    %69 = vector.load %arg1[%c6, %c0_45, %c0_46] : memref<8x2x32xf32, #tpu.memory_space<vmem>>, vector<1x2x32xf32>
    %70 = vector.shape_cast %69 : vector<1x2x32xf32> to vector<2x32xf32>
    %cst_47 = arith.constant dense<0.000000e+00> : vector<2x256xf32>
    %71 = tpu.matmul %70, %22, %cst_47 {dimension_numbers = #tpu.dot_dimension_numbers<[1], [0], [0], [1], [0, 0, 1, 1], [], []>} : vector<2x32xf32>, vector<32x256xf32>, vector<2x256xf32> -> vector<2x256xf32>
    %72 = arith.addf %71, %26 : vector<2x256xf32>
    %c6_48 = arith.constant 6 : index
    %c0_49 = arith.constant 0 : index
    %c0_50 = arith.constant 0 : index
    %73 = vector.load %arg10[%c6_48, %c0_49, %c0_50] : memref<8x2x256xf32, #tpu.memory_space<vmem>>, vector<1x2x256xf32>
    %74 = vector.shape_cast %73 : vector<1x2x256xf32> to vector<2x256xf32>
    %75 = vector.shape_cast %72 : vector<2x256xf32> to vector<1x2x256xf32>
    tpu.vector_store %arg10[%c6_48, %c0_49, %c0_50], %75 {strides = array<i32>} : memref<8x2x256xf32, #tpu.memory_space<vmem>>, vector<1x2x256xf32>,
    %c7 = arith.constant 7 : index
    %c0_51 = arith.constant 0 : index
    %c0_52 = arith.constant 0 : index
    %76 = vector.load %arg1[%c7, %c0_51, %c0_52] : memref<8x2x32xf32, #tpu.memory_space<vmem>>, vector<1x2x32xf32>
    %77 = vector.shape_cast %76 : vector<1x2x32xf32> to vector<2x32xf32>
    %cst_53 = arith.constant dense<0.000000e+00> : vector<2x256xf32>
    %78 = tpu.matmul %77, %22, %cst_53 {dimension_numbers = #tpu.dot_dimension_numbers<[1], [0], [0], [1], [0, 0, 1, 1], [], []>} : vector<2x32xf32>, vector<32x256xf32>, vector<2x256xf32> -> vector<2x256xf32>
    %79 = arith.addf %78, %26 : vector<2x256xf32>
    %c7_54 = arith.constant 7 : index
    %c0_55 = arith.constant 0 : index
    %c0_56 = arith.constant 0 : index
    %80 = vector.load %arg10[%c7_54, %c0_55, %c0_56] : memref<8x2x256xf32, #tpu.memory_space<vmem>>, vector<1x2x256xf32>
    %81 = vector.shape_cast %80 : vector<1x2x256xf32> to vector<2x256xf32>
    %82 = vector.shape_cast %79 : vector<2x256xf32> to vector<1x2x256xf32>
    tpu.vector_store %arg10[%c7_54, %c0_55, %c0_56], %82 {strides = array<i32>} : memref<8x2x256xf32, #tpu.memory_space<vmem>>, vector<1x2x256xf32>,
    %cst_57 = arith.constant 0.000000e+00 : f32
    %83 = vector.broadcast %cst_57 : f32 to vector<2x64xf32>
    %cst_58 = arith.constant 0.000000e+00 : f32
    %84 = vector.broadcast %cst_58 : f32 to vector<2x64xf32>
    %c0_i32_59 = arith.constant 0 : i32
    %85 = arith.index_cast %c0_i32_59 : i32 to index
    %c0_60 = arith.constant 0 : index
    %c0_61 = arith.constant 0 : index
    %86 = vector.load %arg10[%85, %c0_60, %c0_61] : memref<8x2x256xf32, #tpu.memory_space<vmem>>, vector<1x2x256xf32>
    %87 = vector.shape_cast %86 : vector<1x2x256xf32> to vector<2x256xf32>
    %c7_i32 = arith.constant 7 : i32
    %88 = arith.subi %c7_i32, %c0_i32_59 : i32
    %89 = arith.index_cast %88 : i32 to index
    %c0_62 = arith.constant 0 : index
    %c0_63 = arith.constant 0 : index
    %90 = vector.load %arg10[%89, %c0_62, %c0_63] : memref<8x2x256xf32, #tpu.memory_space<vmem>>, vector<1x2x256xf32>
    %91 = vector.shape_cast %90 : vector<1x2x256xf32> to vector<2x256xf32>
    %92 = arith.select %18, %87, %91 : vector<2x256xi1>, vector<2x256xf32>
    %cst_64 = arith.constant dense<0.000000e+00> : vector<2x256xf32>
    %93 = tpu.matmul %83, %23, %cst_64 {dimension_numbers = #tpu.dot_dimension_numbers<[1], [0], [0], [1], [0, 0, 1, 1], [], []>} : vector<2x64xf32>, vector<64x256xf32>, vector<2x256xf32> -> vector<2x256xf32>
    %94 = arith.addf %92, %93 : vector<2x256xf32>
    %95 = vector.extract_strided_slice %94 {offsets = [0, 0], sizes = [2, 192], strides = [1, 1]} : vector<2x256xf32> to vector<2x192xf32>
    %96 = arith.negf %95 : vector<2x192xf32>
    %97 = math.exp %96 : vector<2x192xf32>
    %cst_65 = arith.constant 1.000000e+00 : f32
    %98 = vector.broadcast %cst_65 : f32 to vector<2x192xf32>
    %99 = arith.addf %98, %97 : vector<2x192xf32>
    %100 = arith.divf %98, %99 : vector<2x192xf32>
    %101 = vector.extract_strided_slice %94 {offsets = [0, 192], sizes = [2, 64], strides = [1, 1]} : vector<2x256xf32> to vector<2x64xf32>
    %102 = math.tanh %101 : vector<2x64xf32>
    %103 = vector.extract_strided_slice %100 {offsets = [0, 64], sizes = [2, 64], strides = [1, 1]} : vector<2x192xf32> to vector<2x64xf32>
    %104 = arith.mulf %103, %84 : vector<2x64xf32>
    %105 = vector.extract_strided_slice %100 {offsets = [0, 0], sizes = [2, 64], strides = [1, 1]} : vector<2x192xf32> to vector<2x64xf32>
    %106 = arith.mulf %105, %102 : vector<2x64xf32>
    %107 = arith.addf %104, %106 : vector<2x64xf32>
    %108 = vector.extract_strided_slice %100 {offsets = [0, 128], sizes = [2, 64], strides = [1, 1]} : vector<2x192xf32> to vector<2x64xf32>
    %109 = math.tanh %107 : vector<2x64xf32>
    %110 = arith.mulf %108, %109 : vector<2x64xf32>
    %111 = arith.index_cast %c0_i32_59 : i32 to index
    %c0_66 = arith.constant 0 : index
    %c0_67 = arith.constant 0 : index
    %112 = vector.load %arg11[%111, %c0_66, %c0_67] : memref<8x2x64xf32, #tpu.memory_space<vmem>>, vector<1x2x64xf32>
    %113 = vector.shape_cast %112 : vector<1x2x64xf32> to vector<2x64xf32>
    %114 = vector.shape_cast %110 : vector<2x64xf32> to vector<1x2x64xf32>
    tpu.vector_store %arg11[%111, %c0_66, %c0_67], %114 {strides = array<i32>} : memref<8x2x64xf32, #tpu.memory_space<vmem>>, vector<1x2x64xf32>,
    %c1_i32_68 = arith.constant 1 : i32
    %115 = arith.index_cast %c1_i32_68 : i32 to index
    %c0_69 = arith.constant 0 : index
    %c0_70 = arith.constant 0 : index
    %116 = vector.load %arg10[%115, %c0_69, %c0_70] : memref<8x2x256xf32, #tpu.memory_space<vmem>>, vector<1x2x256xf32>
    %117 = vector.shape_cast %116 : vector<1x2x256xf32> to vector<2x256xf32>
    %c7_i32_71 = arith.constant 7 : i32
    %118 = arith.subi %c7_i32_71, %c1_i32_68 : i32
    %119 = arith.index_cast %118 : i32 to index
    %c0_72 = arith.constant 0 : index
    %c0_73 = arith.constant 0 : index
    %120 = vector.load %arg10[%119, %c0_72, %c0_73] : memref<8x2x256xf32, #tpu.memory_space<vmem>>, vector<1x2x256xf32>
    %121 = vector.shape_cast %120 : vector<1x2x256xf32> to vector<2x256xf32>
    %122 = arith.select %18, %117, %121 : vector<2x256xi1>, vector<2x256xf32>
    %cst_74 = arith.constant dense<0.000000e+00> : vector<2x256xf32>
    %123 = tpu.matmul %110, %23, %cst_74 {dimension_numbers = #tpu.dot_dimension_numbers<[1], [0], [0], [1], [0, 0, 1, 1], [], []>} : vector<2x64xf32>, vector<64x256xf32>, vector<2x256xf32> -> vector<2x256xf32>
    %124 = arith.addf %122, %123 : vector<2x256xf32>
    %125 = vector.extract_strided_slice %124 {offsets = [0, 0], sizes = [2, 192], strides = [1, 1]} : vector<2x256xf32> to vector<2x192xf32>
    %126 = arith.negf %125 : vector<2x192xf32>
    %127 = math.exp %126 : vector<2x192xf32>
    %cst_75 = arith.constant 1.000000e+00 : f32
    %128 = vector.broadcast %cst_75 : f32 to vector<2x192xf32>
    %129 = arith.addf %128, %127 : vector<2x192xf32>
    %130 = arith.divf %128, %129 : vector<2x192xf32>
    %131 = vector.extract_strided_slice %124 {offsets = [0, 192], sizes = [2, 64], strides = [1, 1]} : vector<2x256xf32> to vector<2x64xf32>
    %132 = math.tanh %131 : vector<2x64xf32>
    %133 = vector.extract_strided_slice %130 {offsets = [0, 64], sizes = [2, 64], strides = [1, 1]} : vector<2x192xf32> to vector<2x64xf32>
    %134 = arith.mulf %133, %107 : vector<2x64xf32>
    %135 = vector.extract_strided_slice %130 {offsets = [0, 0], sizes = [2, 64], strides = [1, 1]} : vector<2x192xf32> to vector<2x64xf32>
    %136 = arith.mulf %135, %132 : vector<2x64xf32>
    %137 = arith.addf %134, %136 : vector<2x64xf32>
    %138 = vector.extract_strided_slice %130 {offsets = [0, 128], sizes = [2, 64], strides = [1, 1]} : vector<2x192xf32> to vector<2x64xf32>
    %139 = math.tanh %137 : vector<2x64xf32>
    %140 = arith.mulf %138, %139 : vector<2x64xf32>
    %141 = arith.index_cast %c1_i32_68 : i32 to index
    %c0_76 = arith.constant 0 : index
    %c0_77 = arith.constant 0 : index
    %142 = vector.load %arg11[%141, %c0_76, %c0_77] : memref<8x2x64xf32, #tpu.memory_space<vmem>>, vector<1x2x64xf32>
    %143 = vector.shape_cast %142 : vector<1x2x64xf32> to vector<2x64xf32>
    %144 = vector.shape_cast %140 : vector<2x64xf32> to vector<1x2x64xf32>
    tpu.vector_store %arg11[%141, %c0_76, %c0_77], %144 {strides = array<i32>} : memref<8x2x64xf32, #tpu.memory_space<vmem>>, vector<1x2x64xf32>,
    %c2_i32 = arith.constant 2 : i32
    %145 = arith.index_cast %c2_i32 : i32 to index
    %c0_78 = arith.constant 0 : index
    %c0_79 = arith.constant 0 : index
    %146 = vector.load %arg10[%145, %c0_78, %c0_79] : memref<8x2x256xf32, #tpu.memory_space<vmem>>, vector<1x2x256xf32>
    %147 = vector.shape_cast %146 : vector<1x2x256xf32> to vector<2x256xf32>
    %c7_i32_80 = arith.constant 7 : i32
    %148 = arith.subi %c7_i32_80, %c2_i32 : i32
    %149 = arith.index_cast %148 : i32 to index
    %c0_81 = arith.constant 0 : index
    %c0_82 = arith.constant 0 : index
    %150 = vector.load %arg10[%149, %c0_81, %c0_82] : memref<8x2x256xf32, #tpu.memory_space<vmem>>, vector<1x2x256xf32>
    %151 = vector.shape_cast %150 : vector<1x2x256xf32> to vector<2x256xf32>
    %152 = arith.select %18, %147, %151 : vector<2x256xi1>, vector<2x256xf32>
    %cst_83 = arith.constant dense<0.000000e+00> : vector<2x256xf32>
    %153 = tpu.matmul %140, %23, %cst_83 {dimension_numbers = #tpu.dot_dimension_numbers<[1], [0], [0], [1], [0, 0, 1, 1], [], []>} : vector<2x64xf32>, vector<64x256xf32>, vector<2x256xf32> -> vector<2x256xf32>
    %154 = arith.addf %152, %153 : vector<2x256xf32>
    %155 = vector.extract_strided_slice %154 {offsets = [0, 0], sizes = [2, 192], strides = [1, 1]} : vector<2x256xf32> to vector<2x192xf32>
    %156 = arith.negf %155 : vector<2x192xf32>
    %157 = math.exp %156 : vector<2x192xf32>
    %cst_84 = arith.constant 1.000000e+00 : f32
    %158 = vector.broadcast %cst_84 : f32 to vector<2x192xf32>
    %159 = arith.addf %158, %157 : vector<2x192xf32>
    %160 = arith.divf %158, %159 : vector<2x192xf32>
    %161 = vector.extract_strided_slice %154 {offsets = [0, 192], sizes = [2, 64], strides = [1, 1]} : vector<2x256xf32> to vector<2x64xf32>
    %162 = math.tanh %161 : vector<2x64xf32>
    %163 = vector.extract_strided_slice %160 {offsets = [0, 64], sizes = [2, 64], strides = [1, 1]} : vector<2x192xf32> to vector<2x64xf32>
    %164 = arith.mulf %163, %137 : vector<2x64xf32>
    %165 = vector.extract_strided_slice %160 {offsets = [0, 0], sizes = [2, 64], strides = [1, 1]} : vector<2x192xf32> to vector<2x64xf32>
    %166 = arith.mulf %165, %162 : vector<2x64xf32>
    %167 = arith.addf %164, %166 : vector<2x64xf32>
    %168 = vector.extract_strided_slice %160 {offsets = [0, 128], sizes = [2, 64], strides = [1, 1]} : vector<2x192xf32> to vector<2x64xf32>
    %169 = math.tanh %167 : vector<2x64xf32>
    %170 = arith.mulf %168, %169 : vector<2x64xf32>
    %171 = arith.index_cast %c2_i32 : i32 to index
    %c0_85 = arith.constant 0 : index
    %c0_86 = arith.constant 0 : index
    %172 = vector.load %arg11[%171, %c0_85, %c0_86] : memref<8x2x64xf32, #tpu.memory_space<vmem>>, vector<1x2x64xf32>
    %173 = vector.shape_cast %172 : vector<1x2x64xf32> to vector<2x64xf32>
    %174 = vector.shape_cast %170 : vector<2x64xf32> to vector<1x2x64xf32>
    tpu.vector_store %arg11[%171, %c0_85, %c0_86], %174 {strides = array<i32>} : memref<8x2x64xf32, #tpu.memory_space<vmem>>, vector<1x2x64xf32>,
    %c3_i32 = arith.constant 3 : i32
    %175 = arith.index_cast %c3_i32 : i32 to index
    %c0_87 = arith.constant 0 : index
    %c0_88 = arith.constant 0 : index
    %176 = vector.load %arg10[%175, %c0_87, %c0_88] : memref<8x2x256xf32, #tpu.memory_space<vmem>>, vector<1x2x256xf32>
    %177 = vector.shape_cast %176 : vector<1x2x256xf32> to vector<2x256xf32>
    %c7_i32_89 = arith.constant 7 : i32
    %178 = arith.subi %c7_i32_89, %c3_i32 : i32
    %179 = arith.index_cast %178 : i32 to index
    %c0_90 = arith.constant 0 : index
    %c0_91 = arith.constant 0 : index
    %180 = vector.load %arg10[%179, %c0_90, %c0_91] : memref<8x2x256xf32, #tpu.memory_space<vmem>>, vector<1x2x256xf32>
    %181 = vector.shape_cast %180 : vector<1x2x256xf32> to vector<2x256xf32>
    %182 = arith.select %18, %177, %181 : vector<2x256xi1>, vector<2x256xf32>
    %cst_92 = arith.constant dense<0.000000e+00> : vector<2x256xf32>
    %183 = tpu.matmul %170, %23, %cst_92 {dimension_numbers = #tpu.dot_dimension_numbers<[1], [0], [0], [1], [0, 0, 1, 1], [], []>} : vector<2x64xf32>, vector<64x256xf32>, vector<2x256xf32> -> vector<2x256xf32>
    %184 = arith.addf %182, %183 : vector<2x256xf32>
    %185 = vector.extract_strided_slice %184 {offsets = [0, 0], sizes = [2, 192], strides = [1, 1]} : vector<2x256xf32> to vector<2x192xf32>
    %186 = arith.negf %185 : vector<2x192xf32>
    %187 = math.exp %186 : vector<2x192xf32>
    %cst_93 = arith.constant 1.000000e+00 : f32
    %188 = vector.broadcast %cst_93 : f32 to vector<2x192xf32>
    %189 = arith.addf %188, %187 : vector<2x192xf32>
    %190 = arith.divf %188, %189 : vector<2x192xf32>
    %191 = vector.extract_strided_slice %184 {offsets = [0, 192], sizes = [2, 64], strides = [1, 1]} : vector<2x256xf32> to vector<2x64xf32>
    %192 = math.tanh %191 : vector<2x64xf32>
    %193 = vector.extract_strided_slice %190 {offsets = [0, 64], sizes = [2, 64], strides = [1, 1]} : vector<2x192xf32> to vector<2x64xf32>
    %194 = arith.mulf %193, %167 : vector<2x64xf32>
    %195 = vector.extract_strided_slice %190 {offsets = [0, 0], sizes = [2, 64], strides = [1, 1]} : vector<2x192xf32> to vector<2x64xf32>
    %196 = arith.mulf %195, %192 : vector<2x64xf32>
    %197 = arith.addf %194, %196 : vector<2x64xf32>
    %198 = vector.extract_strided_slice %190 {offsets = [0, 128], sizes = [2, 64], strides = [1, 1]} : vector<2x192xf32> to vector<2x64xf32>
    %199 = math.tanh %197 : vector<2x64xf32>
    %200 = arith.mulf %198, %199 : vector<2x64xf32>
    %201 = arith.index_cast %c3_i32 : i32 to index
    %c0_94 = arith.constant 0 : index
    %c0_95 = arith.constant 0 : index
    %202 = vector.load %arg11[%201, %c0_94, %c0_95] : memref<8x2x64xf32, #tpu.memory_space<vmem>>, vector<1x2x64xf32>
    %203 = vector.shape_cast %202 : vector<1x2x64xf32> to vector<2x64xf32>
    %204 = vector.shape_cast %200 : vector<2x64xf32> to vector<1x2x64xf32>
    tpu.vector_store %arg11[%201, %c0_94, %c0_95], %204 {strides = array<i32>} : memref<8x2x64xf32, #tpu.memory_space<vmem>>, vector<1x2x64xf32>,
    %c4_i32 = arith.constant 4 : i32
    %205 = arith.index_cast %c4_i32 : i32 to index
    %c0_96 = arith.constant 0 : index
    %c0_97 = arith.constant 0 : index
    %206 = vector.load %arg10[%205, %c0_96, %c0_97] : memref<8x2x256xf32, #tpu.memory_space<vmem>>, vector<1x2x256xf32>
    %207 = vector.shape_cast %206 : vector<1x2x256xf32> to vector<2x256xf32>
    %c7_i32_98 = arith.constant 7 : i32
    %208 = arith.subi %c7_i32_98, %c4_i32 : i32
    %209 = arith.index_cast %208 : i32 to index
    %c0_99 = arith.constant 0 : index
    %c0_100 = arith.constant 0 : index
    %210 = vector.load %arg10[%209, %c0_99, %c0_100] : memref<8x2x256xf32, #tpu.memory_space<vmem>>, vector<1x2x256xf32>
    %211 = vector.shape_cast %210 : vector<1x2x256xf32> to vector<2x256xf32>
    %212 = arith.select %18, %207, %211 : vector<2x256xi1>, vector<2x256xf32>
    %cst_101 = arith.constant dense<0.000000e+00> : vector<2x256xf32>
    %213 = tpu.matmul %200, %23, %cst_101 {dimension_numbers = #tpu.dot_dimension_numbers<[1], [0], [0], [1], [0, 0, 1, 1], [], []>} : vector<2x64xf32>, vector<64x256xf32>, vector<2x256xf32> -> vector<2x256xf32>
    %214 = arith.addf %212, %213 : vector<2x256xf32>
    %215 = vector.extract_strided_slice %214 {offsets = [0, 0], sizes = [2, 192], strides = [1, 1]} : vector<2x256xf32> to vector<2x192xf32>
    %216 = arith.negf %215 : vector<2x192xf32>
    %217 = math.exp %216 : vector<2x192xf32>
    %cst_102 = arith.constant 1.000000e+00 : f32
    %218 = vector.broadcast %cst_102 : f32 to vector<2x192xf32>
    %219 = arith.addf %218, %217 : vector<2x192xf32>
    %220 = arith.divf %218, %219 : vector<2x192xf32>
    %221 = vector.extract_strided_slice %214 {offsets = [0, 192], sizes = [2, 64], strides = [1, 1]} : vector<2x256xf32> to vector<2x64xf32>
    %222 = math.tanh %221 : vector<2x64xf32>
    %223 = vector.extract_strided_slice %220 {offsets = [0, 64], sizes = [2, 64], strides = [1, 1]} : vector<2x192xf32> to vector<2x64xf32>
    %224 = arith.mulf %223, %197 : vector<2x64xf32>
    %225 = vector.extract_strided_slice %220 {offsets = [0, 0], sizes = [2, 64], strides = [1, 1]} : vector<2x192xf32> to vector<2x64xf32>
    %226 = arith.mulf %225, %222 : vector<2x64xf32>
    %227 = arith.addf %224, %226 : vector<2x64xf32>
    %228 = vector.extract_strided_slice %220 {offsets = [0, 128], sizes = [2, 64], strides = [1, 1]} : vector<2x192xf32> to vector<2x64xf32>
    %229 = math.tanh %227 : vector<2x64xf32>
    %230 = arith.mulf %228, %229 : vector<2x64xf32>
    %231 = arith.index_cast %c4_i32 : i32 to index
    %c0_103 = arith.constant 0 : index
    %c0_104 = arith.constant 0 : index
    %232 = vector.load %arg11[%231, %c0_103, %c0_104] : memref<8x2x64xf32, #tpu.memory_space<vmem>>, vector<1x2x64xf32>
    %233 = vector.shape_cast %232 : vector<1x2x64xf32> to vector<2x64xf32>
    %234 = vector.shape_cast %230 : vector<2x64xf32> to vector<1x2x64xf32>
    tpu.vector_store %arg11[%231, %c0_103, %c0_104], %234 {strides = array<i32>} : memref<8x2x64xf32, #tpu.memory_space<vmem>>, vector<1x2x64xf32>,
    %c5_i32 = arith.constant 5 : i32
    %235 = arith.index_cast %c5_i32 : i32 to index
    %c0_105 = arith.constant 0 : index
    %c0_106 = arith.constant 0 : index
    %236 = vector.load %arg10[%235, %c0_105, %c0_106] : memref<8x2x256xf32, #tpu.memory_space<vmem>>, vector<1x2x256xf32>
    %237 = vector.shape_cast %236 : vector<1x2x256xf32> to vector<2x256xf32>
    %c7_i32_107 = arith.constant 7 : i32
    %238 = arith.subi %c7_i32_107, %c5_i32 : i32
    %239 = arith.index_cast %238 : i32 to index
    %c0_108 = arith.constant 0 : index
    %c0_109 = arith.constant 0 : index
    %240 = vector.load %arg10[%239, %c0_108, %c0_109] : memref<8x2x256xf32, #tpu.memory_space<vmem>>, vector<1x2x256xf32>
    %241 = vector.shape_cast %240 : vector<1x2x256xf32> to vector<2x256xf32>
    %242 = arith.select %18, %237, %241 : vector<2x256xi1>, vector<2x256xf32>
    %cst_110 = arith.constant dense<0.000000e+00> : vector<2x256xf32>
    %243 = tpu.matmul %230, %23, %cst_110 {dimension_numbers = #tpu.dot_dimension_numbers<[1], [0], [0], [1], [0, 0, 1, 1], [], []>} : vector<2x64xf32>, vector<64x256xf32>, vector<2x256xf32> -> vector<2x256xf32>
    %244 = arith.addf %242, %243 : vector<2x256xf32>
    %245 = vector.extract_strided_slice %244 {offsets = [0, 0], sizes = [2, 192], strides = [1, 1]} : vector<2x256xf32> to vector<2x192xf32>
    %246 = arith.negf %245 : vector<2x192xf32>
    %247 = math.exp %246 : vector<2x192xf32>
    %cst_111 = arith.constant 1.000000e+00 : f32
    %248 = vector.broadcast %cst_111 : f32 to vector<2x192xf32>
    %249 = arith.addf %248, %247 : vector<2x192xf32>
    %250 = arith.divf %248, %249 : vector<2x192xf32>
    %251 = vector.extract_strided_slice %244 {offsets = [0, 192], sizes = [2, 64], strides = [1, 1]} : vector<2x256xf32> to vector<2x64xf32>
    %252 = math.tanh %251 : vector<2x64xf32>
    %253 = vector.extract_strided_slice %250 {offsets = [0, 64], sizes = [2, 64], strides = [1, 1]} : vector<2x192xf32> to vector<2x64xf32>
    %254 = arith.mulf %253, %227 : vector<2x64xf32>
    %255 = vector.extract_strided_slice %250 {offsets = [0, 0], sizes = [2, 64], strides = [1, 1]} : vector<2x192xf32> to vector<2x64xf32>
    %256 = arith.mulf %255, %252 : vector<2x64xf32>
    %257 = arith.addf %254, %256 : vector<2x64xf32>
    %258 = vector.extract_strided_slice %250 {offsets = [0, 128], sizes = [2, 64], strides = [1, 1]} : vector<2x192xf32> to vector<2x64xf32>
    %259 = math.tanh %257 : vector<2x64xf32>
    %260 = arith.mulf %258, %259 : vector<2x64xf32>
    %261 = arith.index_cast %c5_i32 : i32 to index
    %c0_112 = arith.constant 0 : index
    %c0_113 = arith.constant 0 : index
    %262 = vector.load %arg11[%261, %c0_112, %c0_113] : memref<8x2x64xf32, #tpu.memory_space<vmem>>, vector<1x2x64xf32>
    %263 = vector.shape_cast %262 : vector<1x2x64xf32> to vector<2x64xf32>
    %264 = vector.shape_cast %260 : vector<2x64xf32> to vector<1x2x64xf32>
    tpu.vector_store %arg11[%261, %c0_112, %c0_113], %264 {strides = array<i32>} : memref<8x2x64xf32, #tpu.memory_space<vmem>>, vector<1x2x64xf32>,
    %c6_i32 = arith.constant 6 : i32
    %265 = arith.index_cast %c6_i32 : i32 to index
    %c0_114 = arith.constant 0 : index
    %c0_115 = arith.constant 0 : index
    %266 = vector.load %arg10[%265, %c0_114, %c0_115] : memref<8x2x256xf32, #tpu.memory_space<vmem>>, vector<1x2x256xf32>
    %267 = vector.shape_cast %266 : vector<1x2x256xf32> to vector<2x256xf32>
    %c7_i32_116 = arith.constant 7 : i32
    %268 = arith.subi %c7_i32_116, %c6_i32 : i32
    %269 = arith.index_cast %268 : i32 to index
    %c0_117 = arith.constant 0 : index
    %c0_118 = arith.constant 0 : index
    %270 = vector.load %arg10[%269, %c0_117, %c0_118] : memref<8x2x256xf32, #tpu.memory_space<vmem>>, vector<1x2x256xf32>
    %271 = vector.shape_cast %270 : vector<1x2x256xf32> to vector<2x256xf32>
    %272 = arith.select %18, %267, %271 : vector<2x256xi1>, vector<2x256xf32>
    %cst_119 = arith.constant dense<0.000000e+00> : vector<2x256xf32>
    %273 = tpu.matmul %260, %23, %cst_119 {dimension_numbers = #tpu.dot_dimension_numbers<[1], [0], [0], [1], [0, 0, 1, 1], [], []>} : vector<2x64xf32>, vector<64x256xf32>, vector<2x256xf32> -> vector<2x256xf32>
    %274 = arith.addf %272, %273 : vector<2x256xf32>
    %275 = vector.extract_strided_slice %274 {offsets = [0, 0], sizes = [2, 192], strides = [1, 1]} : vector<2x256xf32> to vector<2x192xf32>
    %276 = arith.negf %275 : vector<2x192xf32>
    %277 = math.exp %276 : vector<2x192xf32>
    %cst_120 = arith.constant 1.000000e+00 : f32
    %278 = vector.broadcast %cst_120 : f32 to vector<2x192xf32>
    %279 = arith.addf %278, %277 : vector<2x192xf32>
    %280 = arith.divf %278, %279 : vector<2x192xf32>
    %281 = vector.extract_strided_slice %274 {offsets = [0, 192], sizes = [2, 64], strides = [1, 1]} : vector<2x256xf32> to vector<2x64xf32>
    %282 = math.tanh %281 : vector<2x64xf32>
    %283 = vector.extract_strided_slice %280 {offsets = [0, 64], sizes = [2, 64], strides = [1, 1]} : vector<2x192xf32> to vector<2x64xf32>
    %284 = arith.mulf %283, %257 : vector<2x64xf32>
    %285 = vector.extract_strided_slice %280 {offsets = [0, 0], sizes = [2, 64], strides = [1, 1]} : vector<2x192xf32> to vector<2x64xf32>
    %286 = arith.mulf %285, %282 : vector<2x64xf32>
    %287 = arith.addf %284, %286 : vector<2x64xf32>
    %288 = vector.extract_strided_slice %280 {offsets = [0, 128], sizes = [2, 64], strides = [1, 1]} : vector<2x192xf32> to vector<2x64xf32>
    %289 = math.tanh %287 : vector<2x64xf32>
    %290 = arith.mulf %288, %289 : vector<2x64xf32>
    %291 = arith.index_cast %c6_i32 : i32 to index
    %c0_121 = arith.constant 0 : index
    %c0_122 = arith.constant 0 : index
    %292 = vector.load %arg11[%291, %c0_121, %c0_122] : memref<8x2x64xf32, #tpu.memory_space<vmem>>, vector<1x2x64xf32>
    %293 = vector.shape_cast %292 : vector<1x2x64xf32> to vector<2x64xf32>
    %294 = vector.shape_cast %290 : vector<2x64xf32> to vector<1x2x64xf32>
    tpu.vector_store %arg11[%291, %c0_121, %c0_122], %294 {strides = array<i32>} : memref<8x2x64xf32, #tpu.memory_space<vmem>>, vector<1x2x64xf32>,
    %c7_i32_123 = arith.constant 7 : i32
    %295 = arith.index_cast %c7_i32_123 : i32 to index
    %c0_124 = arith.constant 0 : index
    %c0_125 = arith.constant 0 : index
    %296 = vector.load %arg10[%295, %c0_124, %c0_125] : memref<8x2x256xf32, #tpu.memory_space<vmem>>, vector<1x2x256xf32>
    %297 = vector.shape_cast %296 : vector<1x2x256xf32> to vector<2x256xf32>
    %c7_i32_126 = arith.constant 7 : i32
    %298 = arith.subi %c7_i32_126, %c7_i32_123 : i32
    %299 = arith.index_cast %298 : i32 to index
    %c0_127 = arith.constant 0 : index
    %c0_128 = arith.constant 0 : index
    %300 = vector.load %arg10[%299, %c0_127, %c0_128] : memref<8x2x256xf32, #tpu.memory_space<vmem>>, vector<1x2x256xf32>
    %301 = vector.shape_cast %300 : vector<1x2x256xf32> to vector<2x256xf32>
    %302 = arith.select %18, %297, %301 : vector<2x256xi1>, vector<2x256xf32>
    %cst_129 = arith.constant dense<0.000000e+00> : vector<2x256xf32>
    %303 = tpu.matmul %290, %23, %cst_129 {dimension_numbers = #tpu.dot_dimension_numbers<[1], [0], [0], [1], [0, 0, 1, 1], [], []>} : vector<2x64xf32>, vector<64x256xf32>, vector<2x256xf32> -> vector<2x256xf32>
    %304 = arith.addf %302, %303 : vector<2x256xf32>
    %305 = vector.extract_strided_slice %304 {offsets = [0, 0], sizes = [2, 192], strides = [1, 1]} : vector<2x256xf32> to vector<2x192xf32>
    %306 = arith.negf %305 : vector<2x192xf32>
    %307 = math.exp %306 : vector<2x192xf32>
    %cst_130 = arith.constant 1.000000e+00 : f32
    %308 = vector.broadcast %cst_130 : f32 to vector<2x192xf32>
    %309 = arith.addf %308, %307 : vector<2x192xf32>
    %310 = arith.divf %308, %309 : vector<2x192xf32>
    %311 = vector.extract_strided_slice %304 {offsets = [0, 192], sizes = [2, 64], strides = [1, 1]} : vector<2x256xf32> to vector<2x64xf32>
    %312 = math.tanh %311 : vector<2x64xf32>
    %313 = vector.extract_strided_slice %310 {offsets = [0, 64], sizes = [2, 64], strides = [1, 1]} : vector<2x192xf32> to vector<2x64xf32>
    %314 = arith.mulf %313, %287 : vector<2x64xf32>
    %315 = vector.extract_strided_slice %310 {offsets = [0, 0], sizes = [2, 64], strides = [1, 1]} : vector<2x192xf32> to vector<2x64xf32>
    %316 = arith.mulf %315, %312 : vector<2x64xf32>
    %317 = arith.addf %314, %316 : vector<2x64xf32>
    %318 = vector.extract_strided_slice %310 {offsets = [0, 128], sizes = [2, 64], strides = [1, 1]} : vector<2x192xf32> to vector<2x64xf32>
    %319 = math.tanh %317 : vector<2x64xf32>
    %320 = arith.mulf %318, %319 : vector<2x64xf32>
    %321 = arith.index_cast %c7_i32_123 : i32 to index
    %c0_131 = arith.constant 0 : index
    %c0_132 = arith.constant 0 : index
    %322 = vector.load %arg11[%321, %c0_131, %c0_132] : memref<8x2x64xf32, #tpu.memory_space<vmem>>, vector<1x2x64xf32>
    %323 = vector.shape_cast %322 : vector<1x2x64xf32> to vector<2x64xf32>
    %324 = vector.shape_cast %320 : vector<2x64xf32> to vector<1x2x64xf32>
    tpu.vector_store %arg11[%321, %c0_131, %c0_132], %324 {strides = array<i32>} : memref<8x2x64xf32, #tpu.memory_space<vmem>>, vector<1x2x64xf32>,
    %c8_i32 = arith.constant 8 : i32
    %c0_133 = arith.constant 0 : index
    %c0_134 = arith.constant 0 : index
    %c0_135 = arith.constant 0 : index
    %325 = vector.load %arg9[%c0_133, %c0_134, %c0_135] : memref<2x2x64xf32, #tpu.memory_space<vmem>>, vector<1x2x64xf32>
    %326 = vector.shape_cast %325 : vector<1x2x64xf32> to vector<2x64xf32>
    %327 = vector.shape_cast %320 : vector<2x64xf32> to vector<1x2x64xf32>
    tpu.vector_store %arg9[%c0_133, %c0_134, %c0_135], %327 {strides = array<i32>} : memref<2x2x64xf32, #tpu.memory_space<vmem>>, vector<1x2x64xf32>,
    %c0_136 = arith.constant 0 : index
    %c0_137 = arith.constant 0 : index
    %c0_138 = arith.constant 0 : index
    %328 = vector.load %arg11[%c0_136, %c0_137, %c0_138] : memref<8x2x64xf32, #tpu.memory_space<vmem>>, vector<1x2x64xf32>
    %329 = vector.shape_cast %328 : vector<1x2x64xf32> to vector<2x64xf32>
    %c7_139 = arith.constant 7 : index
    %c0_140 = arith.constant 0 : index
    %c0_141 = arith.constant 0 : index
    %330 = vector.load %arg11[%c7_139, %c0_140, %c0_141] : memref<8x2x64xf32, #tpu.memory_space<vmem>>, vector<1x2x64xf32>
    %331 = vector.shape_cast %330 : vector<1x2x64xf32> to vector<2x64xf32>
    %332 = arith.select %21, %329, %331 : vector<2x64xi1>, vector<2x64xf32>
    %c0_142 = arith.constant 0 : index
    %c0_143 = arith.constant 0 : index
    %c0_144 = arith.constant 0 : index
    %333 = vector.load %arg11[%c0_142, %c0_143, %c0_144] : memref<8x2x64xf32, #tpu.memory_space<vmem>>, vector<1x2x64xf32>
    %334 = vector.shape_cast %333 : vector<1x2x64xf32> to vector<2x64xf32>
    %335 = vector.shape_cast %332 : vector<2x64xf32> to vector<1x2x64xf32>
    tpu.vector_store %arg11[%c0_142, %c0_143, %c0_144], %335 {strides = array<i32>} : memref<8x2x64xf32, #tpu.memory_space<vmem>>, vector<1x2x64xf32>,
    %336 = arith.select %21, %331, %329 : vector<2x64xi1>, vector<2x64xf32>
    %c7_145 = arith.constant 7 : index
    %c0_146 = arith.constant 0 : index
    %c0_147 = arith.constant 0 : index
    %337 = vector.load %arg11[%c7_145, %c0_146, %c0_147] : memref<8x2x64xf32, #tpu.memory_space<vmem>>, vector<1x2x64xf32>
    %338 = vector.shape_cast %337 : vector<1x2x64xf32> to vector<2x64xf32>
    %339 = vector.shape_cast %336 : vector<2x64xf32> to vector<1x2x64xf32>
    tpu.vector_store %arg11[%c7_145, %c0_146, %c0_147], %339 {strides = array<i32>} : memref<8x2x64xf32, #tpu.memory_space<vmem>>, vector<1x2x64xf32>,
    %c1_148 = arith.constant 1 : index
    %c0_149 = arith.constant 0 : index
    %c0_150 = arith.constant 0 : index
    %340 = vector.load %arg11[%c1_148, %c0_149, %c0_150] : memref<8x2x64xf32, #tpu.memory_space<vmem>>, vector<1x2x64xf32>
    %341 = vector.shape_cast %340 : vector<1x2x64xf32> to vector<2x64xf32>
    %c6_151 = arith.constant 6 : index
    %c0_152 = arith.constant 0 : index
    %c0_153 = arith.constant 0 : index
    %342 = vector.load %arg11[%c6_151, %c0_152, %c0_153] : memref<8x2x64xf32, #tpu.memory_space<vmem>>, vector<1x2x64xf32>
    %343 = vector.shape_cast %342 : vector<1x2x64xf32> to vector<2x64xf32>
    %344 = arith.select %21, %341, %343 : vector<2x64xi1>, vector<2x64xf32>
    %c1_154 = arith.constant 1 : index
    %c0_155 = arith.constant 0 : index
    %c0_156 = arith.constant 0 : index
    %345 = vector.load %arg11[%c1_154, %c0_155, %c0_156] : memref<8x2x64xf32, #tpu.memory_space<vmem>>, vector<1x2x64xf32>
    %346 = vector.shape_cast %345 : vector<1x2x64xf32> to vector<2x64xf32>
    %347 = vector.shape_cast %344 : vector<2x64xf32> to vector<1x2x64xf32>
    tpu.vector_store %arg11[%c1_154, %c0_155, %c0_156], %347 {strides = array<i32>} : memref<8x2x64xf32, #tpu.memory_space<vmem>>, vector<1x2x64xf32>,
    %348 = arith.select %21, %343, %341 : vector<2x64xi1>, vector<2x64xf32>
    %c6_157 = arith.constant 6 : index
    %c0_158 = arith.constant 0 : index
    %c0_159 = arith.constant 0 : index
    %349 = vector.load %arg11[%c6_157, %c0_158, %c0_159] : memref<8x2x64xf32, #tpu.memory_space<vmem>>, vector<1x2x64xf32>
    %350 = vector.shape_cast %349 : vector<1x2x64xf32> to vector<2x64xf32>
    %351 = vector.shape_cast %348 : vector<2x64xf32> to vector<1x2x64xf32>
    tpu.vector_store %arg11[%c6_157, %c0_158, %c0_159], %351 {strides = array<i32>} : memref<8x2x64xf32, #tpu.memory_space<vmem>>, vector<1x2x64xf32>,
    %c2_160 = arith.constant 2 : index
    %c0_161 = arith.constant 0 : index
    %c0_162 = arith.constant 0 : index
    %352 = vector.load %arg11[%c2_160, %c0_161, %c0_162] : memref<8x2x64xf32, #tpu.memory_space<vmem>>, vector<1x2x64xf32>
    %353 = vector.shape_cast %352 : vector<1x2x64xf32> to vector<2x64xf32>
    %c5_163 = arith.constant 5 : index
    %c0_164 = arith.constant 0 : index
    %c0_165 = arith.constant 0 : index
    %354 = vector.load %arg11[%c5_163, %c0_164, %c0_165] : memref<8x2x64xf32, #tpu.memory_space<vmem>>, vector<1x2x64xf32>
    %355 = vector.shape_cast %354 : vector<1x2x64xf32> to vector<2x64xf32>
    %356 = arith.select %21, %353, %355 : vector<2x64xi1>, vector<2x64xf32>
    %c2_166 = arith.constant 2 : index
    %c0_167 = arith.constant 0 : index
    %c0_168 = arith.constant 0 : index
    %357 = vector.load %arg11[%c2_166, %c0_167, %c0_168] : memref<8x2x64xf32, #tpu.memory_space<vmem>>, vector<1x2x64xf32>
    %358 = vector.shape_cast %357 : vector<1x2x64xf32> to vector<2x64xf32>
    %359 = vector.shape_cast %356 : vector<2x64xf32> to vector<1x2x64xf32>
    tpu.vector_store %arg11[%c2_166, %c0_167, %c0_168], %359 {strides = array<i32>} : memref<8x2x64xf32, #tpu.memory_space<vmem>>, vector<1x2x64xf32>,
    %360 = arith.select %21, %355, %353 : vector<2x64xi1>, vector<2x64xf32>
    %c5_169 = arith.constant 5 : index
    %c0_170 = arith.constant 0 : index
    %c0_171 = arith.constant 0 : index
    %361 = vector.load %arg11[%c5_169, %c0_170, %c0_171] : memref<8x2x64xf32, #tpu.memory_space<vmem>>, vector<1x2x64xf32>
    %362 = vector.shape_cast %361 : vector<1x2x64xf32> to vector<2x64xf32>
    %363 = vector.shape_cast %360 : vector<2x64xf32> to vector<1x2x64xf32>
    tpu.vector_store %arg11[%c5_169, %c0_170, %c0_171], %363 {strides = array<i32>} : memref<8x2x64xf32, #tpu.memory_space<vmem>>, vector<1x2x64xf32>,
    %c3_172 = arith.constant 3 : index
    %c0_173 = arith.constant 0 : index
    %c0_174 = arith.constant 0 : index
    %364 = vector.load %arg11[%c3_172, %c0_173, %c0_174] : memref<8x2x64xf32, #tpu.memory_space<vmem>>, vector<1x2x64xf32>
    %365 = vector.shape_cast %364 : vector<1x2x64xf32> to vector<2x64xf32>
    %c4_175 = arith.constant 4 : index
    %c0_176 = arith.constant 0 : index
    %c0_177 = arith.constant 0 : index
    %366 = vector.load %arg11[%c4_175, %c0_176, %c0_177] : memref<8x2x64xf32, #tpu.memory_space<vmem>>, vector<1x2x64xf32>
    %367 = vector.shape_cast %366 : vector<1x2x64xf32> to vector<2x64xf32>
    %368 = arith.select %21, %365, %367 : vector<2x64xi1>, vector<2x64xf32>
    %c3_178 = arith.constant 3 : index
    %c0_179 = arith.constant 0 : index
    %c0_180 = arith.constant 0 : index
    %369 = vector.load %arg11[%c3_178, %c0_179, %c0_180] : memref<8x2x64xf32, #tpu.memory_space<vmem>>, vector<1x2x64xf32>
    %370 = vector.shape_cast %369 : vector<1x2x64xf32> to vector<2x64xf32>
    %371 = vector.shape_cast %368 : vector<2x64xf32> to vector<1x2x64xf32>
    tpu.vector_store %arg11[%c3_178, %c0_179, %c0_180], %371 {strides = array<i32>} : memref<8x2x64xf32, #tpu.memory_space<vmem>>, vector<1x2x64xf32>,
    %372 = arith.select %21, %367, %365 : vector<2x64xi1>, vector<2x64xf32>
    %c4_181 = arith.constant 4 : index
    %c0_182 = arith.constant 0 : index
    %c0_183 = arith.constant 0 : index
    %373 = vector.load %arg11[%c4_181, %c0_182, %c0_183] : memref<8x2x64xf32, #tpu.memory_space<vmem>>, vector<1x2x64xf32>
    %374 = vector.shape_cast %373 : vector<1x2x64xf32> to vector<2x64xf32>
    %375 = vector.shape_cast %372 : vector<2x64xf32> to vector<1x2x64xf32>
    tpu.vector_store %arg11[%c4_181, %c0_182, %c0_183], %375 {strides = array<i32>} : memref<8x2x64xf32, #tpu.memory_space<vmem>>, vector<1x2x64xf32>,
    %c0_184 = arith.constant 0 : index
    %c0_185 = arith.constant 0 : index
    %376 = vector.load %arg5[%c0_184, %c0_185] : memref<64x256xf32, #tpu.memory_space<vmem>>, vector<64x256xf32>
    %c0_186 = arith.constant 0 : index
    %c0_187 = arith.constant 0 : index
    %377 = vector.load %arg6[%c0_186, %c0_187] : memref<64x256xf32, #tpu.memory_space<vmem>>, vector<64x256xf32>
    %c0_188 = arith.constant 0 : index
    %c0_189 = arith.constant 0 : index
    %378 = vector.load %arg7[%c0_188, %c0_189] : memref<1x256xf32, #tpu.memory_space<vmem>>, vector<1x256xf32>
    %379 = vector.shape_cast %378 : vector<1x256xf32> to vector<1x256xf32>
    %380 = vector.broadcast %379 : vector<1x256xf32> to vector<2x256xf32>
    %c0_190 = arith.constant 0 : index
    %c0_191 = arith.constant 0 : index
    %c0_192 = arith.constant 0 : index
    %381 = vector.load %arg11[%c0_190, %c0_191, %c0_192] : memref<8x2x64xf32, #tpu.memory_space<vmem>>, vector<1x2x64xf32>
    %382 = vector.shape_cast %381 : vector<1x2x64xf32> to vector<2x64xf32>
    %cst_193 = arith.constant dense<0.000000e+00> : vector<2x256xf32>
    %383 = tpu.matmul %382, %376, %cst_193 {dimension_numbers = #tpu.dot_dimension_numbers<[1], [0], [0], [1], [0, 0, 1, 1], [], []>} : vector<2x64xf32>, vector<64x256xf32>, vector<2x256xf32> -> vector<2x256xf32>
    %384 = arith.addf %383, %380 : vector<2x256xf32>
    %c0_194 = arith.constant 0 : index
    %c0_195 = arith.constant 0 : index
    %c0_196 = arith.constant 0 : index
    %385 = vector.load %arg10[%c0_194, %c0_195, %c0_196] : memref<8x2x256xf32, #tpu.memory_space<vmem>>, vector<1x2x256xf32>
    %386 = vector.shape_cast %385 : vector<1x2x256xf32> to vector<2x256xf32>
    %387 = vector.shape_cast %384 : vector<2x256xf32> to vector<1x2x256xf32>
    tpu.vector_store %arg10[%c0_194, %c0_195, %c0_196], %387 {strides = array<i32>} : memref<8x2x256xf32, #tpu.memory_space<vmem>>, vector<1x2x256xf32>,
    %c1_197 = arith.constant 1 : index
    %c0_198 = arith.constant 0 : index
    %c0_199 = arith.constant 0 : index
    %388 = vector.load %arg11[%c1_197, %c0_198, %c0_199] : memref<8x2x64xf32, #tpu.memory_space<vmem>>, vector<1x2x64xf32>
    %389 = vector.shape_cast %388 : vector<1x2x64xf32> to vector<2x64xf32>
    %cst_200 = arith.constant dense<0.000000e+00> : vector<2x256xf32>
    %390 = tpu.matmul %389, %376, %cst_200 {dimension_numbers = #tpu.dot_dimension_numbers<[1], [0], [0], [1], [0, 0, 1, 1], [], []>} : vector<2x64xf32>, vector<64x256xf32>, vector<2x256xf32> -> vector<2x256xf32>
    %391 = arith.addf %390, %380 : vector<2x256xf32>
    %c1_201 = arith.constant 1 : index
    %c0_202 = arith.constant 0 : index
    %c0_203 = arith.constant 0 : index
    %392 = vector.load %arg10[%c1_201, %c0_202, %c0_203] : memref<8x2x256xf32, #tpu.memory_space<vmem>>, vector<1x2x256xf32>
    %393 = vector.shape_cast %392 : vector<1x2x256xf32> to vector<2x256xf32>
    %394 = vector.shape_cast %391 : vector<2x256xf32> to vector<1x2x256xf32>
    tpu.vector_store %arg10[%c1_201, %c0_202, %c0_203], %394 {strides = array<i32>} : memref<8x2x256xf32, #tpu.memory_space<vmem>>, vector<1x2x256xf32>,
    %c2_204 = arith.constant 2 : index
    %c0_205 = arith.constant 0 : index
    %c0_206 = arith.constant 0 : index
    %395 = vector.load %arg11[%c2_204, %c0_205, %c0_206] : memref<8x2x64xf32, #tpu.memory_space<vmem>>, vector<1x2x64xf32>
    %396 = vector.shape_cast %395 : vector<1x2x64xf32> to vector<2x64xf32>
    %cst_207 = arith.constant dense<0.000000e+00> : vector<2x256xf32>
    %397 = tpu.matmul %396, %376, %cst_207 {dimension_numbers = #tpu.dot_dimension_numbers<[1], [0], [0], [1], [0, 0, 1, 1], [], []>} : vector<2x64xf32>, vector<64x256xf32>, vector<2x256xf32> -> vector<2x256xf32>
    %398 = arith.addf %397, %380 : vector<2x256xf32>
    %c2_208 = arith.constant 2 : index
    %c0_209 = arith.constant 0 : index
    %c0_210 = arith.constant 0 : index
    %399 = vector.load %arg10[%c2_208, %c0_209, %c0_210] : memref<8x2x256xf32, #tpu.memory_space<vmem>>, vector<1x2x256xf32>
    %400 = vector.shape_cast %399 : vector<1x2x256xf32> to vector<2x256xf32>
    %401 = vector.shape_cast %398 : vector<2x256xf32> to vector<1x2x256xf32>
    tpu.vector_store %arg10[%c2_208, %c0_209, %c0_210], %401 {strides = array<i32>} : memref<8x2x256xf32, #tpu.memory_space<vmem>>, vector<1x2x256xf32>,
    %c3_211 = arith.constant 3 : index
    %c0_212 = arith.constant 0 : index
    %c0_213 = arith.constant 0 : index
    %402 = vector.load %arg11[%c3_211, %c0_212, %c0_213] : memref<8x2x64xf32, #tpu.memory_space<vmem>>, vector<1x2x64xf32>
    %403 = vector.shape_cast %402 : vector<1x2x64xf32> to vector<2x64xf32>
    %cst_214 = arith.constant dense<0.000000e+00> : vector<2x256xf32>
    %404 = tpu.matmul %403, %376, %cst_214 {dimension_numbers = #tpu.dot_dimension_numbers<[1], [0], [0], [1], [0, 0, 1, 1], [], []>} : vector<2x64xf32>, vector<64x256xf32>, vector<2x256xf32> -> vector<2x256xf32>
    %405 = arith.addf %404, %380 : vector<2x256xf32>
    %c3_215 = arith.constant 3 : index
    %c0_216 = arith.constant 0 : index
    %c0_217 = arith.constant 0 : index
    %406 = vector.load %arg10[%c3_215, %c0_216, %c0_217] : memref<8x2x256xf32, #tpu.memory_space<vmem>>, vector<1x2x256xf32>
    %407 = vector.shape_cast %406 : vector<1x2x256xf32> to vector<2x256xf32>
    %408 = vector.shape_cast %405 : vector<2x256xf32> to vector<1x2x256xf32>
    tpu.vector_store %arg10[%c3_215, %c0_216, %c0_217], %408 {strides = array<i32>} : memref<8x2x256xf32, #tpu.memory_space<vmem>>, vector<1x2x256xf32>,
    %c4_218 = arith.constant 4 : index
    %c0_219 = arith.constant 0 : index
    %c0_220 = arith.constant 0 : index
    %409 = vector.load %arg11[%c4_218, %c0_219, %c0_220] : memref<8x2x64xf32, #tpu.memory_space<vmem>>, vector<1x2x64xf32>
    %410 = vector.shape_cast %409 : vector<1x2x64xf32> to vector<2x64xf32>
    %cst_221 = arith.constant dense<0.000000e+00> : vector<2x256xf32>
    %411 = tpu.matmul %410, %376, %cst_221 {dimension_numbers = #tpu.dot_dimension_numbers<[1], [0], [0], [1], [0, 0, 1, 1], [], []>} : vector<2x64xf32>, vector<64x256xf32>, vector<2x256xf32> -> vector<2x256xf32>
    %412 = arith.addf %411, %380 : vector<2x256xf32>
    %c4_222 = arith.constant 4 : index
    %c0_223 = arith.constant 0 : index
    %c0_224 = arith.constant 0 : index
    %413 = vector.load %arg10[%c4_222, %c0_223, %c0_224] : memref<8x2x256xf32, #tpu.memory_space<vmem>>, vector<1x2x256xf32>
    %414 = vector.shape_cast %413 : vector<1x2x256xf32> to vector<2x256xf32>
    %415 = vector.shape_cast %412 : vector<2x256xf32> to vector<1x2x256xf32>
    tpu.vector_store %arg10[%c4_222, %c0_223, %c0_224], %415 {strides = array<i32>} : memref<8x2x256xf32, #tpu.memory_space<vmem>>, vector<1x2x256xf32>,
    %c5_225 = arith.constant 5 : index
    %c0_226 = arith.constant 0 : index
    %c0_227 = arith.constant 0 : index
    %416 = vector.load %arg11[%c5_225, %c0_226, %c0_227] : memref<8x2x64xf32, #tpu.memory_space<vmem>>, vector<1x2x64xf32>
    %417 = vector.shape_cast %416 : vector<1x2x64xf32> to vector<2x64xf32>
    %cst_228 = arith.constant dense<0.000000e+00> : vector<2x256xf32>
    %418 = tpu.matmul %417, %376, %cst_228 {dimension_numbers = #tpu.dot_dimension_numbers<[1], [0], [0], [1], [0, 0, 1, 1], [], []>} : vector<2x64xf32>, vector<64x256xf32>, vector<2x256xf32> -> vector<2x256xf32>
    %419 = arith.addf %418, %380 : vector<2x256xf32>
    %c5_229 = arith.constant 5 : index
    %c0_230 = arith.constant 0 : index
    %c0_231 = arith.constant 0 : index
    %420 = vector.load %arg10[%c5_229, %c0_230, %c0_231] : memref<8x2x256xf32, #tpu.memory_space<vmem>>, vector<1x2x256xf32>
    %421 = vector.shape_cast %420 : vector<1x2x256xf32> to vector<2x256xf32>
    %422 = vector.shape_cast %419 : vector<2x256xf32> to vector<1x2x256xf32>
    tpu.vector_store %arg10[%c5_229, %c0_230, %c0_231], %422 {strides = array<i32>} : memref<8x2x256xf32, #tpu.memory_space<vmem>>, vector<1x2x256xf32>,
    %c6_232 = arith.constant 6 : index
    %c0_233 = arith.constant 0 : index
    %c0_234 = arith.constant 0 : index
    %423 = vector.load %arg11[%c6_232, %c0_233, %c0_234] : memref<8x2x64xf32, #tpu.memory_space<vmem>>, vector<1x2x64xf32>
    %424 = vector.shape_cast %423 : vector<1x2x64xf32> to vector<2x64xf32>
    %cst_235 = arith.constant dense<0.000000e+00> : vector<2x256xf32>
    %425 = tpu.matmul %424, %376, %cst_235 {dimension_numbers = #tpu.dot_dimension_numbers<[1], [0], [0], [1], [0, 0, 1, 1], [], []>} : vector<2x64xf32>, vector<64x256xf32>, vector<2x256xf32> -> vector<2x256xf32>
    %426 = arith.addf %425, %380 : vector<2x256xf32>
    %c6_236 = arith.constant 6 : index
    %c0_237 = arith.constant 0 : index
    %c0_238 = arith.constant 0 : index
    %427 = vector.load %arg10[%c6_236, %c0_237, %c0_238] : memref<8x2x256xf32, #tpu.memory_space<vmem>>, vector<1x2x256xf32>
    %428 = vector.shape_cast %427 : vector<1x2x256xf32> to vector<2x256xf32>
    %429 = vector.shape_cast %426 : vector<2x256xf32> to vector<1x2x256xf32>
    tpu.vector_store %arg10[%c6_236, %c0_237, %c0_238], %429 {strides = array<i32>} : memref<8x2x256xf32, #tpu.memory_space<vmem>>, vector<1x2x256xf32>,
    %c7_239 = arith.constant 7 : index
    %c0_240 = arith.constant 0 : index
    %c0_241 = arith.constant 0 : index
    %430 = vector.load %arg11[%c7_239, %c0_240, %c0_241] : memref<8x2x64xf32, #tpu.memory_space<vmem>>, vector<1x2x64xf32>
    %431 = vector.shape_cast %430 : vector<1x2x64xf32> to vector<2x64xf32>
    %cst_242 = arith.constant dense<0.000000e+00> : vector<2x256xf32>
    %432 = tpu.matmul %431, %376, %cst_242 {dimension_numbers = #tpu.dot_dimension_numbers<[1], [0], [0], [1], [0, 0, 1, 1], [], []>} : vector<2x64xf32>, vector<64x256xf32>, vector<2x256xf32> -> vector<2x256xf32>
    %433 = arith.addf %432, %380 : vector<2x256xf32>
    %c7_243 = arith.constant 7 : index
    %c0_244 = arith.constant 0 : index
    %c0_245 = arith.constant 0 : index
    %434 = vector.load %arg10[%c7_243, %c0_244, %c0_245] : memref<8x2x256xf32, #tpu.memory_space<vmem>>, vector<1x2x256xf32>
    %435 = vector.shape_cast %434 : vector<1x2x256xf32> to vector<2x256xf32>
    %436 = vector.shape_cast %433 : vector<2x256xf32> to vector<1x2x256xf32>
    tpu.vector_store %arg10[%c7_243, %c0_244, %c0_245], %436 {strides = array<i32>} : memref<8x2x256xf32, #tpu.memory_space<vmem>>, vector<1x2x256xf32>,
    %cst_246 = arith.constant 0.000000e+00 : f32
    %437 = vector.broadcast %cst_246 : f32 to vector<2x64xf32>
    %cst_247 = arith.constant 0.000000e+00 : f32
    %438 = vector.broadcast %cst_247 : f32 to vector<2x64xf32>
    %c0_i32_248 = arith.constant 0 : i32
    %439 = arith.index_cast %c0_i32_248 : i32 to index
    %c0_249 = arith.constant 0 : index
    %c0_250 = arith.constant 0 : index
    %440 = vector.load %arg10[%439, %c0_249, %c0_250] : memref<8x2x256xf32, #tpu.memory_space<vmem>>, vector<1x2x256xf32>
    %441 = vector.shape_cast %440 : vector<1x2x256xf32> to vector<2x256xf32>
    %c7_i32_251 = arith.constant 7 : i32
    %442 = arith.subi %c7_i32_251, %c0_i32_248 : i32
    %443 = arith.index_cast %442 : i32 to index
    %c0_252 = arith.constant 0 : index
    %c0_253 = arith.constant 0 : index
    %444 = vector.load %arg10[%443, %c0_252, %c0_253] : memref<8x2x256xf32, #tpu.memory_space<vmem>>, vector<1x2x256xf32>
    %445 = vector.shape_cast %444 : vector<1x2x256xf32> to vector<2x256xf32>
    %446 = arith.select %18, %441, %445 : vector<2x256xi1>, vector<2x256xf32>
    %cst_254 = arith.constant dense<0.000000e+00> : vector<2x256xf32>
    %447 = tpu.matmul %437, %377, %cst_254 {dimension_numbers = #tpu.dot_dimension_numbers<[1], [0], [0], [1], [0, 0, 1, 1], [], []>} : vector<2x64xf32>, vector<64x256xf32>, vector<2x256xf32> -> vector<2x256xf32>
    %448 = arith.addf %446, %447 : vector<2x256xf32>
    %449 = vector.extract_strided_slice %448 {offsets = [0, 0], sizes = [2, 192], strides = [1, 1]} : vector<2x256xf32> to vector<2x192xf32>
    %450 = arith.negf %449 : vector<2x192xf32>
    %451 = math.exp %450 : vector<2x192xf32>
    %cst_255 = arith.constant 1.000000e+00 : f32
    %452 = vector.broadcast %cst_255 : f32 to vector<2x192xf32>
    %453 = arith.addf %452, %451 : vector<2x192xf32>
    %454 = arith.divf %452, %453 : vector<2x192xf32>
    %455 = vector.extract_strided_slice %448 {offsets = [0, 192], sizes = [2, 64], strides = [1, 1]} : vector<2x256xf32> to vector<2x64xf32>
    %456 = math.tanh %455 : vector<2x64xf32>
    %457 = vector.extract_strided_slice %454 {offsets = [0, 64], sizes = [2, 64], strides = [1, 1]} : vector<2x192xf32> to vector<2x64xf32>
    %458 = arith.mulf %457, %438 : vector<2x64xf32>
    %459 = vector.extract_strided_slice %454 {offsets = [0, 0], sizes = [2, 64], strides = [1, 1]} : vector<2x192xf32> to vector<2x64xf32>
    %460 = arith.mulf %459, %456 : vector<2x64xf32>
    %461 = arith.addf %458, %460 : vector<2x64xf32>
    %462 = vector.extract_strided_slice %454 {offsets = [0, 128], sizes = [2, 64], strides = [1, 1]} : vector<2x192xf32> to vector<2x64xf32>
    %463 = math.tanh %461 : vector<2x64xf32>
    %464 = arith.mulf %462, %463 : vector<2x64xf32>
    %465 = arith.index_cast %c0_i32_248 : i32 to index
    %c0_256 = arith.constant 0 : index
    %c0_257 = arith.constant 0 : index
    %466 = vector.load %arg11[%465, %c0_256, %c0_257] : memref<8x2x64xf32, #tpu.memory_space<vmem>>, vector<1x2x64xf32>
    %467 = vector.shape_cast %466 : vector<1x2x64xf32> to vector<2x64xf32>
    %468 = vector.shape_cast %464 : vector<2x64xf32> to vector<1x2x64xf32>
    tpu.vector_store %arg11[%465, %c0_256, %c0_257], %468 {strides = array<i32>} : memref<8x2x64xf32, #tpu.memory_space<vmem>>, vector<1x2x64xf32>,
    %c1_i32_258 = arith.constant 1 : i32
    %469 = arith.index_cast %c1_i32_258 : i32 to index
    %c0_259 = arith.constant 0 : index
    %c0_260 = arith.constant 0 : index
    %470 = vector.load %arg10[%469, %c0_259, %c0_260] : memref<8x2x256xf32, #tpu.memory_space<vmem>>, vector<1x2x256xf32>
    %471 = vector.shape_cast %470 : vector<1x2x256xf32> to vector<2x256xf32>
    %c7_i32_261 = arith.constant 7 : i32
    %472 = arith.subi %c7_i32_261, %c1_i32_258 : i32
    %473 = arith.index_cast %472 : i32 to index
    %c0_262 = arith.constant 0 : index
    %c0_263 = arith.constant 0 : index
    %474 = vector.load %arg10[%473, %c0_262, %c0_263] : memref<8x2x256xf32, #tpu.memory_space<vmem>>, vector<1x2x256xf32>
    %475 = vector.shape_cast %474 : vector<1x2x256xf32> to vector<2x256xf32>
    %476 = arith.select %18, %471, %475 : vector<2x256xi1>, vector<2x256xf32>
    %cst_264 = arith.constant dense<0.000000e+00> : vector<2x256xf32>
    %477 = tpu.matmul %464, %377, %cst_264 {dimension_numbers = #tpu.dot_dimension_numbers<[1], [0], [0], [1], [0, 0, 1, 1], [], []>} : vector<2x64xf32>, vector<64x256xf32>, vector<2x256xf32> -> vector<2x256xf32>
    %478 = arith.addf %476, %477 : vector<2x256xf32>
    %479 = vector.extract_strided_slice %478 {offsets = [0, 0], sizes = [2, 192], strides = [1, 1]} : vector<2x256xf32> to vector<2x192xf32>
    %480 = arith.negf %479 : vector<2x192xf32>
    %481 = math.exp %480 : vector<2x192xf32>
    %cst_265 = arith.constant 1.000000e+00 : f32
    %482 = vector.broadcast %cst_265 : f32 to vector<2x192xf32>
    %483 = arith.addf %482, %481 : vector<2x192xf32>
    %484 = arith.divf %482, %483 : vector<2x192xf32>
    %485 = vector.extract_strided_slice %478 {offsets = [0, 192], sizes = [2, 64], strides = [1, 1]} : vector<2x256xf32> to vector<2x64xf32>
    %486 = math.tanh %485 : vector<2x64xf32>
    %487 = vector.extract_strided_slice %484 {offsets = [0, 64], sizes = [2, 64], strides = [1, 1]} : vector<2x192xf32> to vector<2x64xf32>
    %488 = arith.mulf %487, %461 : vector<2x64xf32>
    %489 = vector.extract_strided_slice %484 {offsets = [0, 0], sizes = [2, 64], strides = [1, 1]} : vector<2x192xf32> to vector<2x64xf32>
    %490 = arith.mulf %489, %486 : vector<2x64xf32>
    %491 = arith.addf %488, %490 : vector<2x64xf32>
    %492 = vector.extract_strided_slice %484 {offsets = [0, 128], sizes = [2, 64], strides = [1, 1]} : vector<2x192xf32> to vector<2x64xf32>
    %493 = math.tanh %491 : vector<2x64xf32>
    %494 = arith.mulf %492, %493 : vector<2x64xf32>
    %495 = arith.index_cast %c1_i32_258 : i32 to index
    %c0_266 = arith.constant 0 : index
    %c0_267 = arith.constant 0 : index
    %496 = vector.load %arg11[%495, %c0_266, %c0_267] : memref<8x2x64xf32, #tpu.memory_space<vmem>>, vector<1x2x64xf32>
    %497 = vector.shape_cast %496 : vector<1x2x64xf32> to vector<2x64xf32>
    %498 = vector.shape_cast %494 : vector<2x64xf32> to vector<1x2x64xf32>
    tpu.vector_store %arg11[%495, %c0_266, %c0_267], %498 {strides = array<i32>} : memref<8x2x64xf32, #tpu.memory_space<vmem>>, vector<1x2x64xf32>,
    %c2_i32_268 = arith.constant 2 : i32
    %499 = arith.index_cast %c2_i32_268 : i32 to index
    %c0_269 = arith.constant 0 : index
    %c0_270 = arith.constant 0 : index
    %500 = vector.load %arg10[%499, %c0_269, %c0_270] : memref<8x2x256xf32, #tpu.memory_space<vmem>>, vector<1x2x256xf32>
    %501 = vector.shape_cast %500 : vector<1x2x256xf32> to vector<2x256xf32>
    %c7_i32_271 = arith.constant 7 : i32
    %502 = arith.subi %c7_i32_271, %c2_i32_268 : i32
    %503 = arith.index_cast %502 : i32 to index
    %c0_272 = arith.constant 0 : index
    %c0_273 = arith.constant 0 : index
    %504 = vector.load %arg10[%503, %c0_272, %c0_273] : memref<8x2x256xf32, #tpu.memory_space<vmem>>, vector<1x2x256xf32>
    %505 = vector.shape_cast %504 : vector<1x2x256xf32> to vector<2x256xf32>
    %506 = arith.select %18, %501, %505 : vector<2x256xi1>, vector<2x256xf32>
    %cst_274 = arith.constant dense<0.000000e+00> : vector<2x256xf32>
    %507 = tpu.matmul %494, %377, %cst_274 {dimension_numbers = #tpu.dot_dimension_numbers<[1], [0], [0], [1], [0, 0, 1, 1], [], []>} : vector<2x64xf32>, vector<64x256xf32>, vector<2x256xf32> -> vector<2x256xf32>
    %508 = arith.addf %506, %507 : vector<2x256xf32>
    %509 = vector.extract_strided_slice %508 {offsets = [0, 0], sizes = [2, 192], strides = [1, 1]} : vector<2x256xf32> to vector<2x192xf32>
    %510 = arith.negf %509 : vector<2x192xf32>
    %511 = math.exp %510 : vector<2x192xf32>
    %cst_275 = arith.constant 1.000000e+00 : f32
    %512 = vector.broadcast %cst_275 : f32 to vector<2x192xf32>
    %513 = arith.addf %512, %511 : vector<2x192xf32>
    %514 = arith.divf %512, %513 : vector<2x192xf32>
    %515 = vector.extract_strided_slice %508 {offsets = [0, 192], sizes = [2, 64], strides = [1, 1]} : vector<2x256xf32> to vector<2x64xf32>
    %516 = math.tanh %515 : vector<2x64xf32>
    %517 = vector.extract_strided_slice %514 {offsets = [0, 64], sizes = [2, 64], strides = [1, 1]} : vector<2x192xf32> to vector<2x64xf32>
    %518 = arith.mulf %517, %491 : vector<2x64xf32>
    %519 = vector.extract_strided_slice %514 {offsets = [0, 0], sizes = [2, 64], strides = [1, 1]} : vector<2x192xf32> to vector<2x64xf32>
    %520 = arith.mulf %519, %516 : vector<2x64xf32>
    %521 = arith.addf %518, %520 : vector<2x64xf32>
    %522 = vector.extract_strided_slice %514 {offsets = [0, 128], sizes = [2, 64], strides = [1, 1]} : vector<2x192xf32> to vector<2x64xf32>
    %523 = math.tanh %521 : vector<2x64xf32>
    %524 = arith.mulf %522, %523 : vector<2x64xf32>
    %525 = arith.index_cast %c2_i32_268 : i32 to index
    %c0_276 = arith.constant 0 : index
    %c0_277 = arith.constant 0 : index
    %526 = vector.load %arg11[%525, %c0_276, %c0_277] : memref<8x2x64xf32, #tpu.memory_space<vmem>>, vector<1x2x64xf32>
    %527 = vector.shape_cast %526 : vector<1x2x64xf32> to vector<2x64xf32>
    %528 = vector.shape_cast %524 : vector<2x64xf32> to vector<1x2x64xf32>
    tpu.vector_store %arg11[%525, %c0_276, %c0_277], %528 {strides = array<i32>} : memref<8x2x64xf32, #tpu.memory_space<vmem>>, vector<1x2x64xf32>,
    %c3_i32_278 = arith.constant 3 : i32
    %529 = arith.index_cast %c3_i32_278 : i32 to index
    %c0_279 = arith.constant 0 : index
    %c0_280 = arith.constant 0 : index
    %530 = vector.load %arg10[%529, %c0_279, %c0_280] : memref<8x2x256xf32, #tpu.memory_space<vmem>>, vector<1x2x256xf32>
    %531 = vector.shape_cast %530 : vector<1x2x256xf32> to vector<2x256xf32>
    %c7_i32_281 = arith.constant 7 : i32
    %532 = arith.subi %c7_i32_281, %c3_i32_278 : i32
    %533 = arith.index_cast %532 : i32 to index
    %c0_282 = arith.constant 0 : index
    %c0_283 = arith.constant 0 : index
    %534 = vector.load %arg10[%533, %c0_282, %c0_283] : memref<8x2x256xf32, #tpu.memory_space<vmem>>, vector<1x2x256xf32>
    %535 = vector.shape_cast %534 : vector<1x2x256xf32> to vector<2x256xf32>
    %536 = arith.select %18, %531, %535 : vector<2x256xi1>, vector<2x256xf32>
    %cst_284 = arith.constant dense<0.000000e+00> : vector<2x256xf32>
    %537 = tpu.matmul %524, %377, %cst_284 {dimension_numbers = #tpu.dot_dimension_numbers<[1], [0], [0], [1], [0, 0, 1, 1], [], []>} : vector<2x64xf32>, vector<64x256xf32>, vector<2x256xf32> -> vector<2x256xf32>
    %538 = arith.addf %536, %537 : vector<2x256xf32>
    %539 = vector.extract_strided_slice %538 {offsets = [0, 0], sizes = [2, 192], strides = [1, 1]} : vector<2x256xf32> to vector<2x192xf32>
    %540 = arith.negf %539 : vector<2x192xf32>
    %541 = math.exp %540 : vector<2x192xf32>
    %cst_285 = arith.constant 1.000000e+00 : f32
    %542 = vector.broadcast %cst_285 : f32 to vector<2x192xf32>
    %543 = arith.addf %542, %541 : vector<2x192xf32>
    %544 = arith.divf %542, %543 : vector<2x192xf32>
    %545 = vector.extract_strided_slice %538 {offsets = [0, 192], sizes = [2, 64], strides = [1, 1]} : vector<2x256xf32> to vector<2x64xf32>
    %546 = math.tanh %545 : vector<2x64xf32>
    %547 = vector.extract_strided_slice %544 {offsets = [0, 64], sizes = [2, 64], strides = [1, 1]} : vector<2x192xf32> to vector<2x64xf32>
    %548 = arith.mulf %547, %521 : vector<2x64xf32>
    %549 = vector.extract_strided_slice %544 {offsets = [0, 0], sizes = [2, 64], strides = [1, 1]} : vector<2x192xf32> to vector<2x64xf32>
    %550 = arith.mulf %549, %546 : vector<2x64xf32>
    %551 = arith.addf %548, %550 : vector<2x64xf32>
    %552 = vector.extract_strided_slice %544 {offsets = [0, 128], sizes = [2, 64], strides = [1, 1]} : vector<2x192xf32> to vector<2x64xf32>
    %553 = math.tanh %551 : vector<2x64xf32>
    %554 = arith.mulf %552, %553 : vector<2x64xf32>
    %555 = arith.index_cast %c3_i32_278 : i32 to index
    %c0_286 = arith.constant 0 : index
    %c0_287 = arith.constant 0 : index
    %556 = vector.load %arg11[%555, %c0_286, %c0_287] : memref<8x2x64xf32, #tpu.memory_space<vmem>>, vector<1x2x64xf32>
    %557 = vector.shape_cast %556 : vector<1x2x64xf32> to vector<2x64xf32>
    %558 = vector.shape_cast %554 : vector<2x64xf32> to vector<1x2x64xf32>
    tpu.vector_store %arg11[%555, %c0_286, %c0_287], %558 {strides = array<i32>} : memref<8x2x64xf32, #tpu.memory_space<vmem>>, vector<1x2x64xf32>,
    %c4_i32_288 = arith.constant 4 : i32
    %559 = arith.index_cast %c4_i32_288 : i32 to index
    %c0_289 = arith.constant 0 : index
    %c0_290 = arith.constant 0 : index
    %560 = vector.load %arg10[%559, %c0_289, %c0_290] : memref<8x2x256xf32, #tpu.memory_space<vmem>>, vector<1x2x256xf32>
    %561 = vector.shape_cast %560 : vector<1x2x256xf32> to vector<2x256xf32>
    %c7_i32_291 = arith.constant 7 : i32
    %562 = arith.subi %c7_i32_291, %c4_i32_288 : i32
    %563 = arith.index_cast %562 : i32 to index
    %c0_292 = arith.constant 0 : index
    %c0_293 = arith.constant 0 : index
    %564 = vector.load %arg10[%563, %c0_292, %c0_293] : memref<8x2x256xf32, #tpu.memory_space<vmem>>, vector<1x2x256xf32>
    %565 = vector.shape_cast %564 : vector<1x2x256xf32> to vector<2x256xf32>
    %566 = arith.select %18, %561, %565 : vector<2x256xi1>, vector<2x256xf32>
    %cst_294 = arith.constant dense<0.000000e+00> : vector<2x256xf32>
    %567 = tpu.matmul %554, %377, %cst_294 {dimension_numbers = #tpu.dot_dimension_numbers<[1], [0], [0], [1], [0, 0, 1, 1], [], []>} : vector<2x64xf32>, vector<64x256xf32>, vector<2x256xf32> -> vector<2x256xf32>
    %568 = arith.addf %566, %567 : vector<2x256xf32>
    %569 = vector.extract_strided_slice %568 {offsets = [0, 0], sizes = [2, 192], strides = [1, 1]} : vector<2x256xf32> to vector<2x192xf32>
    %570 = arith.negf %569 : vector<2x192xf32>
    %571 = math.exp %570 : vector<2x192xf32>
    %cst_295 = arith.constant 1.000000e+00 : f32
    %572 = vector.broadcast %cst_295 : f32 to vector<2x192xf32>
    %573 = arith.addf %572, %571 : vector<2x192xf32>
    %574 = arith.divf %572, %573 : vector<2x192xf32>
    %575 = vector.extract_strided_slice %568 {offsets = [0, 192], sizes = [2, 64], strides = [1, 1]} : vector<2x256xf32> to vector<2x64xf32>
    %576 = math.tanh %575 : vector<2x64xf32>
    %577 = vector.extract_strided_slice %574 {offsets = [0, 64], sizes = [2, 64], strides = [1, 1]} : vector<2x192xf32> to vector<2x64xf32>
    %578 = arith.mulf %577, %551 : vector<2x64xf32>
    %579 = vector.extract_strided_slice %574 {offsets = [0, 0], sizes = [2, 64], strides = [1, 1]} : vector<2x192xf32> to vector<2x64xf32>
    %580 = arith.mulf %579, %576 : vector<2x64xf32>
    %581 = arith.addf %578, %580 : vector<2x64xf32>
    %582 = vector.extract_strided_slice %574 {offsets = [0, 128], sizes = [2, 64], strides = [1, 1]} : vector<2x192xf32> to vector<2x64xf32>
    %583 = math.tanh %581 : vector<2x64xf32>
    %584 = arith.mulf %582, %583 : vector<2x64xf32>
    %585 = arith.index_cast %c4_i32_288 : i32 to index
    %c0_296 = arith.constant 0 : index
    %c0_297 = arith.constant 0 : index
    %586 = vector.load %arg11[%585, %c0_296, %c0_297] : memref<8x2x64xf32, #tpu.memory_space<vmem>>, vector<1x2x64xf32>
    %587 = vector.shape_cast %586 : vector<1x2x64xf32> to vector<2x64xf32>
    %588 = vector.shape_cast %584 : vector<2x64xf32> to vector<1x2x64xf32>
    tpu.vector_store %arg11[%585, %c0_296, %c0_297], %588 {strides = array<i32>} : memref<8x2x64xf32, #tpu.memory_space<vmem>>, vector<1x2x64xf32>,
    %c5_i32_298 = arith.constant 5 : i32
    %589 = arith.index_cast %c5_i32_298 : i32 to index
    %c0_299 = arith.constant 0 : index
    %c0_300 = arith.constant 0 : index
    %590 = vector.load %arg10[%589, %c0_299, %c0_300] : memref<8x2x256xf32, #tpu.memory_space<vmem>>, vector<1x2x256xf32>
    %591 = vector.shape_cast %590 : vector<1x2x256xf32> to vector<2x256xf32>
    %c7_i32_301 = arith.constant 7 : i32
    %592 = arith.subi %c7_i32_301, %c5_i32_298 : i32
    %593 = arith.index_cast %592 : i32 to index
    %c0_302 = arith.constant 0 : index
    %c0_303 = arith.constant 0 : index
    %594 = vector.load %arg10[%593, %c0_302, %c0_303] : memref<8x2x256xf32, #tpu.memory_space<vmem>>, vector<1x2x256xf32>
    %595 = vector.shape_cast %594 : vector<1x2x256xf32> to vector<2x256xf32>
    %596 = arith.select %18, %591, %595 : vector<2x256xi1>, vector<2x256xf32>
    %cst_304 = arith.constant dense<0.000000e+00> : vector<2x256xf32>
    %597 = tpu.matmul %584, %377, %cst_304 {dimension_numbers = #tpu.dot_dimension_numbers<[1], [0], [0], [1], [0, 0, 1, 1], [], []>} : vector<2x64xf32>, vector<64x256xf32>, vector<2x256xf32> -> vector<2x256xf32>
    %598 = arith.addf %596, %597 : vector<2x256xf32>
    %599 = vector.extract_strided_slice %598 {offsets = [0, 0], sizes = [2, 192], strides = [1, 1]} : vector<2x256xf32> to vector<2x192xf32>
    %600 = arith.negf %599 : vector<2x192xf32>
    %601 = math.exp %600 : vector<2x192xf32>
    %cst_305 = arith.constant 1.000000e+00 : f32
    %602 = vector.broadcast %cst_305 : f32 to vector<2x192xf32>
    %603 = arith.addf %602, %601 : vector<2x192xf32>
    %604 = arith.divf %602, %603 : vector<2x192xf32>
    %605 = vector.extract_strided_slice %598 {offsets = [0, 192], sizes = [2, 64], strides = [1, 1]} : vector<2x256xf32> to vector<2x64xf32>
    %606 = math.tanh %605 : vector<2x64xf32>
    %607 = vector.extract_strided_slice %604 {offsets = [0, 64], sizes = [2, 64], strides = [1, 1]} : vector<2x192xf32> to vector<2x64xf32>
    %608 = arith.mulf %607, %581 : vector<2x64xf32>
    %609 = vector.extract_strided_slice %604 {offsets = [0, 0], sizes = [2, 64], strides = [1, 1]} : vector<2x192xf32> to vector<2x64xf32>
    %610 = arith.mulf %609, %606 : vector<2x64xf32>
    %611 = arith.addf %608, %610 : vector<2x64xf32>
    %612 = vector.extract_strided_slice %604 {offsets = [0, 128], sizes = [2, 64], strides = [1, 1]} : vector<2x192xf32> to vector<2x64xf32>
    %613 = math.tanh %611 : vector<2x64xf32>
    %614 = arith.mulf %612, %613 : vector<2x64xf32>
    %615 = arith.index_cast %c5_i32_298 : i32 to index
    %c0_306 = arith.constant 0 : index
    %c0_307 = arith.constant 0 : index
    %616 = vector.load %arg11[%615, %c0_306, %c0_307] : memref<8x2x64xf32, #tpu.memory_space<vmem>>, vector<1x2x64xf32>
    %617 = vector.shape_cast %616 : vector<1x2x64xf32> to vector<2x64xf32>
    %618 = vector.shape_cast %614 : vector<2x64xf32> to vector<1x2x64xf32>
    tpu.vector_store %arg11[%615, %c0_306, %c0_307], %618 {strides = array<i32>} : memref<8x2x64xf32, #tpu.memory_space<vmem>>, vector<1x2x64xf32>,
    %c6_i32_308 = arith.constant 6 : i32
    %619 = arith.index_cast %c6_i32_308 : i32 to index
    %c0_309 = arith.constant 0 : index
    %c0_310 = arith.constant 0 : index
    %620 = vector.load %arg10[%619, %c0_309, %c0_310] : memref<8x2x256xf32, #tpu.memory_space<vmem>>, vector<1x2x256xf32>
    %621 = vector.shape_cast %620 : vector<1x2x256xf32> to vector<2x256xf32>
    %c7_i32_311 = arith.constant 7 : i32
    %622 = arith.subi %c7_i32_311, %c6_i32_308 : i32
    %623 = arith.index_cast %622 : i32 to index
    %c0_312 = arith.constant 0 : index
    %c0_313 = arith.constant 0 : index
    %624 = vector.load %arg10[%623, %c0_312, %c0_313] : memref<8x2x256xf32, #tpu.memory_space<vmem>>, vector<1x2x256xf32>
    %625 = vector.shape_cast %624 : vector<1x2x256xf32> to vector<2x256xf32>
    %626 = arith.select %18, %621, %625 : vector<2x256xi1>, vector<2x256xf32>
    %cst_314 = arith.constant dense<0.000000e+00> : vector<2x256xf32>
    %627 = tpu.matmul %614, %377, %cst_314 {dimension_numbers = #tpu.dot_dimension_numbers<[1], [0], [0], [1], [0, 0, 1, 1], [], []>} : vector<2x64xf32>, vector<64x256xf32>, vector<2x256xf32> -> vector<2x256xf32>
    %628 = arith.addf %626, %627 : vector<2x256xf32>
    %629 = vector.extract_strided_slice %628 {offsets = [0, 0], sizes = [2, 192], strides = [1, 1]} : vector<2x256xf32> to vector<2x192xf32>
    %630 = arith.negf %629 : vector<2x192xf32>
    %631 = math.exp %630 : vector<2x192xf32>
    %cst_315 = arith.constant 1.000000e+00 : f32
    %632 = vector.broadcast %cst_315 : f32 to vector<2x192xf32>
    %633 = arith.addf %632, %631 : vector<2x192xf32>
    %634 = arith.divf %632, %633 : vector<2x192xf32>
    %635 = vector.extract_strided_slice %628 {offsets = [0, 192], sizes = [2, 64], strides = [1, 1]} : vector<2x256xf32> to vector<2x64xf32>
    %636 = math.tanh %635 : vector<2x64xf32>
    %637 = vector.extract_strided_slice %634 {offsets = [0, 64], sizes = [2, 64], strides = [1, 1]} : vector<2x192xf32> to vector<2x64xf32>
    %638 = arith.mulf %637, %611 : vector<2x64xf32>
    %639 = vector.extract_strided_slice %634 {offsets = [0, 0], sizes = [2, 64], strides = [1, 1]} : vector<2x192xf32> to vector<2x64xf32>
    %640 = arith.mulf %639, %636 : vector<2x64xf32>
    %641 = arith.addf %638, %640 : vector<2x64xf32>
    %642 = vector.extract_strided_slice %634 {offsets = [0, 128], sizes = [2, 64], strides = [1, 1]} : vector<2x192xf32> to vector<2x64xf32>
    %643 = math.tanh %641 : vector<2x64xf32>
    %644 = arith.mulf %642, %643 : vector<2x64xf32>
    %645 = arith.index_cast %c6_i32_308 : i32 to index
    %c0_316 = arith.constant 0 : index
    %c0_317 = arith.constant 0 : index
    %646 = vector.load %arg11[%645, %c0_316, %c0_317] : memref<8x2x64xf32, #tpu.memory_space<vmem>>, vector<1x2x64xf32>
    %647 = vector.shape_cast %646 : vector<1x2x64xf32> to vector<2x64xf32>
    %648 = vector.shape_cast %644 : vector<2x64xf32> to vector<1x2x64xf32>
    tpu.vector_store %arg11[%645, %c0_316, %c0_317], %648 {strides = array<i32>} : memref<8x2x64xf32, #tpu.memory_space<vmem>>, vector<1x2x64xf32>,
    %c7_i32_318 = arith.constant 7 : i32
    %649 = arith.index_cast %c7_i32_318 : i32 to index
    %c0_319 = arith.constant 0 : index
    %c0_320 = arith.constant 0 : index
    %650 = vector.load %arg10[%649, %c0_319, %c0_320] : memref<8x2x256xf32, #tpu.memory_space<vmem>>, vector<1x2x256xf32>
    %651 = vector.shape_cast %650 : vector<1x2x256xf32> to vector<2x256xf32>
    %c7_i32_321 = arith.constant 7 : i32
    %652 = arith.subi %c7_i32_321, %c7_i32_318 : i32
    %653 = arith.index_cast %652 : i32 to index
    %c0_322 = arith.constant 0 : index
    %c0_323 = arith.constant 0 : index
    %654 = vector.load %arg10[%653, %c0_322, %c0_323] : memref<8x2x256xf32, #tpu.memory_space<vmem>>, vector<1x2x256xf32>
    %655 = vector.shape_cast %654 : vector<1x2x256xf32> to vector<2x256xf32>
    %656 = arith.select %18, %651, %655 : vector<2x256xi1>, vector<2x256xf32>
    %cst_324 = arith.constant dense<0.000000e+00> : vector<2x256xf32>
    %657 = tpu.matmul %644, %377, %cst_324 {dimension_numbers = #tpu.dot_dimension_numbers<[1], [0], [0], [1], [0, 0, 1, 1], [], []>} : vector<2x64xf32>, vector<64x256xf32>, vector<2x256xf32> -> vector<2x256xf32>
    %658 = arith.addf %656, %657 : vector<2x256xf32>
    %659 = vector.extract_strided_slice %658 {offsets = [0, 0], sizes = [2, 192], strides = [1, 1]} : vector<2x256xf32> to vector<2x192xf32>
    %660 = arith.negf %659 : vector<2x192xf32>
    %661 = math.exp %660 : vector<2x192xf32>
    %cst_325 = arith.constant 1.000000e+00 : f32
    %662 = vector.broadcast %cst_325 : f32 to vector<2x192xf32>
    %663 = arith.addf %662, %661 : vector<2x192xf32>
    %664 = arith.divf %662, %663 : vector<2x192xf32>
    %665 = vector.extract_strided_slice %658 {offsets = [0, 192], sizes = [2, 64], strides = [1, 1]} : vector<2x256xf32> to vector<2x64xf32>
    %666 = math.tanh %665 : vector<2x64xf32>
    %667 = vector.extract_strided_slice %664 {offsets = [0, 64], sizes = [2, 64], strides = [1, 1]} : vector<2x192xf32> to vector<2x64xf32>
    %668 = arith.mulf %667, %641 : vector<2x64xf32>
    %669 = vector.extract_strided_slice %664 {offsets = [0, 0], sizes = [2, 64], strides = [1, 1]} : vector<2x192xf32> to vector<2x64xf32>
    %670 = arith.mulf %669, %666 : vector<2x64xf32>
    %671 = arith.addf %668, %670 : vector<2x64xf32>
    %672 = vector.extract_strided_slice %664 {offsets = [0, 128], sizes = [2, 64], strides = [1, 1]} : vector<2x192xf32> to vector<2x64xf32>
    %673 = math.tanh %671 : vector<2x64xf32>
    %674 = arith.mulf %672, %673 : vector<2x64xf32>
    %675 = arith.index_cast %c7_i32_318 : i32 to index
    %c0_326 = arith.constant 0 : index
    %c0_327 = arith.constant 0 : index
    %676 = vector.load %arg11[%675, %c0_326, %c0_327] : memref<8x2x64xf32, #tpu.memory_space<vmem>>, vector<1x2x64xf32>
    %677 = vector.shape_cast %676 : vector<1x2x64xf32> to vector<2x64xf32>
    %678 = vector.shape_cast %674 : vector<2x64xf32> to vector<1x2x64xf32>
    tpu.vector_store %arg11[%675, %c0_326, %c0_327], %678 {strides = array<i32>} : memref<8x2x64xf32, #tpu.memory_space<vmem>>, vector<1x2x64xf32>,
    %c8_i32_328 = arith.constant 8 : i32
    %c1_329 = arith.constant 1 : index
    %c0_330 = arith.constant 0 : index
    %c0_331 = arith.constant 0 : index
    %679 = vector.load %arg9[%c1_329, %c0_330, %c0_331] : memref<2x2x64xf32, #tpu.memory_space<vmem>>, vector<1x2x64xf32>
    %680 = vector.shape_cast %679 : vector<1x2x64xf32> to vector<2x64xf32>
    %681 = vector.shape_cast %674 : vector<2x64xf32> to vector<1x2x64xf32>
    tpu.vector_store %arg9[%c1_329, %c0_330, %c0_331], %681 {strides = array<i32>} : memref<2x2x64xf32, #tpu.memory_space<vmem>>, vector<1x2x64xf32>,
    %c0_332 = arith.constant 0 : index
    %c0_333 = arith.constant 0 : index
    %c0_334 = arith.constant 0 : index
    %682 = vector.load %arg11[%c0_332, %c0_333, %c0_334] : memref<8x2x64xf32, #tpu.memory_space<vmem>>, vector<1x2x64xf32>
    %683 = vector.shape_cast %682 : vector<1x2x64xf32> to vector<2x64xf32>
    %c7_335 = arith.constant 7 : index
    %c0_336 = arith.constant 0 : index
    %c0_337 = arith.constant 0 : index
    %684 = vector.load %arg11[%c7_335, %c0_336, %c0_337] : memref<8x2x64xf32, #tpu.memory_space<vmem>>, vector<1x2x64xf32>
    %685 = vector.shape_cast %684 : vector<1x2x64xf32> to vector<2x64xf32>
    %686 = arith.select %21, %683, %685 : vector<2x64xi1>, vector<2x64xf32>
    %c0_338 = arith.constant 0 : index
    %c0_339 = arith.constant 0 : index
    %c0_340 = arith.constant 0 : index
    %687 = vector.load %arg8[%c0_338, %c0_339, %c0_340] : memref<8x2x64xf32, #tpu.memory_space<vmem>>, vector<1x2x64xf32>
    %688 = vector.shape_cast %687 : vector<1x2x64xf32> to vector<2x64xf32>
    %689 = vector.shape_cast %686 : vector<2x64xf32> to vector<1x2x64xf32>
    tpu.vector_store %arg8[%c0_338, %c0_339, %c0_340], %689 {strides = array<i32>} : memref<8x2x64xf32, #tpu.memory_space<vmem>>, vector<1x2x64xf32>,
    %690 = arith.select %21, %685, %683 : vector<2x64xi1>, vector<2x64xf32>
    %c7_341 = arith.constant 7 : index
    %c0_342 = arith.constant 0 : index
    %c0_343 = arith.constant 0 : index
    %691 = vector.load %arg8[%c7_341, %c0_342, %c0_343] : memref<8x2x64xf32, #tpu.memory_space<vmem>>, vector<1x2x64xf32>
    %692 = vector.shape_cast %691 : vector<1x2x64xf32> to vector<2x64xf32>
    %693 = vector.shape_cast %690 : vector<2x64xf32> to vector<1x2x64xf32>
    tpu.vector_store %arg8[%c7_341, %c0_342, %c0_343], %693 {strides = array<i32>} : memref<8x2x64xf32, #tpu.memory_space<vmem>>, vector<1x2x64xf32>,
    %c1_344 = arith.constant 1 : index
    %c0_345 = arith.constant 0 : index
    %c0_346 = arith.constant 0 : index
    %694 = vector.load %arg11[%c1_344, %c0_345, %c0_346] : memref<8x2x64xf32, #tpu.memory_space<vmem>>, vector<1x2x64xf32>
    %695 = vector.shape_cast %694 : vector<1x2x64xf32> to vector<2x64xf32>
    %c6_347 = arith.constant 6 : index
    %c0_348 = arith.constant 0 : index
    %c0_349 = arith.constant 0 : index
    %696 = vector.load %arg11[%c6_347, %c0_348, %c0_349] : memref<8x2x64xf32, #tpu.memory_space<vmem>>, vector<1x2x64xf32>
    %697 = vector.shape_cast %696 : vector<1x2x64xf32> to vector<2x64xf32>
    %698 = arith.select %21, %695, %697 : vector<2x64xi1>, vector<2x64xf32>
    %c1_350 = arith.constant 1 : index
    %c0_351 = arith.constant 0 : index
    %c0_352 = arith.constant 0 : index
    %699 = vector.load %arg8[%c1_350, %c0_351, %c0_352] : memref<8x2x64xf32, #tpu.memory_space<vmem>>, vector<1x2x64xf32>
    %700 = vector.shape_cast %699 : vector<1x2x64xf32> to vector<2x64xf32>
    %701 = vector.shape_cast %698 : vector<2x64xf32> to vector<1x2x64xf32>
    tpu.vector_store %arg8[%c1_350, %c0_351, %c0_352], %701 {strides = array<i32>} : memref<8x2x64xf32, #tpu.memory_space<vmem>>, vector<1x2x64xf32>,
    %702 = arith.select %21, %697, %695 : vector<2x64xi1>, vector<2x64xf32>
    %c6_353 = arith.constant 6 : index
    %c0_354 = arith.constant 0 : index
    %c0_355 = arith.constant 0 : index
    %703 = vector.load %arg8[%c6_353, %c0_354, %c0_355] : memref<8x2x64xf32, #tpu.memory_space<vmem>>, vector<1x2x64xf32>
    %704 = vector.shape_cast %703 : vector<1x2x64xf32> to vector<2x64xf32>
    %705 = vector.shape_cast %702 : vector<2x64xf32> to vector<1x2x64xf32>
    tpu.vector_store %arg8[%c6_353, %c0_354, %c0_355], %705 {strides = array<i32>} : memref<8x2x64xf32, #tpu.memory_space<vmem>>, vector<1x2x64xf32>,
    %c2_356 = arith.constant 2 : index
    %c0_357 = arith.constant 0 : index
    %c0_358 = arith.constant 0 : index
    %706 = vector.load %arg11[%c2_356, %c0_357, %c0_358] : memref<8x2x64xf32, #tpu.memory_space<vmem>>, vector<1x2x64xf32>
    %707 = vector.shape_cast %706 : vector<1x2x64xf32> to vector<2x64xf32>
    %c5_359 = arith.constant 5 : index
    %c0_360 = arith.constant 0 : index
    %c0_361 = arith.constant 0 : index
    %708 = vector.load %arg11[%c5_359, %c0_360, %c0_361] : memref<8x2x64xf32, #tpu.memory_space<vmem>>, vector<1x2x64xf32>
    %709 = vector.shape_cast %708 : vector<1x2x64xf32> to vector<2x64xf32>
    %710 = arith.select %21, %707, %709 : vector<2x64xi1>, vector<2x64xf32>
    %c2_362 = arith.constant 2 : index
    %c0_363 = arith.constant 0 : index
    %c0_364 = arith.constant 0 : index
    %711 = vector.load %arg8[%c2_362, %c0_363, %c0_364] : memref<8x2x64xf32, #tpu.memory_space<vmem>>, vector<1x2x64xf32>
    %712 = vector.shape_cast %711 : vector<1x2x64xf32> to vector<2x64xf32>
    %713 = vector.shape_cast %710 : vector<2x64xf32> to vector<1x2x64xf32>
    tpu.vector_store %arg8[%c2_362, %c0_363, %c0_364], %713 {strides = array<i32>} : memref<8x2x64xf32, #tpu.memory_space<vmem>>, vector<1x2x64xf32>,
    %714 = arith.select %21, %709, %707 : vector<2x64xi1>, vector<2x64xf32>
    %c5_365 = arith.constant 5 : index
    %c0_366 = arith.constant 0 : index
    %c0_367 = arith.constant 0 : index
    %715 = vector.load %arg8[%c5_365, %c0_366, %c0_367] : memref<8x2x64xf32, #tpu.memory_space<vmem>>, vector<1x2x64xf32>
    %716 = vector.shape_cast %715 : vector<1x2x64xf32> to vector<2x64xf32>
    %717 = vector.shape_cast %714 : vector<2x64xf32> to vector<1x2x64xf32>
    tpu.vector_store %arg8[%c5_365, %c0_366, %c0_367], %717 {strides = array<i32>} : memref<8x2x64xf32, #tpu.memory_space<vmem>>, vector<1x2x64xf32>,
    %c3_368 = arith.constant 3 : index
    %c0_369 = arith.constant 0 : index
    %c0_370 = arith.constant 0 : index
    %718 = vector.load %arg11[%c3_368, %c0_369, %c0_370] : memref<8x2x64xf32, #tpu.memory_space<vmem>>, vector<1x2x64xf32>
    %719 = vector.shape_cast %718 : vector<1x2x64xf32> to vector<2x64xf32>
    %c4_371 = arith.constant 4 : index
    %c0_372 = arith.constant 0 : index
    %c0_373 = arith.constant 0 : index
    %720 = vector.load %arg11[%c4_371, %c0_372, %c0_373] : memref<8x2x64xf32, #tpu.memory_space<vmem>>, vector<1x2x64xf32>
    %721 = vector.shape_cast %720 : vector<1x2x64xf32> to vector<2x64xf32>
    %722 = arith.select %21, %719, %721 : vector<2x64xi1>, vector<2x64xf32>
    %c3_374 = arith.constant 3 : index
    %c0_375 = arith.constant 0 : index
    %c0_376 = arith.constant 0 : index
    %723 = vector.load %arg8[%c3_374, %c0_375, %c0_376] : memref<8x2x64xf32, #tpu.memory_space<vmem>>, vector<1x2x64xf32>
    %724 = vector.shape_cast %723 : vector<1x2x64xf32> to vector<2x64xf32>
    %725 = vector.shape_cast %722 : vector<2x64xf32> to vector<1x2x64xf32>
    tpu.vector_store %arg8[%c3_374, %c0_375, %c0_376], %725 {strides = array<i32>} : memref<8x2x64xf32, #tpu.memory_space<vmem>>, vector<1x2x64xf32>,
    %726 = arith.select %21, %721, %719 : vector<2x64xi1>, vector<2x64xf32>
    %c4_377 = arith.constant 4 : index
    %c0_378 = arith.constant 0 : index
    %c0_379 = arith.constant 0 : index
    %727 = vector.load %arg8[%c4_377, %c0_378, %c0_379] : memref<8x2x64xf32, #tpu.memory_space<vmem>>, vector<1x2x64xf32>
    %728 = vector.shape_cast %727 : vector<1x2x64xf32> to vector<2x64xf32>
    %729 = vector.shape_cast %726 : vector<2x64xf32> to vector<1x2x64xf32>
    tpu.vector_store %arg8[%c4_377, %c0_378, %c0_379], %729 {strides = array<i32>} : memref<8x2x64xf32, #tpu.memory_space<vmem>>, vector<1x2x64xf32>,
    return
  }
  func.func @transform_0(%arg0: i32) -> (i32, i32, i32) {
    %c0_i32 = arith.constant 0 : i32
    %c0_i32_0 = arith.constant 0 : i32
    %c0_i32_1 = arith.constant 0 : i32
    %c0_i32_2 = arith.constant 0 : i32
    return %c0_i32, %c0_i32_0, %c0_i32_1 : i32, i32, i32
  }
  func.func @transform_1(%arg0: i32) -> (i32, i32) {
    %c0_i32 = arith.constant 0 : i32
    %c0_i32_0 = arith.constant 0 : i32
    %c0_i32_1 = arith.constant 0 : i32
    return %c0_i32, %c0_i32_0 : i32, i32
  }
  func.func @transform_2(%arg0: i32) -> (i32, i32) {
    %c0_i32 = arith.constant 0 : i32
    %c0_i32_0 = arith.constant 0 : i32
    %c0_i32_1 = arith.constant 0 : i32
    return %c0_i32, %c0_i32_0 : i32, i32
  }
  func.func @transform_3(%arg0: i32) -> (i32, i32) {
    %c0_i32 = arith.constant 0 : i32
    %c0_i32_0 = arith.constant 0 : i32
    %c0_i32_1 = arith.constant 0 : i32
    return %c0_i32, %c0_i32_0 : i32, i32
  }
  func.func @transform_4(%arg0: i32) -> (i32, i32) {
    %c0_i32 = arith.constant 0 : i32
    %c0_i32_0 = arith.constant 0 : i32
    %c0_i32_1 = arith.constant 0 : i32
    return %c0_i32, %c0_i32_0 : i32, i32
  }
  func.func @transform_5(%arg0: i32) -> (i32, i32) {
    %c0_i32 = arith.constant 0 : i32
    %c0_i32_0 = arith.constant 0 : i32
    %c0_i32_1 = arith.constant 0 : i32
    return %c0_i32, %c0_i32_0 : i32, i32
  }
  func.func @transform_6(%arg0: i32) -> (i32, i32) {
    %c0_i32 = arith.constant 0 : i32
    %c0_i32_0 = arith.constant 0 : i32
    %c0_i32_1 = arith.constant 0 : i32
    return %c0_i32, %c0_i32_0 : i32, i32
  }
  func.func @transform_7(%arg0: i32) -> (i32, i32, i32) {
    %c0_i32 = arith.constant 0 : i32
    %c0_i32_0 = arith.constant 0 : i32
    %c0_i32_1 = arith.constant 0 : i32
    %c0_i32_2 = arith.constant 0 : i32
    return %c0_i32, %c0_i32_0, %c0_i32_1 : i32, i32, i32
  }
  func.func @transform_8(%arg0: i32) -> (i32, i32, i32) {
    %c0_i32 = arith.constant 0 : i32
    %c0_i32_0 = arith.constant 0 : i32
    %c0_i32_1 = arith.constant 0 : i32
    %c0_i32_2 = arith.constant 0 : i32
    return %c0_i32, %c0_i32_0, %c0_i32_1 : i32, i32, i32
  }
}

</mosaic_0001>

<bundles_post_ra>
// kernel: encoder_forward.1
= control target key start
LH: loop header
LB: loop body
LE: loop exit
PB: predicated region body
PF: predicated region fallthrough
CT: control target
= control target key end

     0   :  { %14 = vsyncpa [#allocation5], 0  ;;  %s5648_s0 = inlined_call_operand.vmem [shape: f32[8,2,32], index: 0, kind: input, shape index: {}]   ;;  %s5649_s1 = inlined_call_operand.vmem [shape: f32[32,256], index: 1, kind: input, shape index: {}]   ;;  %s5650_s2 = inlined_call_operand.vmem [shape: f32[64,256], index: 2, kind: input, shape index: {}]   ;;  %s5651_s3 = inlined_call_operand.vmem [shape: f32[1,256], index: 3, kind: input, shape index: {}]   ;;  %s5652_s4 = inlined_call_operand.vmem [shape: f32[64,256], index: 4, kind: input, shape index: {}]   ;;  %s5653_s5 = inlined_call_operand.hbm [shape: f32[64,256], index: 5, kind: input, shape index: {}]   ;;  %s5654_s6 = inlined_call_operand.hbm [shape: f32[1,256], index: 6, kind: input, shape index: {}]   ;;  %s5655_s7 = inlined_call_operand.hbm [shape: f32[8,2,64], index: 7, kind: output, shape index: {0}]   ;;  %s5656_s8 = inlined_call_operand.hbm [shape: f32[2,2,64], index: 8, kind: output, shape index: {1}]  }
   0x1   :  { %15 = vsyncpa [#allocation8], 0 }
   0x2   :  { %16 = vsyncpa [#allocation6], 0 }
   0x3   :  { %17 = vsyncpa [#allocation11], 0  ;;  %s4662_s27 = smov [#allocation4]   ;;  %s4566_s9 = scalar_lea.hbm %s5653_s5, 2048 }
   0x4   :  { %s33_s28 = sshll.u32 %s4662_s27, 4  ;;  %p4567_p0 = scmp.ne.s32.totalorder %s5653_s5, %s4566_s9  ;;  %s34_s28 = int_to_ptr.vmem [resolvable:$true] %s33_s28 }
   0x5   :  { %p4570_p1 = scmp.lt.u32.totalorder %s4566_s9, %s5653_s5 }
   0x7   :  { %p4572_p2 = pnand %p4570_p1, %p4567_p0 }
   0x9   :  { %4575 = shalt.err (!%p4572_p2)
}
   0xa   :  { %s4576_s14 = scalar_lea.vmem %s34_s28, 2048  ;;  %p4581_p4 = scmp.lt.s32.totalorder %s34_s28, %s34_s28 }
   0xb   :  { %p4577_p3 = scmp.ne.s32.totalorder %s34_s28, %s4576_s14  ;;  %p4582_p5 = scmp.lt.s32.totalorder %s4576_s14, %s4576_s14 }
   0xd   :  { %p4583_p6 = por %p4582_p5, %p4581_p4 }
   0xf   :  { %p4584_p7 = pnand %p4583_p6, %p4577_p3 }
  0x11   :  { %4587 = shalt.err (!%p4584_p7)
}
  0x12   :  { %s4663_s15 = smov 256   ;;  %s4664_s16 = smov 16  }
  0x13   :  { %39 = dma.hbm_to_vmem [thread:$0]  %s5653_s5, 2048, %s34_s28, [#allocation5], %s4663_s15, %s4663_s15, %s4664_s16  }
  0x14   :  { %s4665_s19 = smov [#allocation7]   ;;  %s4588_s23 = scalar_lea.hbm %s5654_s6, 32 }
  0x15   :  { %s46_s20 = sshll.u32 %s4665_s19, 4  ;;  %p4589_p8 = scmp.ne.s32.totalorder %s5654_s6, %s4588_s23  ;;  %s47_s20 = int_to_ptr.vmem [resolvable:$true] %s46_s20 }
  0x16   :  { %p4592_p9 = scmp.lt.u32.totalorder %s4588_s23, %s5654_s6 }
  0x18   :  { %p4594_p10 = pnand %p4592_p9, %p4589_p8 }
  0x1a   :  { %4597 = shalt.err (!%p4594_p10)
}
  0x1b   :  { %s4598_s29 = scalar_lea.vmem %s47_s20, 32  ;;  %p4603_p12 = scmp.lt.s32.totalorder %s47_s20, %s47_s20 }
  0x1c   :  { %p4599_p11 = scmp.ne.s32.totalorder %s47_s20, %s4598_s29  ;;  %p4604_p13 = scmp.lt.s32.totalorder %s4598_s29, %s4598_s29 }
  0x1e   :  { %p4605_p0 = por %p4604_p13, %p4603_p12 }
  0x20   :  { %p4606_p1 = pnand %p4605_p0, %p4599_p11 }
  0x22   :  { %4609 = shalt.err (!%p4606_p1)
}
  0x23   :  { %49 = dma.hbm_to_vmem [thread:$0]  %s5654_s6, 32, %s47_s20, [#allocation8]  }
  0x24   :  { %4654 = dma.done.wait [#allocation5], 2048  }
  0x25   :  { %4655 = vsyncadd [#allocation5], 4294965248 }
  0x26   :  { %4656 = dma.done.wait [#allocation8], 32  }
  0x27   :  { %4657 = vsyncadd [#allocation8], 4294967264  ;;  %v4666_v0 = vmov 0.0   ;;  %v87_v1 = vld [vmem:[%s5649_s1 + $0x8] sm:$0xff]  ;;  %v89_v2 = vld [vmem:[%s5649_s1 + $0x18] sm:$0xff]  ;;  %vm123_vm0 = vcmask 261120   ;;  %v56_v45 = vlaneseq }
  0x28   :  { %191 = vmatprep.mubr.f32.mxu0 %v4666_v0  ;;  %279 = vmatprep.mubr.f32.mxu1 %v4666_v0  ;;  %v86_v3 = vld [vmem:[%s5649_s1] sm:$0xff]  ;;  %v3916_v4 = vpack.c.bf16 %v89_v2, %v87_v1  ;;  %v88_v5 = vld [vmem:[%s5649_s1 + $0x10] sm:$0xff]  ;;  %v91_v6 = vld [vmem:[%s5649_s1 + $0x28] sm:$0xff]  ;;  %vm966_vm3 = vcmask 517120   ;;  %vm859_vm4 = vcmask 523264  }
  0x29   :  { %v93_v7 = vld [vmem:[%s5649_s1 + $0x38] sm:$0xff]  ;;  %v3918_v8 = vpack.c.bf16 %v88_v5, %v86_v3  ;;  %v90_v10 = vld [vmem:[%s5649_s1 + $0x20] sm:$0xff]  ;;  %v92_v11 = vld [vmem:[%s5649_s1 + $0x30] sm:$0xff]  ;;  %v4899_v46 = vshrl.u32 %v56_v45, 7 }
  0x2a   :  { %v3920_v9 = vpack.c.bf16 %v93_v7, %v91_v6  ;;  %3917 = vmatprep.subr.bf16.mxu0 %v3916_v4  ;;  %3925 = vmatprep.subr.bf16.mxu1 %v3916_v4  ;;  %v3922_v12 = vpack.c.bf16 %v92_v11, %v90_v10  ;;  %v122_v13 = vld [vmem:[%s5648_s0] sm:$0x3]  ;;  %v3801_v14 = vld [vmem:[%s5648_s0 + $0x2] sm:$0x3]  ;;  %v3804_v15 = vld [vmem:[%s5648_s0 + $0x4] sm:$0x3] }
  0x2b   :  { %3919 = vmatpush1.bf16.msra.mxu0 %v3918_v8  ;;  %3927 = vmatpush1.bf16.msra.mxu1 %v3918_v8  ;;  %v3807_v16 = vld [vmem:[%s5648_s0 + $0x6] sm:$0x3]  ;;  %v3810_v17 = vld [vmem:[%s5648_s0 + $0x8] sm:$0x3]  ;;  %v3813_v18 = vld [vmem:[%s5648_s0 + $0xa] sm:$0x3] }
  0x2c   :  { %3921 = vmatprep.subr.bf16.mxu0 %v3920_v9  ;;  %3929 = vmatprep.subr.bf16.mxu1 %v3920_v9  ;;  %v95_v19 = vld [vmem:[%s5650_s2 + $0x8] sm:$0xff]  ;;  %v97_v20 = vld [vmem:[%s5650_s2 + $0x18] sm:$0xff]  ;;  %v94_v22 = vld [vmem:[%s5650_s2] sm:$0xff]  ;;  %v114_v47 = vsub.s32 0, %v4899_v46  ;;  %v118_v49 = vsub.s32 1, %v4899_v46  ;;  %v4910_v11 = vand.u32 127, %v56_v45 }
  0x2d   :  { %v4801_v21 = vpack.c.bf16 %v97_v20, %v95_v19  ;;  %v96_v23 = vld [vmem:[%s5650_s2 + $0x10] sm:$0xff]  ;;  %v99_v24 = vld [vmem:[%s5650_s2 + $0x28] sm:$0xff]  ;;  %v101_v25 = vld [vmem:[%s5650_s2 + $0x38] sm:$0xff] }
  0x2e   :  { %v3816_v26 = vld [vmem:[%s5648_s0 + $0xc] sm:$0x3]  ;;  %v3819_v27 = vld [vmem:[%s5648_s0 + $0xe] sm:$0x3]  ;;  %v4823_v28 = vpack.c.bf16 %v96_v23, %v94_v22  ;;  %v4826_v29 = vpack.c.bf16 %v101_v25, %v99_v24  ;;  %v98_v30 = vld [vmem:[%s5650_s2 + $0x20] sm:$0xff]  ;;  %v58_v20 = vadd.s32 128, %v4910_v11 }
  0x2f   :  { %3923 = vmatpush1.bf16.msra.mxu0 %v3922_v12  ;;  %3931 = vmatpush1.bf16.msra.mxu1 %v3922_v12  ;;  %v100_v31 = vld [vmem:[%s5650_s2 + $0x30] sm:$0xff]  ;;  %v103_v32 = vld [vmem:[%s5650_s2 + $0x48] sm:$0xff]  ;;  %v105_v33 = vld [vmem:[%s5650_s2 + $0x58] sm:$0xff]  ;;  %vm85_vm5 = vcmp.lt.s32.totalorder %v4910_v11, 32 }
  0x30   :  { %3933 = vmatprep.subr.bf16.mxu0 %v3916_v4  ;;  %3941 = vmatprep.subr.bf16.mxu1 %v3916_v4  ;;  %v4844_v34 = vpack.c.bf16 %v100_v31, %v98_v30  ;;  %v4848_v35 = vpack.c.bf16 %v105_v33, %v103_v32  ;;  %v102_v36 = vld [vmem:[%s5650_s2 + $0x40] sm:$0xff]  ;;  %v104_v37 = vld [vmem:[%s5650_s2 + $0x50] sm:$0xff]  ;;  %v107_v38 = vld [vmem:[%s5650_s2 + $0x68] sm:$0xff]  ;;  %v70_v24 = vand.u32 63, %v58_v20 }
  0x31   :  { %v109_v39 = vld [vmem:[%s5650_s2 + $0x78] sm:$0xff]  ;;  %v4866_v40 = vpack.c.bf16 %v104_v37, %v102_v36  ;;  %v106_v42 = vld [vmem:[%s5650_s2 + $0x60] sm:$0xff]  ;;  %v108_v43 = vld [vmem:[%s5650_s2 + $0x70] sm:$0xff] }
  0x32   :  { %3799 = vmatmul.mubr.msk.f32.vlgmr.msra.gmra.mrb[0].mxu0 %vm123_vm0, %v122_v13  ;;  %3802 = vmatmul.mubr.msk.f32.vlgmr.msra.gmra.mrb[0].mxu1 %vm123_vm0, %v3801_v14  ;;  %v4869_v41 = vpack.c.bf16 %v109_v39, %v107_v38  ;;  %v4880_v44 = vpack.c.bf16 %v108_v43, %v106_v42  ;;  %v110_v48 = vld [vmem:[%s5651_s3] sm:$0x3]  ;;  %vm4917_vm1 = vcmp.lt.s32.totalorder %v70_v24, 32  ;;  %s4667_s3 = smov 64  }
  0x33   :  { %3935 = vmatpush1.bf16.msra.mxu0 %v3918_v8  ;;  %3943 = vmatpush1.bf16.msra.mxu1 %v3918_v8  ;;  %v115_v50 = vrot.slane %v110_v48, %v114_v47  ;;  %v119_v51 = vrot.slane %v110_v48, %v118_v49 }
  0x34   :  { %3937 = vmatprep.subr.bf16.mxu0 %v3920_v9  ;;  %3945 = vmatprep.subr.bf16.mxu1 %v3920_v9 }
  0x35   :  { %368 = vmatprep.mubr.f32.mxu0 %v4666_v0  ;;  %457 = vmatprep.mubr.f32.mxu1 %v4666_v0 }
  0x37   :  { %3939 = vmatpush1.bf16.msra.mxu0 %v3922_v12  ;;  %3947 = vmatpush1.bf16.msra.mxu1 %v3922_v12 }
  0x38   :  { %3949 = vmatprep.subr.bf16.mxu0 %v3916_v4  ;;  %3957 = vmatprep.subr.bf16.mxu1 %v3916_v4 }
  0x3a   :  { %3805 = vmatmul.mubr.msk.f32.vlgmr.msra.gmra.mrb[2].mxu0 %vm123_vm0, %v3804_v15  ;;  %3808 = vmatmul.mubr.msk.f32.vlgmr.msra.gmra.mrb[2].mxu1 %vm123_vm0, %v3807_v16 }
  0x3b   :  { %3951 = vmatpush1.bf16.msra.mxu0 %v3918_v8  ;;  %3959 = vmatpush1.bf16.msra.mxu1 %v3918_v8 }
  0x3c   :  { %3953 = vmatprep.subr.bf16.mxu0 %v3920_v9  ;;  %3961 = vmatprep.subr.bf16.mxu1 %v3920_v9 }
  0x3d   :  { %546 = vmatprep.mubr.f32.mxu0 %v4666_v0  ;;  %635 = vmatprep.mubr.f32.mxu1 %v4666_v0 }
  0x3f   :  { %3955 = vmatpush1.bf16.msra.mxu0 %v3922_v12  ;;  %3963 = vmatpush1.bf16.msra.mxu1 %v3922_v12 }
  0x40   :  { %3965 = vmatprep.subr.bf16.mxu0 %v3916_v4  ;;  %3973 = vmatprep.subr.bf16.mxu1 %v3916_v4 }
  0x42   :  { %3811 = vmatmul.mubr.msk.f32.vlgmr.msra.gmra.mrb[4].mxu0 %vm123_vm0, %v3810_v17  ;;  %3814 = vmatmul.mubr.msk.f32.vlgmr.msra.gmra.mrb[4].mxu1 %vm123_vm0, %v3813_v18 }
  0x43   :  { %3967 = vmatpush1.bf16.msra.mxu0 %v3918_v8  ;;  %3975 = vmatpush1.bf16.msra.mxu1 %v3918_v8 }
  0x44   :  { %3969 = vmatprep.subr.bf16.mxu0 %v3920_v9  ;;  %3977 = vmatprep.subr.bf16.mxu1 %v3920_v9 }
  0x45   :  { %724 = vmatprep.mubr.f32.mxu0 %v4666_v0  ;;  %813 = vmatprep.mubr.f32.mxu1 %v4666_v0 }
  0x47   :  { %3971 = vmatpush1.bf16.msra.mxu0 %v3922_v12  ;;  %3979 = vmatpush1.bf16.msra.mxu1 %v3922_v12 }
  0x48   :  { %3981 = vmatprep.subr.bf16.mxu0 %v4801_v21  ;;  %3997 = vmatprep.subr.bf16.mxu1 %v4801_v21 }
  0x4a   :  { %3817 = vmatmul.mubr.msk.f32.vlgmr.msra.gmra.mrb[6].mxu0 %vm123_vm0, %v3816_v26  ;;  %3820 = vmatmul.mubr.msk.f32.vlgmr.msra.gmra.mrb[6].mxu1 %vm123_vm0, %v3819_v27 }
  0x4b   :  { %3983 = vmatpush1.bf16.msra.mxu0 %v4823_v28  ;;  %927 = vmatprep.mubr.f32.mxu0 %v4666_v0 }
  0x4c   :  { %3985 = vmatprep.subr.bf16.mxu0 %v4826_v29  ;;  %3999 = vmatpush1.bf16.msra.mxu1 %v4823_v28 }
  0x4d   :  { %4001 = vmatprep.subr.bf16.mxu1 %v4826_v29  ;;  %1061 = vmatprep.mubr.f32.mxu1 %v4666_v0 }
  0x4f   :  { %3987 = vmatpush1.bf16.msra.mxu0 %v4844_v34 }
  0x50   :  { %3989 = vmatprep.subr.bf16.mxu0 %v4848_v35  ;;  %4003 = vmatpush1.bf16.msra.mxu1 %v4844_v34 }
  0x51   :  { %4005 = vmatprep.subr.bf16.mxu1 %v4848_v35 }
  0x53   :  { %3991 = vmatpush1.bf16.msra.mxu0 %v4866_v40 }
  0x54   :  { %3993 = vmatprep.subr.bf16.mxu0 %v4869_v41  ;;  %4007 = vmatpush1.bf16.msra.mxu1 %v4866_v40 }
  0x55   :  { %4009 = vmatprep.subr.bf16.mxu1 %v4869_v41 }
  0x57   :  { %3995 = vmatpush1.bf16.msra.mxu0 %v4880_v44 }
  0x58   :  { %4011 = vmatpush1.bf16.msra.mxu1 %v4880_v44  ;;  %4013 = vmatprep.subr.bf16.mxu0 %v4801_v21 }
  0x59   :  { %4029 = vmatprep.subr.bf16.mxu1 %v4801_v21 }
  0x5a   :  { %928 = vmatmul.mubr.f32.vlgmr.msra.gmra.mrb[8].mxu0 %v4666_v0 }
  0x5b   :  { %4015 = vmatpush1.bf16.msra.mxu0 %v4823_v28  ;;  %1195 = vmatprep.mubr.f32.mxu0 %v4666_v0 }
  0x5c   :  { %4017 = vmatprep.subr.bf16.mxu0 %v4826_v29 }
  0x5f   :  { %4019 = vmatpush1.bf16.msra.mxu0 %v4844_v34 }
  0x60   :  { %4021 = vmatprep.subr.bf16.mxu0 %v4848_v35 }
  0x63   :  { %4023 = vmatpush1.bf16.msra.mxu0 %v4866_v40 }
  0x64   :  { %4025 = vmatprep.subr.bf16.mxu0 %v4869_v41 }
  0x67   :  { %4027 = vmatpush1.bf16.msra.mxu0 %v4880_v44 }
  0x68   :  { %4045 = vmatprep.subr.bf16.mxu0 %v4801_v21 }
 0x105   :  { %v193_v52 = vpop.f32.mrb[0].mxu0  ;;  %v281_v53 = vpop.f32.mrb[0].mxu1 }
 0x106   :  { %v194_v54 = vadd.f32 %v193_v52, %v115_v50  ;;  %v195_v55 = vpop.f32.mrb[1].mxu0  ;;  %v282_v56 = vadd.f32 %v281_v53, %v115_v50  ;;  %v283_v57 = vpop.f32.mrb[1].mxu1 }
 0x107   :  { %v196_v58 = vadd.f32 %v195_v55, %v119_v51  ;;  %v284_v59 = vadd.f32 %v283_v57, %v119_v51 }
 0x109   :  { %v200_v60 = vcombine.low %v194_v54, %v196_v58  ;;  %v288_v61 = vcombine.low %v282_v56, %v284_v59 }
 0x10b   :  { %3800 = vst.sshfl [vmem:[#allocation2] sm:$0x33 pattern:$0x76325410] %v200_v60 }
 0x10c   :  { %3803 = vst.sshfl [vmem:[#allocation2 + $0x4] sm:$0x33 pattern:$0x76325410] %v288_v61 }
 0x10d   :  { %v370_v62 = vpop.f32.mrb[2].mxu0  ;;  %v459_v63 = vpop.f32.mrb[2].mxu1 }
 0x10e   :  { %v371_v1 = vadd.f32 %v370_v62, %v115_v50  ;;  %v372_v2 = vpop.f32.mrb[3].mxu0  ;;  %v460_v3 = vadd.f32 %v459_v63, %v115_v50  ;;  %v461_v4 = vpop.f32.mrb[3].mxu1 }
 0x10f   :  { %v373_v5 = vadd.f32 %v372_v2, %v119_v51  ;;  %v462_v6 = vadd.f32 %v461_v4, %v119_v51 }
 0x111   :  { %v377_v7 = vcombine.low %v371_v1, %v373_v5  ;;  %v466_v8 = vcombine.low %v460_v3, %v462_v6  ;;  %v63_v6 = vand.u32 63, %v4910_v11 }
 0x112   :  { %v4949_v54 = vld.sshfl [vmem:[#allocation2] sm:$0x33 pattern:$0x76325410] }
 0x113   :  { %3806 = vst.sshfl [vmem:[#allocation2 + $0x8] sm:$0x33 pattern:$0x76325410] %v377_v7  ;;  %v4957_v57 = vcombine.high %v4949_v54, %v4949_v54  ;;  %vm4987_vm2 = vcmp.lt.s32.totalorder %v63_v6, 32 }
 0x114   :  { %3809 = vst.sshfl [vmem:[#allocation2 + $0xc] sm:$0x33 pattern:$0x76325410] %v466_v8 }
 0x115   :  { %v548_v9 = vpop.f32.mrb[4].mxu0  ;;  %v637_v10 = vpop.f32.mrb[4].mxu1  ;;  %v4951_v55 = vld.sshfl [vmem:[#allocation2 + $0x4] sm:$0x33 pattern:$0x76325410] }
 0x116   :  { %v549_v12 = vadd.f32 %v548_v9, %v115_v50  ;;  %v638_v13 = vadd.f32 %v637_v10, %v115_v50  ;;  %v550_v14 = vpop.f32.mrb[5].mxu0  ;;  %v639_v15 = vpop.f32.mrb[5].mxu1  ;;  %v4967_v60 = vcombine.high %v4951_v55, %v4951_v55 }
 0x117   :  { %v551_v16 = vadd.f32 %v550_v14, %v119_v51  ;;  %v640_v17 = vadd.f32 %v639_v15, %v119_v51 }
 0x119   :  { %v555_v18 = vcombine.low %v549_v12, %v551_v16  ;;  %v644_v19 = vcombine.low %v638_v13, %v640_v17 }
 0x11a   :  { %v4913_v33 = vld.sshfl [vmem:[#allocation2 + $0x8] sm:$0x33 pattern:$0x76325410] }
 0x11b   :  { %3812 = vst.sshfl [vmem:[#allocation2 + $0x10] sm:$0x33 pattern:$0x76325410] %v555_v18  ;;  %v4925_v43 = vcombine.high %v4913_v33, %v4913_v33 }
 0x11c   :  { %3815 = vst.sshfl [vmem:[#allocation2 + $0x14] sm:$0x33 pattern:$0x76325410] %v644_v19 }
 0x11d   :  { %v726_v22 = vpop.f32.mrb[6].mxu0  ;;  %v815_v23 = vpop.f32.mrb[6].mxu1  ;;  %v4915_v38 = vld.sshfl [vmem:[#allocation2 + $0xc] sm:$0x33 pattern:$0x76325410] }
 0x11e   :  { %v727_v25 = vadd.f32 %v726_v22, %v115_v50  ;;  %v816_v26 = vadd.f32 %v815_v23, %v115_v50  ;;  %v728_v27 = vpop.f32.mrb[7].mxu0  ;;  %v817_v30 = vpop.f32.mrb[7].mxu1  ;;  %v4935_v50 = vcombine.high %v4915_v38, %v4915_v38 }
 0x11f   :  { %v729_v31 = vadd.f32 %v728_v27, %v119_v51  ;;  %v818_v32 = vadd.f32 %v817_v30, %v119_v51 }
 0x121   :  { %v733_v36 = vcombine.low %v727_v25, %v729_v31  ;;  %v822_v37 = vcombine.low %v816_v26, %v818_v32 }
 0x122   :  { %v4931_v48 = vld.sshfl [vmem:[#allocation2 + $0x10] sm:$0x33 pattern:$0x76325410] }
 0x123   :  { %v4921_v42 = vld.sshfl [vmem:[#allocation2 + $0x14] sm:$0x33 pattern:$0x76325410]  ;;  %v4939_v51 = vcombine.high %v4931_v48, %v4931_v48 }
 0x124   :  { %3818 = vst.sshfl [vmem:[#allocation2 + $0x18] sm:$0x33 pattern:$0x76325410] %v733_v36  ;;  %v4929_v45 = vcombine.high %v4921_v42, %v4921_v42 }
 0x125   :  { %3821 = vst.sshfl [vmem:[#allocation2 + $0x1c] sm:$0x33 pattern:$0x76325410] %v822_v37  ;;  %v1395_v53 = vsel %vm4917_vm1, %v4939_v51, %v4935_v50 }
 0x126   :  { %v1529_v52 = vsel %vm4917_vm1, %v4929_v45, %v4925_v43 }
 0x12b   :  { %v4963_v59 = vld.sshfl [vmem:[#allocation2 + $0x18] sm:$0x33 pattern:$0x76325410] }
 0x12c   :  { %v4953_v56 = vld.sshfl [vmem:[#allocation2 + $0x1c] sm:$0x33 pattern:$0x76325410]  ;;  %v4971_v61 = vcombine.high %v4963_v59, %v4963_v59 }
 0x12d   :  { %v4961_v58 = vcombine.high %v4953_v56, %v4953_v56  ;;  %v929_v62 = vpop.f32.mrb[8].mxu0  ;;  %v857_v8 = vsel %vm4987_vm2, %v4949_v54, %v4953_v56 }
 0x12e   :  { %v931_v2 = vpop.f32.mrb[9].mxu0  ;;  %v1663_v3 = vsel %vm4917_vm1, %v4971_v61, %v4967_v60  ;;  %v934_v9 = vadd.f32 %v929_v62, %v857_v8  ;;  %v993_v31 = vsel %vm4917_vm1, %v4967_v60, %v4971_v61  ;;  %v992_v62 = vsel %vm4987_vm2, %v4951_v55, %v4963_v59 }
 0x12f   :  { %v858_v63 = vsel %vm4917_vm1, %v4957_v57, %v4961_v58  ;;  %v1797_v1 = vsel %vm4917_vm1, %v4961_v58, %v4957_v57 }
 0x130   :  { %v935_v4 = vadd.f32 %v931_v2, %v858_v63  ;;  %v3824_v10 = vmul.f32 -1.442695, %v934_v9 }
 0x132   :  { %4374 = vtanh.f32 %v935_v4  ;;  %v3825_v22 = vmul.f32 -1.442695, %v935_v4 }
 0x133   :  { %4376 = vpow2.f32 %v3824_v10 }
 0x13c   :  { %v4375_v5 = vpop.eup %4374 }
 0x13d   :  { %951 = vrot.lane.b32.xlu0 %v4375_v5, %s4667_s3  ;;  %v4377_v12 = vpop.eup %4376 }
 0x13e   :  { %v942_v13 = vadd.f32 1.0, %v4377_v12 }
 0x140   :  { %4378 = vrcp.f32 %v942_v13 }
 0x14a   :  { %v4379_v14 = vpop.eup %4378 }
 0x14b   :  { %v949_v17 = vmul.f32 0.0, %v4379_v14 }
 0x1af   :  { %v952_v15 = vpop.permute.xlu0 %951 }
 0x1b0   :  { %v954_v16 = vmul.f32 %v4379_v14, %v952_v15 }
 0x1b2   :  { %956 = vrot.lane.b32.xlu0 %v954_v16, %s4667_s3 }
 0x224   :  { %v957_v18 = vpop.permute.xlu0 %956 }
 0x225   :  { %v959_v19 = vadd.f32 %v957_v18, %v949_v17 }
 0x227   :  { %4380 = vtanh.f32 %v959_v19 }
 0x228   :  { %4382 = vpow2.f32 %v3825_v22 }
 0x231   :  { %v4381_v20 = vpop.eup %4380 }
 0x232   :  { %962 = vrot.lane.b32.xlu1 %v4381_v20, %s4667_s3  ;;  %v4383_v23 = vpop.eup %4382 }
 0x233   :  { %v943_v24 = vadd.f32 1.0, %v4383_v23  ;;  %v1127_v23 = vsel %vm4917_vm1, %v4925_v43, %v4929_v45 }
 0x235   :  { %4384 = vrcp.f32 %v943_v24 }
 0x23f   :  { %v4385_v25 = vpop.eup %4384 }
 0x2a4   :  { %v963_v26 = vpop.permute.xlu1 %962 }
 0x2a5   :  { %v965_v27 = vmul.f32 %v4385_v25, %v963_v26 }
 0x2a7   :  { %967 = vst.msk [vmem:[#allocation3] sm:$0x3] %vm966_vm3, %v965_v27  ;;  %3828 = vmatmul.mubr.msk.f32.vlgmr.msra.gmra.mrb[8].mxu1 %vm859_vm4, %v965_v27  ;;  %v1126_v27 = vsel %vm4987_vm2, %v4913_v33, %v4921_v42 }
 0x2a8   :  { %4031 = vmatpush1.bf16.msra.mxu1 %v4823_v28  ;;  %1329 = vmatprep.mubr.f32.mxu1 %v4666_v0 }
 0x2a9   :  { %4033 = vmatprep.subr.bf16.mxu1 %v4826_v29 }
 0x2ac   :  { %4035 = vmatpush1.bf16.msra.mxu1 %v4844_v34 }
 0x2ad   :  { %4037 = vmatprep.subr.bf16.mxu1 %v4848_v35 }
 0x2b0   :  { %4039 = vmatpush1.bf16.msra.mxu1 %v4866_v40 }
 0x2b1   :  { %4041 = vmatprep.subr.bf16.mxu1 %v4869_v41 }
 0x2b4   :  { %4043 = vmatpush1.bf16.msra.mxu1 %v4880_v44 }
 0x2b5   :  { %4061 = vmatprep.subr.bf16.mxu1 %v4801_v21 }
 0x37a   :  { %v1063_v30 = vpop.f32.mrb[8].mxu1 }
 0x37b   :  { %v1065_v32 = vpop.f32.mrb[9].mxu1  ;;  %v1068_v63 = vadd.f32 %v1063_v30, %v992_v62 }
 0x37c   :  { %v1069_v36 = vadd.f32 %v1065_v32, %v993_v31 }
 0x37d   :  { %v3829_v2 = vmul.f32 -1.442695, %v1068_v63 }
 0x37e   :  { %4386 = vtanh.f32 %v1069_v36  ;;  %v3830_v15 = vmul.f32 -1.442695, %v1069_v36 }
 0x37f   :  { %4388 = vpow2.f32 %v3829_v2 }
 0x388   :  { %v4387_v37 = vpop.eup %4386 }
 0x389   :  { %1085 = vrot.lane.b32.xlu1 %v4387_v37, %s4667_s3  ;;  %v4389_v4 = vpop.eup %4388 }
 0x38a   :  { %v1076_v5 = vadd.f32 1.0, %v4389_v4 }
 0x38c   :  { %4390 = vrcp.f32 %v1076_v5 }
 0x396   :  { %v4391_v6 = vpop.eup %4390 }
 0x397   :  { %v1083_v10 = vmul.f32 %v4391_v6, %v959_v19 }
 0x3fb   :  { %v1086_v8 = vpop.permute.xlu1 %1085 }
 0x3fc   :  { %v1088_v9 = vmul.f32 %v4391_v6, %v1086_v8 }
 0x3fe   :  { %1090 = vrot.lane.b32.xlu0 %v1088_v9, %s4667_s3 }
 0x470   :  { %v1091_v12 = vpop.permute.xlu0 %1090 }
 0x471   :  { %v1093_v13 = vadd.f32 %v1091_v12, %v1083_v10 }
 0x473   :  { %4392 = vtanh.f32 %v1093_v13 }
 0x474   :  { %4394 = vpow2.f32 %v3830_v15 }
 0x47d   :  { %v4393_v14 = vpop.eup %4392 }
 0x47e   :  { %1096 = vrot.lane.b32.xlu1 %v4393_v14, %s4667_s3  ;;  %v4395_v16 = vpop.eup %4394 }
 0x47f   :  { %v1077_v17 = vadd.f32 1.0, %v4395_v16  ;;  %v1261_v16 = vsel %vm4917_vm1, %v4935_v50, %v4939_v51 }
 0x481   :  { %4396 = vrcp.f32 %v1077_v17 }
 0x48b   :  { %v4397_v18 = vpop.eup %4396 }
 0x4f0   :  { %v1097_v20 = vpop.permute.xlu1 %1096 }
 0x4f1   :  { %v1099_v22 = vmul.f32 %v4397_v18, %v1097_v20 }
 0x4f3   :  { %1101 = vst.msk [vmem:[#allocation3 + $0x2] sm:$0x3] %vm966_vm3, %v1099_v22  ;;  %3833 = vmatmul.mubr.msk.f32.vlgmr.msra.gmra.mrb[10].mxu0 %vm859_vm4, %v1099_v22  ;;  %v1260_v22 = vsel %vm4987_vm2, %v4915_v38, %v4931_v48 }
 0x4f4   :  { %4047 = vmatpush1.bf16.msra.mxu0 %v4823_v28  ;;  %1463 = vmatprep.mubr.f32.mxu0 %v4666_v0 }
 0x4f5   :  { %4049 = vmatprep.subr.bf16.mxu0 %v4826_v29 }
 0x4f8   :  { %4051 = vmatpush1.bf16.msra.mxu0 %v4844_v34 }
 0x4f9   :  { %4053 = vmatprep.subr.bf16.mxu0 %v4848_v35 }
 0x4fc   :  { %4055 = vmatpush1.bf16.msra.mxu0 %v4866_v40 }
 0x4fd   :  { %4057 = vmatprep.subr.bf16.mxu0 %v4869_v41 }
 0x500   :  { %4059 = vmatpush1.bf16.msra.mxu0 %v4880_v44 }
 0x501   :  { %4077 = vmatprep.subr.bf16.mxu0 %v4801_v21 }
 0x5c6   :  { %v1197_v19 = vpop.f32.mrb[10].mxu0 }
 0x5c7   :  { %v1199_v24 = vpop.f32.mrb[11].mxu0  ;;  %v1202_v30 = vadd.f32 %v1197_v19, %v1126_v27 }
 0x5c8   :  { %v1203_v25 = vadd.f32 %v1199_v24, %v1127_v23 }
 0x5c9   :  { %v3834_v31 = vmul.f32 -1.442695, %v1202_v30 }
 0x5ca   :  { %4398 = vtanh.f32 %v1203_v25  ;;  %v3835_v8 = vmul.f32 -1.442695, %v1203_v25 }
 0x5cb   :  { %4400 = vpow2.f32 %v3834_v31 }
 0x5d4   :  { %v4399_v26 = vpop.eup %4398 }
 0x5d5   :  { %1219 = vrot.lane.b32.xlu0 %v4399_v26, %s4667_s3  ;;  %v4401_v32 = vpop.eup %4400 }
 0x5d6   :  { %v1210_v36 = vadd.f32 1.0, %v4401_v32 }
 0x5d8   :  { %4402 = vrcp.f32 %v1210_v36 }
 0x5e2   :  { %v4403_v37 = vpop.eup %4402 }
 0x5e3   :  { %v1217_v2 = vmul.f32 %v4403_v37, %v1093_v13 }
 0x647   :  { %v1220_v62 = vpop.permute.xlu0 %1219 }
 0x648   :  { %v1222_v63 = vmul.f32 %v4403_v37, %v1220_v62 }
 0x64a   :  { %1224 = vrot.lane.b32.xlu1 %v1222_v63, %s4667_s3 }
 0x6bc   :  { %v1225_v4 = vpop.permute.xlu1 %1224 }
 0x6bd   :  { %v1227_v5 = vadd.f32 %v1225_v4, %v1217_v2 }
 0x6bf   :  { %4404 = vtanh.f32 %v1227_v5 }
 0x6c0   :  { %4406 = vpow2.f32 %v3835_v8 }
 0x6c9   :  { %v4405_v6 = vpop.eup %4404 }
 0x6ca   :  { %1230 = vrot.lane.b32.xlu0 %v4405_v6, %s4667_s3  ;;  %v4407_v9 = vpop.eup %4406 }
 0x6cb   :  { %v1211_v10 = vadd.f32 1.0, %v4407_v9 }
 0x6cd   :  { %4408 = vrcp.f32 %v1211_v10 }
 0x6d7   :  { %v4409_v12 = vpop.eup %4408 }
 0x73c   :  { %v1231_v14 = vpop.permute.xlu0 %1230 }
 0x73d   :  { %v1233_v15 = vmul.f32 %v4409_v12, %v1231_v14  ;;  %v1394_v12 = vsel %vm4987_vm2, %v4931_v48, %v4915_v38 }
 0x73f   :  { %1235 = vst.msk [vmem:[#allocation3 + $0x4] sm:$0x3] %vm966_vm3, %v1233_v15  ;;  %3838 = vmatmul.mubr.msk.f32.vlgmr.msra.gmra.mrb[10].mxu1 %vm859_vm4, %v1233_v15 }
 0x740   :  { %4063 = vmatpush1.bf16.msra.mxu1 %v4823_v28  ;;  %1597 = vmatprep.mubr.f32.mxu1 %v4666_v0 }
 0x741   :  { %4065 = vmatprep.subr.bf16.mxu1 %v4826_v29 }
 0x744   :  { %4067 = vmatpush1.bf16.msra.mxu1 %v4844_v34 }
 0x745   :  { %4069 = vmatprep.subr.bf16.mxu1 %v4848_v35 }
 0x748   :  { %4071 = vmatpush1.bf16.msra.mxu1 %v4866_v40 }
 0x749   :  { %4073 = vmatprep.subr.bf16.mxu1 %v4869_v41 }
 0x74c   :  { %4075 = vmatpush1.bf16.msra.mxu1 %v4880_v44 }
 0x74d   :  { %4093 = vmatprep.subr.bf16.mxu1 %v4801_v21 }
 0x812   :  { %v1331_v13 = vpop.f32.mrb[10].mxu1 }
 0x813   :  { %v1333_v17 = vpop.f32.mrb[11].mxu1  ;;  %v1336_v19 = vadd.f32 %v1331_v13, %v1260_v22 }
 0x814   :  { %v1337_v18 = vadd.f32 %v1333_v17, %v1261_v16 }
 0x815   :  { %v3839_v23 = vmul.f32 -1.442695, %v1336_v19 }
 0x816   :  { %4410 = vtanh.f32 %v1337_v18  ;;  %v3840_v37 = vmul.f32 -1.442695, %v1337_v18 }
 0x817   :  { %4412 = vpow2.f32 %v3839_v23 }
 0x820   :  { %v4411_v20 = vpop.eup %4410 }
 0x821   :  { %1353 = vrot.lane.b32.xlu1 %v4411_v20, %s4667_s3  ;;  %v4413_v21 = vpop.eup %4412 }
 0x822   :  { %v1344_v24 = vadd.f32 1.0, %v4413_v21 }
 0x824   :  { %4414 = vrcp.f32 %v1344_v24 }
 0x82e   :  { %v4415_v25 = vpop.eup %4414 }
 0x82f   :  { %v1351_v30 = vmul.f32 %v4415_v25, %v1227_v5 }
 0x893   :  { %v1354_v26 = vpop.permute.xlu1 %1353 }
 0x894   :  { %v1356_v27 = vmul.f32 %v4415_v25, %v1354_v26 }
 0x896   :  { %1358 = vrot.lane.b32.xlu0 %v1356_v27, %s4667_s3 }
 0x908   :  { %v1359_v31 = vpop.permute.xlu0 %1358 }
 0x909   :  { %v1361_v32 = vadd.f32 %v1359_v31, %v1351_v30 }
 0x90b   :  { %4416 = vtanh.f32 %v1361_v32 }
 0x90c   :  { %4418 = vpow2.f32 %v3840_v37 }
 0x915   :  { %v4417_v36 = vpop.eup %4416 }
 0x916   :  { %1364 = vrot.lane.b32.xlu1 %v4417_v36, %s4667_s3  ;;  %v4419_v62 = vpop.eup %4418 }
 0x917   :  { %v1345_v63 = vadd.f32 1.0, %v4419_v62 }
 0x919   :  { %4420 = vrcp.f32 %v1345_v63 }
 0x923   :  { %v4421_v2 = vpop.eup %4420 }
 0x988   :  { %v1365_v4 = vpop.permute.xlu1 %1364 }
 0x989   :  { %v1367_v6 = vmul.f32 %v4421_v2, %v1365_v4 }
 0x98b   :  { %1369 = vst.msk [vmem:[#allocation3 + $0x6] sm:$0x3] %vm966_vm3, %v1367_v6  ;;  %3843 = vmatmul.mubr.msk.f32.vlgmr.msra.gmra.mrb[12].mxu0 %vm859_vm4, %v1367_v6 }
 0x98c   :  { %4079 = vmatpush1.bf16.msra.mxu0 %v4823_v28  ;;  %1731 = vmatprep.mubr.f32.mxu0 %v4666_v0 }
 0x98d   :  { %4081 = vmatprep.subr.bf16.mxu0 %v4826_v29 }
 0x990   :  { %4083 = vmatpush1.bf16.msra.mxu0 %v4844_v34 }
 0x991   :  { %4085 = vmatprep.subr.bf16.mxu0 %v4848_v35 }
 0x992   :  { %v1925_v25 = vld [vmem:[#allocation3 + $0x6] sm:$0x3] }
 0x994   :  { %4087 = vmatpush1.bf16.msra.mxu0 %v4866_v40 }
 0x995   :  { %4089 = vmatprep.subr.bf16.mxu0 %v4869_v41 }
 0x998   :  { %4091 = vmatpush1.bf16.msra.mxu0 %v4880_v44 }
 0xa5e   :  { %v1465_v5 = vpop.f32.mrb[12].mxu0 }
 0xa5f   :  { %v1467_v8 = vpop.f32.mrb[13].mxu0  ;;  %v1470_v14 = vadd.f32 %v1465_v5, %v1394_v12 }
 0xa60   :  { %v1471_v9 = vadd.f32 %v1467_v8, %v1395_v53  ;;  %v1919_v8 = vld [vmem:[#allocation3 + $0x4] sm:$0x3] }
 0xa61   :  { %v3844_v15 = vmul.f32 -1.442695, %v1470_v14 }
 0xa62   :  { %4422 = vtanh.f32 %v1471_v9  ;;  %v3845_v19 = vmul.f32 -1.442695, %v1471_v9 }
 0xa63   :  { %4424 = vpow2.f32 %v3844_v15 }
 0xa6c   :  { %v4423_v10 = vpop.eup %4422 }
 0xa6d   :  { %1487 = vrot.lane.b32.xlu0 %v4423_v10, %s4667_s3  ;;  %v4425_v13 = vpop.eup %4424 }
 0xa6e   :  { %v1478_v16 = vadd.f32 1.0, %v4425_v13 }
 0xa70   :  { %4426 = vrcp.f32 %v1478_v16 }
 0xa7a   :  { %v4427_v17 = vpop.eup %4426 }
 0xa7b   :  { %v1485_v50 = vmul.f32 %v4427_v17, %v1361_v32 }
 0xadf   :  { %v1488_v18 = vpop.permute.xlu0 %1487 }
 0xae0   :  { %v1490_v20 = vmul.f32 %v4427_v17, %v1488_v18  ;;  %v1662_v17 = vsel %vm4987_vm2, %v4963_v59, %v4951_v55  ;;  %v1934_v55 = vld [vmem:[%s5652_s4 + $0x18] sm:$0xff] }
 0xae2   :  { %1492 = vrot.lane.b32.xlu1 %v1490_v20, %s4667_s3 }
 0xb54   :  { %v1493_v51 = vpop.permute.xlu1 %1492 }
 0xb55   :  { %v1495_v53 = vadd.f32 %v1493_v51, %v1485_v50 }
 0xb57   :  { %4428 = vtanh.f32 %v1495_v53 }
 0xb58   :  { %4430 = vpow2.f32 %v3845_v19 }
 0xb61   :  { %v4429_v22 = vpop.eup %4428 }
 0xb62   :  { %1498 = vrot.lane.b32.xlu0 %v4429_v22, %s4667_s3  ;;  %v4431_v38 = vpop.eup %4430 }
 0xb63   :  { %v1479_v48 = vadd.f32 1.0, %v4431_v38  ;;  %v1932_v38 = vld [vmem:[%s5652_s4 + $0x8] sm:$0xff] }
 0xb64   :  { %v5142_v59 = vpack.c.bf16 %v1934_v55, %v1932_v38 }
 0xb65   :  { %4432 = vrcp.f32 %v1479_v48  ;;  %v1931_v48 = vld [vmem:[%s5652_s4] sm:$0xff] }
 0xb66   :  { %4109 = vmatprep.subr.bf16.mxu0 %v5142_v59 }
 0xb6f   :  { %v4433_v23 = vpop.eup %4432 }
 0xbd4   :  { %v1499_v21 = vpop.permute.xlu0 %1498 }
 0xbd5   :  { %v1501_v24 = vmul.f32 %v4433_v23, %v1499_v21  ;;  %v1933_v23 = vld [vmem:[%s5652_s4 + $0x10] sm:$0xff] }
 0xbd6   :  { %v5151_v21 = vpack.c.bf16 %v1933_v23, %v1931_v48  ;;  %v1796_v23 = vsel %vm4987_vm2, %v4953_v56, %v4949_v54  ;;  %v1948_v54 = vld [vmem:[#allocation4 + $0x8] sm:$0xff]  ;;  %v1950_v56 = vld [vmem:[#allocation4 + $0x18] sm:$0xff] }
 0xbd7   :  { %1503 = vst.msk [vmem:[#allocation3 + $0x8] sm:$0x3] %vm966_vm3, %v1501_v24  ;;  %3848 = vmatmul.mubr.msk.f32.vlgmr.msra.gmra.mrb[12].mxu1 %vm859_vm4, %v1501_v24  ;;  %v1936_v24 = vld [vmem:[%s5652_s4 + $0x28] sm:$0xff] }
 0xbd8   :  { %4095 = vmatpush1.bf16.msra.mxu1 %v4823_v28  ;;  %1865 = vmatprep.mubr.f32.mxu1 %v4666_v0 }
 0xbd9   :  { %4097 = vmatprep.subr.bf16.mxu1 %v4826_v29 }
 0xbdc   :  { %4099 = vmatpush1.bf16.msra.mxu1 %v4844_v34 }
 0xbdd   :  { %4101 = vmatprep.subr.bf16.mxu1 %v4848_v35 }
 0xbde   :  { %v1926_v26 = vld [vmem:[#allocation3 + $0x8] sm:$0x3] }
 0xbdf   :  { %v1927_v27 = vsel %vm85_vm5, %v1925_v25, %v1926_v26  ;;  %v1929_v30 = vsel %vm85_vm5, %v1926_v26, %v1925_v25  ;;  %v1938_v25 = vld [vmem:[%s5652_s4 + $0x38] sm:$0xff] }
 0xbe0   :  { %1928 = vst.msk [vmem:[#allocation3 + $0x6] sm:$0x3] %vm966_vm3, %v1927_v27  ;;  %1930 = vst.msk [vmem:[#allocation3 + $0x8] sm:$0x3] %vm966_vm3, %v1929_v30  ;;  %4103 = vmatpush1.bf16.msra.mxu1 %v4866_v40  ;;  %v1528_v40 = vsel %vm4987_vm2, %v4921_v42, %v4913_v33  ;;  %v5162_v26 = vpack.c.bf16 %v1938_v25, %v1936_v24  ;;  %v1935_v27 = vld [vmem:[%s5652_s4 + $0x20] sm:$0xff]  ;;  %v1937_v30 = vld [vmem:[%s5652_s4 + $0x30] sm:$0xff] }
 0xbe1   :  { %4105 = vmatprep.subr.bf16.mxu1 %v4869_v41 }
 0xbe4   :  { %4107 = vmatpush1.bf16.msra.mxu1 %v4880_v44 }
 0xbe5   :  { %4125 = vmatprep.subr.bf16.mxu1 %v5142_v59 }
 0xcaa   :  { %v1599_v28 = vpop.f32.mrb[12].mxu1 }
 0xcab   :  { %v1601_v29 = vpop.f32.mrb[13].mxu1  ;;  %v1604_v41 = vadd.f32 %v1599_v28, %v1528_v40  ;;  %v5170_v28 = vpack.c.bf16 %v1937_v30, %v1935_v27  ;;  %v1939_v40 = vld [vmem:[%s5652_s4 + $0x40] sm:$0xff] }
 0xcac   :  { %v1605_v34 = vadd.f32 %v1601_v29, %v1529_v52  ;;  %v1940_v29 = vld [vmem:[%s5652_s4 + $0x48] sm:$0xff] }
 0xcad   :  { %v3849_v31 = vmul.f32 -1.442695, %v1604_v41  ;;  %v1941_v41 = vld [vmem:[%s5652_s4 + $0x50] sm:$0xff] }
 0xcae   :  { %4434 = vtanh.f32 %v1605_v34  ;;  %v3850_v2 = vmul.f32 -1.442695, %v1605_v34  ;;  %v1942_v34 = vld [vmem:[%s5652_s4 + $0x58] sm:$0xff] }
 0xcaf   :  { %4436 = vpow2.f32 %v3849_v31  ;;  %v5188_v31 = vpack.c.bf16 %v1941_v41, %v1939_v40 }
 0xcb8   :  { %v4435_v35 = vpop.eup %4434 }
 0xcb9   :  { %1621 = vrot.lane.b32.xlu1 %v4435_v35, %s4667_s3  ;;  %v4437_v44 = vpop.eup %4436  ;;  %v5180_v35 = vpack.c.bf16 %v1942_v34, %v1940_v29 }
 0xcba   :  { %v1612_v32 = vadd.f32 1.0, %v4437_v44  ;;  %v1944_v44 = vld [vmem:[%s5652_s4 + $0x68] sm:$0xff] }
 0xcbc   :  { %4438 = vrcp.f32 %v1612_v32  ;;  %v1946_v32 = vld [vmem:[%s5652_s4 + $0x78] sm:$0xff] }
 0xcc6   :  { %v4439_v36 = vpop.eup %4438 }
 0xcc7   :  { %v1619_v43 = vmul.f32 %v4439_v36, %v1495_v53 }
 0xd2b   :  { %v1622_v37 = vpop.permute.xlu1 %1621 }
 0xd2c   :  { %v1624_v62 = vmul.f32 %v4439_v36, %v1622_v37  ;;  %v5197_v37 = vpack.c.bf16 %v1946_v32, %v1944_v44 }
 0xd2e   :  { %1626 = vrot.lane.b32.xlu0 %v1624_v62, %s4667_s3  ;;  %v1943_v62 = vld [vmem:[%s5652_s4 + $0x60] sm:$0xff] }
 0xda0   :  { %v1627_v45 = vpop.permute.xlu0 %1626 }
 0xda1   :  { %v1629_v52 = vadd.f32 %v1627_v45, %v1619_v43  ;;  %v1945_v43 = vld [vmem:[%s5652_s4 + $0x70] sm:$0xff]  ;;  %s4668_s4 = smov [#allocation10]  }
 0xda2   :  { %v5207_v45 = vpack.c.bf16 %v1945_v43, %v1943_v62  ;;  %v5285_v62 = vpack.c.bf16 %v1950_v56, %v1948_v54  ;;  %s3782_s26 = sshll.u32 %s4668_s4, 4  ;;  %s3783_s26 = int_to_ptr.vmem [resolvable:$true] %s3782_s26 }
 0xda3   :  { %4440 = vtanh.f32 %v1629_v52  ;;  %s4610_s1 = scalar_lea.vmem %s3783_s26, 64  ;;  %p4615_p3 = scmp.lt.s32.totalorder %s3783_s26, %s3783_s26 }
 0xda4   :  { %4442 = vpow2.f32 %v3850_v2  ;;  %p4611_p2 = scmp.ne.s32.totalorder %s3783_s26, %s4610_s1  ;;  %p4616_p4 = scmp.lt.s32.totalorder %s4610_s1, %s4610_s1 }
 0xda6   :  { %p4617_p5 = por %p4616_p4, %p4615_p3 }
 0xda8   :  { %p4618_p6 = pnand %p4617_p5, %p4611_p2 }
 0xdad   :  { %v4441_v63 = vpop.eup %4440 }
 0xdae   :  { %1632 = vrot.lane.b32.xlu1 %v4441_v63, %s4667_s3  ;;  %v4443_v33 = vpop.eup %4442 }
 0xdaf   :  { %v1613_v42 = vadd.f32 1.0, %v4443_v33 }
 0xdb1   :  { %4444 = vrcp.f32 %v1613_v42 }
 0xdbb   :  { %v4445_v4 = vpop.eup %4444 }
 0xe20   :  { %v1633_v6 = vpop.permute.xlu1 %1632 }
 0xe21   :  { %v1635_v5 = vmul.f32 %v4445_v4, %v1633_v6  ;;  %v1913_v6 = vld [vmem:[#allocation3 + $0x2] sm:$0x3] }
 0xe23   :  { %1637 = vst.msk [vmem:[#allocation3 + $0xa] sm:$0x3] %vm966_vm3, %v1635_v5  ;;  %3853 = vmatmul.mubr.msk.f32.vlgmr.msra.gmra.mrb[14].mxu0 %vm859_vm4, %v1635_v5 }
 0xe24   :  { %2043 = vmatprep.mubr.f32.mxu0 %v4666_v0  ;;  %4111 = vmatpush1.bf16.msra.mxu0 %v5151_v21 }
 0xe25   :  { %4113 = vmatprep.subr.bf16.mxu0 %v5162_v26 }
 0xe28   :  { %4115 = vmatpush1.bf16.msra.mxu0 %v5170_v28 }
 0xe29   :  { %4117 = vmatprep.subr.bf16.mxu0 %v5180_v35 }
 0xe2a   :  { %v1920_v9 = vld [vmem:[#allocation3 + $0xa] sm:$0x3] }
 0xe2b   :  { %v1921_v10 = vsel %vm85_vm5, %v1919_v8, %v1920_v9  ;;  %v1923_v12 = vsel %vm85_vm5, %v1920_v9, %v1919_v8 }
 0xe2c   :  { %1922 = vst.msk [vmem:[#allocation3 + $0x4] sm:$0x3] %vm966_vm3, %v1921_v10  ;;  %1924 = vst.msk [vmem:[#allocation3 + $0xa] sm:$0x3] %vm966_vm3, %v1923_v12  ;;  %4119 = vmatpush1.bf16.msra.mxu0 %v5188_v31  ;;  %v2236_v12 = vld [vmem:[#allocation3 + $0x6] sm:$0x3] }
 0xe2d   :  { %4121 = vmatprep.subr.bf16.mxu0 %v5197_v37 }
 0xe30   :  { %4123 = vmatpush1.bf16.msra.mxu0 %v5207_v45 }
 0xe31   :  { %4141 = vmatprep.subr.bf16.mxu0 %v5142_v59 }
 0xef6   :  { %v1733_v14 = vpop.f32.mrb[14].mxu0 }
 0xef7   :  { %v1735_v15 = vpop.f32.mrb[15].mxu0  ;;  %v1738_v18 = vadd.f32 %v1733_v14, %v1662_v17  ;;  %v2410_v14 = vld [vmem:[#allocation3 + $0xa] sm:$0x3]  ;;  %v1963_v17 = vld [vmem:[#allocation7] sm:$0x3] }
 0xef8   :  { %v1739_v13 = vadd.f32 %v1735_v15, %v1663_v3 }
 0xef9   :  { %v3854_v20 = vmul.f32 -1.442695, %v1738_v18 }
 0xefa   :  { %4446 = vtanh.f32 %v1739_v13 }
 0xefb   :  { %4448 = vpow2.f32 %v3854_v20  ;;  %v5265_v20 = vrot.slane %v1963_v17, %v114_v47 }
 0xf04   :  { %v4447_v16 = vpop.eup %4446 }
 0xf05   :  { %1755 = vrot.lane.b32.xlu0 %v4447_v16, %s4667_s3  ;;  %v4449_v50 = vpop.eup %4448 }
 0xf06   :  { %v1746_v51 = vadd.f32 1.0, %v4449_v50  ;;  %v5270_v50 = vrot.slane %v1963_v17, %v118_v49  ;;  %v1951_v17 = vld [vmem:[#allocation4 + $0x20] sm:$0xff] }
 0xf08   :  { %4450 = vrcp.f32 %v1746_v51 }
 0xf12   :  { %v4451_v53 = vpop.eup %4450 }
 0xf13   :  { %v1753_v60 = vmul.f32 %v4451_v53, %v1629_v52  ;;  %v3855_v52 = vmul.f32 -1.442695, %v1739_v13 }
 0xf77   :  { %v1756_v22 = vpop.permute.xlu0 %1755 }
 0xf78   :  { %v1758_v19 = vmul.f32 %v4451_v53, %v1756_v22 }
 0xf7a   :  { %1760 = vrot.lane.b32.xlu1 %v1758_v19, %s4667_s3 }
 0xfec   :  { %v1761_v61 = vpop.permute.xlu1 %1760 }
 0xfed   :  { %v5134_v3 = vadd.f32 %v1761_v61, %v1753_v60 }
 0xfef   :  { %4452 = vtanh.f32 %v5134_v3 }
 0xff0   :  { %4454 = vpow2.f32 %v3855_v52 }
 0xff9   :  { %v4453_v36 = vpop.eup %4452 }
 0xffa   :  { %1766 = vrot.lane.b32.xlu0 %v4453_v36, %s4667_s3  ;;  %v4455_v63 = vpop.eup %4454 }
 0xffb   :  { %v1747_v2 = vadd.f32 1.0, %v4455_v63 }
 0xffd   :  { %4456 = vrcp.f32 %v1747_v2 }
0x1007   :  { %v4457_v33 = vpop.eup %4456 }
0x106c   :  { %v1767_v42 = vpop.permute.xlu0 %1766 }
0x106d   :  { %v1769_v4 = vmul.f32 %v4457_v33, %v1767_v42  ;;  %v1907_v42 = vld [vmem:[#allocation3] sm:$0x3] }
0x106f   :  { %1771 = vst.msk [vmem:[#allocation3 + $0xc] sm:$0x3] %vm966_vm3, %v1769_v4  ;;  %3858 = vmatmul.mubr.msk.f32.vlgmr.msra.gmra.mrb[14].mxu1 %vm859_vm4, %v1769_v4 }
0x1070   :  { %4127 = vmatpush1.bf16.msra.mxu1 %v5151_v21  ;;  %2130 = vmatprep.mubr.f32.mxu1 %v4666_v0 }
0x1071   :  { %4129 = vmatprep.subr.bf16.mxu1 %v5162_v26 }
0x1074   :  { %4131 = vmatpush1.bf16.msra.mxu1 %v5170_v28 }
0x1075   :  { %4133 = vmatprep.subr.bf16.mxu1 %v5180_v35 }
0x1076   :  { %v1914_v5 = vld [vmem:[#allocation3 + $0xc] sm:$0x3] }
0x1077   :  { %v1915_v8 = vsel %vm85_vm5, %v1913_v6, %v1914_v5  ;;  %v1917_v9 = vsel %vm85_vm5, %v1914_v5, %v1913_v6 }
0x1078   :  { %1916 = vst.msk [vmem:[#allocation3 + $0x2] sm:$0x3] %vm966_vm3, %v1915_v8  ;;  %1918 = vst.msk [vmem:[#allocation3 + $0xc] sm:$0x3] %vm966_vm3, %v1917_v9  ;;  %4135 = vmatpush1.bf16.msra.mxu1 %v5188_v31  ;;  %v1947_v8 = vld [vmem:[#allocation4] sm:$0xff]  ;;  %v1949_v9 = vld [vmem:[#allocation4 + $0x10] sm:$0xff] }
0x1079   :  { %4137 = vmatprep.subr.bf16.mxu1 %v5197_v37 }
0x107c   :  { %4139 = vmatpush1.bf16.msra.mxu1 %v5207_v45 }
0x107d   :  { %4157 = vmatprep.subr.bf16.mxu1 %v5142_v59 }
0x107f   :  { %v2062_v10 = vld [vmem:[#allocation3 + $0x2] sm:$0x3] }
0x1080   :  { %3863 = vmatmul.mubr.msk.f32.vlgmr.msra.gmra.mrb[16].mxu1 %vm859_vm4, %v2062_v10  ;;  %v1952_v10 = vld [vmem:[#allocation4 + $0x28] sm:$0xff] }
0x1081   :  { %4159 = vmatpush1.bf16.msra.mxu1 %v5151_v21  ;;  %2304 = vmatprep.mubr.f32.mxu1 %v4666_v0 }
0x1082   :  { %4161 = vmatprep.subr.bf16.mxu1 %v5162_v26 }
0x1085   :  { %4163 = vmatpush1.bf16.msra.mxu1 %v5170_v28 }
0x1086   :  { %4165 = vmatprep.subr.bf16.mxu1 %v5180_v35 }
0x1089   :  { %4167 = vmatpush1.bf16.msra.mxu1 %v5188_v31 }
0x108a   :  { %4169 = vmatprep.subr.bf16.mxu1 %v5197_v37 }
0x108d   :  { %4171 = vmatpush1.bf16.msra.mxu1 %v5207_v45 }
0x108e   :  { %4189 = vmatprep.subr.bf16.mxu1 %v5142_v59 }
0x1090   :  { %3867 = vmatmul.mubr.msk.f32.vlgmr.msra.gmra.mrb[18].mxu1 %vm859_vm4, %v2236_v12  ;;  %v1954_v12 = vld [vmem:[#allocation4 + $0x38] sm:$0xff] }
0x1091   :  { %4191 = vmatpush1.bf16.msra.mxu1 %v5151_v21  ;;  %2478 = vmatprep.mubr.f32.mxu1 %v4666_v0 }
0x1092   :  { %4193 = vmatprep.subr.bf16.mxu1 %v5162_v26 }
0x1095   :  { %4195 = vmatpush1.bf16.msra.mxu1 %v5170_v28 }
0x1096   :  { %4197 = vmatprep.subr.bf16.mxu1 %v5180_v35 }
0x1099   :  { %4199 = vmatpush1.bf16.msra.mxu1 %v5188_v31 }
0x109a   :  { %4201 = vmatprep.subr.bf16.mxu1 %v5197_v37 }
0x109d   :  { %4203 = vmatpush1.bf16.msra.mxu1 %v5207_v45 }
0x109e   :  { %4221 = vmatprep.subr.bf16.mxu1 %v5142_v59 }
0x10a0   :  { %3871 = vmatmul.mubr.msk.f32.vlgmr.msra.gmra.mrb[20].mxu1 %vm859_vm4, %v2410_v14 }
0x10a1   :  { %4223 = vmatpush1.bf16.msra.mxu1 %v5151_v21  ;;  %2652 = vmatprep.mubr.f32.mxu1 %v4666_v0 }
0x10a2   :  { %4225 = vmatprep.subr.bf16.mxu1 %v5162_v26 }
0x10a5   :  { %4227 = vmatpush1.bf16.msra.mxu1 %v5170_v28 }
0x10a6   :  { %4229 = vmatprep.subr.bf16.mxu1 %v5180_v35 }
0x10a9   :  { %4231 = vmatpush1.bf16.msra.mxu1 %v5188_v31 }
0x10aa   :  { %4233 = vmatprep.subr.bf16.mxu1 %v5197_v37 }
0x10ad   :  { %4235 = vmatpush1.bf16.msra.mxu1 %v5207_v45 }
0x10ae   :  { %4253 = vmatprep.subr.bf16.mxu1 %v5285_v62 }
0x1142   :  { %v1867_v15 = vpop.f32.mrb[14].mxu1 }
0x1143   :  { %v1869_v13 = vpop.f32.mrb[15].mxu1  ;;  %v1872_v24 = vadd.f32 %v1867_v15, %v1796_v23 }
0x1144   :  { %v1873_v16 = vadd.f32 %v1869_v13, %v1797_v1  ;;  %v5298_v13 = vpack.c.bf16 %v1949_v9, %v1947_v8 }
0x1145   :  { %v3859_v25 = vmul.f32 -1.442695, %v1872_v24 }
0x1146   :  { %4458 = vtanh.f32 %v1873_v16  ;;  %v3860_v43 = vmul.f32 -1.442695, %v1873_v16  ;;  %v5302_v16 = vpack.c.bf16 %v1954_v12, %v1952_v10 }
0x1147   :  { %4460 = vpow2.f32 %v3859_v25 }
0x1150   :  { %v4459_v18 = vpop.eup %4458 }
0x1151   :  { %1889 = vrot.lane.b32.xlu1 %v4459_v18, %s4667_s3  ;;  %v4461_v27 = vpop.eup %4460  ;;  %v1953_v18 = vld [vmem:[#allocation4 + $0x30] sm:$0xff] }
0x1152   :  { %v1880_v30 = vadd.f32 1.0, %v4461_v27 }
0x1153   :  { %v2132_v51 = vpop.f32.mrb[16].mxu1 }
0x1154   :  { %v2133_v53 = vadd.f32 %v2132_v51, %v5265_v20  ;;  %v2134_v22 = vpop.f32.mrb[17].mxu1  ;;  %4462 = vrcp.f32 %v1880_v30  ;;  %v1956_v51 = vld [vmem:[#allocation4 + $0x48] sm:$0xff] }
0x1155   :  { %v2135_v57 = vadd.f32 %v2134_v22, %v5270_v50  ;;  %v5308_v22 = vpack.c.bf16 %v1953_v18, %v1951_v17 }
0x1157   :  { %v2139_v58 = vcombine.low %v2133_v53, %v2135_v57  ;;  %v1958_v53 = vld [vmem:[#allocation4 + $0x58] sm:$0xff] }
0x1158   :  { %v5311_v57 = vpack.c.bf16 %v1958_v53, %v1956_v51 }
0x1159   :  { %3864 = vst.sshfl [vmem:[#allocation2 + $0x4] sm:$0x33 pattern:$0x76325410] %v2139_v58  ;;  %v1955_v58 = vld [vmem:[#allocation4 + $0x40] sm:$0xff] }
0x115e   :  { %v4463_v29 = vpop.eup %4462 }
0x115f   :  { %v1887_v41 = vmul.f32 %v4463_v29, %v5134_v3 }
0x1163   :  { %v2306_v1 = vpop.f32.mrb[18].mxu1 }
0x1164   :  { %v2307_v19 = vadd.f32 %v2306_v1, %v5265_v20  ;;  %v2308_v60 = vpop.f32.mrb[19].mxu1  ;;  %v1957_v1 = vld [vmem:[#allocation4 + $0x50] sm:$0xff] }
0x1165   :  { %v2309_v47 = vadd.f32 %v2308_v60, %v5270_v50  ;;  %v1962_v60 = vld [vmem:[#allocation4 + $0x78] sm:$0xff] }
0x1167   :  { %v2313_v61 = vcombine.low %v2307_v19, %v2309_v47  ;;  %v1960_v19 = vld [vmem:[#allocation4 + $0x68] sm:$0xff]  ;;  %v5316_v47 = vpack.c.bf16 %v1957_v1, %v1955_v58  ;;  %v5436_v1 = vld.sshfl [vmem:[#allocation2 + $0x4] sm:$0x33 pattern:$0x76325410] }
0x1169   :  { %3868 = vst.sshfl [vmem:[#allocation2 + $0xc] sm:$0x33 pattern:$0x76325410] %v2313_v61  ;;  %v5319_v61 = vpack.c.bf16 %v1962_v60, %v1960_v19  ;;  %v5442_v60 = vcombine.high %v5436_v1, %v5436_v1 }
0x1170   :  { %v5418_v9 = vld.sshfl [vmem:[#allocation2 + $0xc] sm:$0x33 pattern:$0x76325410] }
0x1171   :  { %v5424_v12 = vcombine.high %v5418_v9, %v5418_v9 }
0x1173   :  { %v2480_v38 = vpop.f32.mrb[20].mxu1 }
0x1174   :  { %v2481_v46 = vadd.f32 %v2480_v38, %v5265_v20  ;;  %v2482_v49 = vpop.f32.mrb[21].mxu1  ;;  %v1959_v38 = vld [vmem:[#allocation4 + $0x60] sm:$0xff] }
0x1175   :  { %v2483_v55 = vadd.f32 %v2482_v49, %v5270_v50 }
0x1177   :  { %v2487_v48 = vcombine.low %v2481_v46, %v2483_v55  ;;  %v1961_v46 = vld [vmem:[#allocation4 + $0x70] sm:$0xff] }
0x1178   :  { %v5324_v49 = vpack.c.bf16 %v1961_v46, %v1959_v38  ;;  %v2149_v55 = vld [vmem:[#allocation3 + $0x4] sm:$0x3] }
0x1179   :  { %3872 = vst.sshfl [vmem:[#allocation2 + $0x14] sm:$0x33 pattern:$0x76325410] %v2487_v48  ;;  %v2323_v48 = vld [vmem:[#allocation3 + $0x8] sm:$0x3] }
0x11c3   :  { %v1890_v34 = vpop.permute.xlu1 %1889 }
0x11c4   :  { %v1892_v40 = vmul.f32 %v4463_v29, %v1890_v34 }
0x11c6   :  { %1894 = vrot.lane.b32.xlu0 %v1892_v40, %s4667_s3 }
0x1238   :  { %v1895_v44 = vpop.permute.xlu0 %1894 }
0x1239   :  { %v1897_v32 = vadd.f32 %v1895_v44, %v1887_v41 }
0x123b   :  { %4464 = vtanh.f32 %v1897_v32 }
0x123c   :  { %4466 = vpow2.f32 %v3860_v43 }
0x1245   :  { %v4465_v36 = vpop.eup %4464 }
0x1246   :  { %1900 = vrot.lane.b32.xlu1 %v4465_v36, %s4667_s3  ;;  %v4467_v52 = vpop.eup %4466 }
0x1247   :  { %v1881_v63 = vadd.f32 1.0, %v4467_v52  ;;  %v5400_v52 = vld.sshfl [vmem:[#allocation2 + $0x14] sm:$0x33 pattern:$0x76325410] }
0x1249   :  { %4468 = vrcp.f32 %v1881_v63 }
0x1253   :  { %v4469_v2 = vpop.eup %4468 }
0x12b8   :  { %v1901_v33 = vpop.permute.xlu1 %1900 }
0x12b9   :  { %v1903_v3 = vmul.f32 %v4469_v2, %v1901_v33  ;;  %v5410_v33 = vcombine.high %v5400_v52, %v5400_v52 }
0x12bb   :  { %1905 = vst.msk [vmem:[#allocation3 + $0xe] sm:$0x3] %vm966_vm3, %v1903_v3  ;;  %1906 = vst.msk [vmem:[#allocation10] sm:$0x3] %vm966_vm3, %v1903_v3 }
0x12c2   :  { %v1908_v4 = vld [vmem:[#allocation3 + $0xe] sm:$0x3] }
0x12c3   :  { %v1909_v6 = vsel %vm85_vm5, %v1907_v42, %v1908_v4  ;;  %v1911_v5 = vsel %vm85_vm5, %v1908_v4, %v1907_v42 }
0x12c4   :  { %1910 = vst.msk [vmem:[#allocation3] sm:$0x3] %vm966_vm3, %v1909_v6  ;;  %1912 = vst.msk [vmem:[#allocation3 + $0xe] sm:$0x3] %vm966_vm3, %v1911_v5 }
0x12cb   :  { %v1975_v14 = vld [vmem:[#allocation3] sm:$0x3]  ;;  %v2584_v15 = vld [vmem:[#allocation3 + $0xe] sm:$0x3] }
0x12cc   :  { %3861 = vmatmul.mubr.msk.f32.vlgmr.msra.gmra.mrb[16].mxu0 %vm859_vm4, %v1975_v14  ;;  %3875 = vmatmul.mubr.msk.f32.vlgmr.msra.gmra.mrb[22].mxu1 %vm859_vm4, %v2584_v15 }
0x12cd   :  { %4143 = vmatpush1.bf16.msra.mxu0 %v5151_v21  ;;  %2217 = vmatprep.mubr.f32.mxu0 %v4666_v0 }
0x12ce   :  { %4145 = vmatprep.subr.bf16.mxu0 %v5162_v26  ;;  %4255 = vmatpush1.bf16.msra.mxu1 %v5298_v13 }
0x12cf   :  { %4257 = vmatprep.subr.bf16.mxu1 %v5302_v16  ;;  %2894 = vmatprep.mubr.f32.mxu1 %v4666_v0 }
0x12d1   :  { %4147 = vmatpush1.bf16.msra.mxu0 %v5170_v28 }
0x12d2   :  { %4149 = vmatprep.subr.bf16.mxu0 %v5180_v35  ;;  %4259 = vmatpush1.bf16.msra.mxu1 %v5308_v22 }
0x12d3   :  { %4261 = vmatprep.subr.bf16.mxu1 %v5311_v57 }
0x12d5   :  { %4151 = vmatpush1.bf16.msra.mxu0 %v5188_v31 }
0x12d6   :  { %4153 = vmatprep.subr.bf16.mxu0 %v5197_v37  ;;  %4263 = vmatpush1.bf16.msra.mxu1 %v5316_v47 }
0x12d7   :  { %4265 = vmatprep.subr.bf16.mxu1 %v5319_v61 }
0x12d9   :  { %4155 = vmatpush1.bf16.msra.mxu0 %v5207_v45 }
0x12da   :  { %4173 = vmatprep.subr.bf16.mxu0 %v5142_v59  ;;  %4267 = vmatpush1.bf16.msra.mxu1 %v5324_v49 }
0x12db   :  { %4285 = vmatprep.subr.bf16.mxu1 %v5285_v62 }
0x12dc   :  { %3865 = vmatmul.mubr.msk.f32.vlgmr.msra.gmra.mrb[18].mxu0 %vm859_vm4, %v2149_v55 }
0x12dd   :  { %4175 = vmatpush1.bf16.msra.mxu0 %v5151_v21  ;;  %2391 = vmatprep.mubr.f32.mxu0 %v4666_v0 }
0x12de   :  { %4177 = vmatprep.subr.bf16.mxu0 %v5162_v26 }
0x12e1   :  { %4179 = vmatpush1.bf16.msra.mxu0 %v5170_v28 }
0x12e2   :  { %4181 = vmatprep.subr.bf16.mxu0 %v5180_v35 }
0x12e5   :  { %4183 = vmatpush1.bf16.msra.mxu0 %v5188_v31 }
0x12e6   :  { %4185 = vmatprep.subr.bf16.mxu0 %v5197_v37 }
0x12e9   :  { %4187 = vmatpush1.bf16.msra.mxu0 %v5207_v45 }
0x12ea   :  { %4205 = vmatprep.subr.bf16.mxu0 %v5142_v59  ;;  %v2497_v59 = vld [vmem:[#allocation3 + $0xc] sm:$0x3] }
0x12ec   :  { %3869 = vmatmul.mubr.msk.f32.vlgmr.msra.gmra.mrb[20].mxu0 %vm859_vm4, %v2323_v48 }
0x12ed   :  { %4207 = vmatpush1.bf16.msra.mxu0 %v5151_v21  ;;  %2565 = vmatprep.mubr.f32.mxu0 %v4666_v0 }
0x12ee   :  { %4209 = vmatprep.subr.bf16.mxu0 %v5162_v26 }
0x12f1   :  { %4211 = vmatpush1.bf16.msra.mxu0 %v5170_v28 }
0x12f2   :  { %4213 = vmatprep.subr.bf16.mxu0 %v5180_v35 }
0x12f5   :  { %4215 = vmatpush1.bf16.msra.mxu0 %v5188_v31 }
0x12f6   :  { %4217 = vmatprep.subr.bf16.mxu0 %v5197_v37 }
0x12f9   :  { %4219 = vmatpush1.bf16.msra.mxu0 %v5207_v45 }
0x12fa   :  { %4237 = vmatprep.subr.bf16.mxu0 %v5285_v62 }
0x12fc   :  { %3873 = vmatmul.mubr.msk.f32.vlgmr.msra.gmra.mrb[22].mxu0 %vm859_vm4, %v2497_v59 }
0x12fd   :  { %4239 = vmatpush1.bf16.msra.mxu0 %v5298_v13  ;;  %2761 = vmatprep.mubr.f32.mxu0 %v4666_v0 }
0x12fe   :  { %4241 = vmatprep.subr.bf16.mxu0 %v5302_v16 }
0x1301   :  { %4243 = vmatpush1.bf16.msra.mxu0 %v5308_v22 }
0x1302   :  { %4245 = vmatprep.subr.bf16.mxu0 %v5311_v57 }
0x1305   :  { %4247 = vmatpush1.bf16.msra.mxu0 %v5316_v47 }
0x1306   :  { %4249 = vmatprep.subr.bf16.mxu0 %v5319_v61 }
0x1309   :  { %4251 = vmatpush1.bf16.msra.mxu0 %v5324_v49 }
0x130a   :  { %4269 = vmatprep.subr.bf16.mxu0 %v5285_v62 }
0x130c   :  { %2762 = vmatmul.mubr.f32.vlgmr.msra.gmra.mrb[24].mxu0 %v4666_v0 }
0x130d   :  { %4271 = vmatpush1.bf16.msra.mxu0 %v5298_v13  ;;  %3027 = vmatprep.mubr.f32.mxu0 %v4666_v0 }
0x130e   :  { %4273 = vmatprep.subr.bf16.mxu0 %v5302_v16 }
0x1311   :  { %4275 = vmatpush1.bf16.msra.mxu0 %v5308_v22 }
0x1312   :  { %4277 = vmatprep.subr.bf16.mxu0 %v5311_v57 }
0x1315   :  { %4279 = vmatpush1.bf16.msra.mxu0 %v5316_v47 }
0x1316   :  { %4281 = vmatprep.subr.bf16.mxu0 %v5319_v61 }
0x1319   :  { %4283 = vmatpush1.bf16.msra.mxu0 %v5324_v49 }
0x131a   :  { %4301 = vmatprep.subr.bf16.mxu0 %v5285_v62 }
0x139f   :  { %v2045_v21 = vpop.f32.mrb[16].mxu0  ;;  %v2654_v26 = vpop.f32.mrb[22].mxu1 }
0x13a0   :  { %v2046_v28 = vadd.f32 %v2045_v21, %v5265_v20  ;;  %v2655_v35 = vadd.f32 %v2654_v26, %v5265_v20  ;;  %v2047_v31 = vpop.f32.mrb[17].mxu0  ;;  %v2656_v37 = vpop.f32.mrb[23].mxu1 }
0x13a1   :  { %v2048_v45 = vadd.f32 %v2047_v31, %v5270_v50  ;;  %v2657_v23 = vadd.f32 %v2656_v37, %v5270_v50 }
0x13a3   :  { %v2052_v24 = vcombine.low %v2046_v28, %v2048_v45  ;;  %v2661_v25 = vcombine.low %v2655_v35, %v2657_v23 }
0x13a5   :  { %3862 = vst.sshfl [vmem:[#allocation2] sm:$0x33 pattern:$0x76325410] %v2052_v24 }
0x13a6   :  { %3876 = vst.sshfl [vmem:[#allocation2 + $0x1c] sm:$0x33 pattern:$0x76325410] %v2661_v25 }
0x13ac   :  { %v5374_v27 = vld.sshfl [vmem:[#allocation2] sm:$0x33 pattern:$0x76325410] }
0x13ad   :  { %v5376_v30 = vld.sshfl [vmem:[#allocation2 + $0x1c] sm:$0x33 pattern:$0x76325410]  ;;  %v5380_v29 = vcombine.high %v5374_v27, %v5374_v27 }
0x13ae   :  { %v5384_v34 = vcombine.high %v5376_v30, %v5376_v30  ;;  %v2695_v40 = vsel %vm4987_vm2, %v5374_v27, %v5376_v30  ;;  %v3623_v41 = vsel %vm4987_vm2, %v5376_v30, %v5374_v27 }
0x13af   :  { %v2219_v44 = vpop.f32.mrb[18].mxu0 }
0x13b0   :  { %v2220_v32 = vadd.f32 %v2219_v44, %v5265_v20  ;;  %v2221_v36 = vpop.f32.mrb[19].mxu0  ;;  %v3624_v54 = vsel %vm4917_vm1, %v5384_v34, %v5380_v29  ;;  %v2696_v55 = vsel %vm4917_vm1, %v5380_v29, %v5384_v34 }
0x13b1   :  { %v2222_v56 = vadd.f32 %v2221_v36, %v5270_v50 }
0x13b3   :  { %v2226_v43 = vcombine.low %v2220_v32, %v2222_v56 }
0x13b5   :  { %3866 = vst.sshfl [vmem:[#allocation2 + $0x8] sm:$0x33 pattern:$0x76325410] %v2226_v43 }
0x13bc   :  { %v5402_v63 = vld.sshfl [vmem:[#allocation2 + $0x8] sm:$0x33 pattern:$0x76325410] }
0x13bd   :  { %v5406_v2 = vcombine.high %v5402_v63, %v5402_v63 }
0x13bf   :  { %v2393_v3 = vpop.f32.mrb[20].mxu0  ;;  %v3358_v42 = vsel %vm4917_vm1, %v5410_v33, %v5406_v2 }
0x13c0   :  { %v2394_v4 = vadd.f32 %v2393_v3, %v5265_v20  ;;  %v2395_v6 = vpop.f32.mrb[21].mxu0 }
0x13c1   :  { %v2396_v5 = vadd.f32 %v2395_v6, %v5270_v50 }
0x13c3   :  { %v2400_v8 = vcombine.low %v2394_v4, %v2396_v5 }
0x13c5   :  { %3870 = vst.sshfl [vmem:[#allocation2 + $0x10] sm:$0x33 pattern:$0x76325410] %v2400_v8 }
0x13cc   :  { %v5420_v10 = vld.sshfl [vmem:[#allocation2 + $0x10] sm:$0x33 pattern:$0x76325410] }
0x13cd   :  { %v5428_v14 = vcombine.high %v5420_v10, %v5420_v10 }
0x13cf   :  { %v2567_v15 = vpop.f32.mrb[22].mxu0  ;;  %v3225_v17 = vsel %vm4917_vm1, %v5428_v14, %v5424_v12 }
0x13d0   :  { %v2568_v18 = vadd.f32 %v2567_v15, %v5265_v20  ;;  %v2569_v51 = vpop.f32.mrb[23].mxu0 }
0x13d1   :  { %v2570_v53 = vadd.f32 %v2569_v51, %v5270_v50 }
0x13d3   :  { %v2574_v58 = vcombine.low %v2568_v18, %v2570_v53 }
0x13d5   :  { %3874 = vst.sshfl [vmem:[#allocation2 + $0x18] sm:$0x33 pattern:$0x76325410] %v2574_v58 }
0x13dc   :  { %v5438_v19 = vld.sshfl [vmem:[#allocation2 + $0x18] sm:$0x33 pattern:$0x76325410] }
0x13dd   :  { %v5446_v38 = vcombine.high %v5438_v19, %v5438_v19  ;;  %v2825_v4 = vsel %vm4987_vm2, %v5436_v1, %v5438_v19 }
0x13df   :  { %v2763_v46 = vpop.f32.mrb[24].mxu0  ;;  %v3491_v20 = vsel %vm4917_vm1, %v5446_v38, %v5442_v60  ;;  %v2826_v8 = vsel %vm4917_vm1, %v5442_v60, %v5446_v38 }
0x13e0   :  { %v2768_v50 = vadd.f32 %v2763_v46, %v2695_v40  ;;  %v2765_v48 = vpop.f32.mrb[25].mxu0 }
0x13e1   :  { %v2769_v59 = vadd.f32 %v2765_v48, %v2696_v55 }
0x13e2   :  { %v3879_v26 = vmul.f32 -1.442695, %v2768_v50 }
0x13e3   :  { %4470 = vtanh.f32 %v2769_v59  ;;  %v3880_v44 = vmul.f32 -1.442695, %v2769_v59 }
0x13e4   :  { %4472 = vpow2.f32 %v3879_v26 }
0x13ed   :  { %v4471_v21 = vpop.eup %4470 }
0x13ee   :  { %2785 = vrot.lane.b32.xlu0 %v4471_v21, %s4667_s3  ;;  %v4473_v28 = vpop.eup %4472 }
0x13ef   :  { %v2776_v35 = vadd.f32 1.0, %v4473_v28 }
0x13f1   :  { %4474 = vrcp.f32 %v2776_v35 }
0x13fb   :  { %v4475_v31 = vpop.eup %4474 }
0x13fc   :  { %v2783_v23 = vmul.f32 0.0, %v4475_v31 }
0x1460   :  { %v2786_v37 = vpop.permute.xlu0 %2785 }
0x1461   :  { %v2788_v45 = vmul.f32 %v4475_v31, %v2786_v37 }
0x1463   :  { %2790 = vrot.lane.b32.xlu1 %v2788_v45, %s4667_s3 }
0x14d5   :  { %v2791_v24 = vpop.permute.xlu1 %2790 }
0x14d6   :  { %v2793_v25 = vadd.f32 %v2791_v24, %v2783_v23 }
0x14d8   :  { %4476 = vtanh.f32 %v2793_v25 }
0x14d9   :  { %4478 = vpow2.f32 %v3880_v44 }
0x14e2   :  { %v4477_v40 = vpop.eup %4476 }
0x14e3   :  { %2796 = vrot.lane.b32.xlu0 %v4477_v40, %s4667_s3  ;;  %v4479_v32 = vpop.eup %4478 }
0x14e4   :  { %v2777_v36 = vadd.f32 1.0, %v4479_v32  ;;  %v2959_v32 = vsel %vm4917_vm1, %v5406_v2, %v5410_v33 }
0x14e6   :  { %4480 = vrcp.f32 %v2777_v36 }
0x14f0   :  { %v4481_v56 = vpop.eup %4480 }
0x1555   :  { %v2797_v43 = vpop.permute.xlu0 %2796 }
0x1556   :  { %v2799_v3 = vmul.f32 %v4481_v56, %v2797_v43 }
0x1558   :  { %2800 = vst.msk [vmem:[#allocation3] sm:$0x3] %vm966_vm3, %v2799_v3  ;;  %3883 = vmatmul.mubr.msk.f32.vlgmr.msra.gmra.mrb[24].mxu1 %vm859_vm4, %v2799_v3 }
0x1559   :  { %4287 = vmatpush1.bf16.msra.mxu1 %v5298_v13  ;;  %3160 = vmatprep.mubr.f32.mxu1 %v4666_v0 }
0x155a   :  { %4289 = vmatprep.subr.bf16.mxu1 %v5302_v16 }
0x155d   :  { %4291 = vmatpush1.bf16.msra.mxu1 %v5308_v22 }
0x155e   :  { %4293 = vmatprep.subr.bf16.mxu1 %v5311_v57 }
0x1561   :  { %4295 = vmatpush1.bf16.msra.mxu1 %v5316_v47 }
0x1562   :  { %4297 = vmatprep.subr.bf16.mxu1 %v5319_v61 }
0x1565   :  { %4299 = vmatpush1.bf16.msra.mxu1 %v5324_v49 }
0x1566   :  { %4317 = vmatprep.subr.bf16.mxu1 %v5285_v62 }
0x162b   :  { %v2896_v6 = vpop.f32.mrb[24].mxu1 }
0x162c   :  { %v2901_v5 = vadd.f32 %v2896_v6, %v2825_v4  ;;  %v2898_v15 = vpop.f32.mrb[25].mxu1 }
0x162d   :  { %v2902_v18 = vadd.f32 %v2898_v15, %v2826_v8 }
0x162e   :  { %v3884_v53 = vmul.f32 -1.442695, %v2901_v5 }
0x162f   :  { %4482 = vtanh.f32 %v2902_v18  ;;  %v3885_v35 = vmul.f32 -1.442695, %v2902_v18 }
0x1630   :  { %4484 = vpow2.f32 %v3884_v53 }
0x1639   :  { %v4483_v51 = vpop.eup %4482 }
0x163a   :  { %2918 = vrot.lane.b32.xlu1 %v4483_v51, %s4667_s3  ;;  %v4485_v58 = vpop.eup %4484 }
0x163b   :  { %v2909_v46 = vadd.f32 1.0, %v4485_v58 }
0x163d   :  { %4486 = vrcp.f32 %v2909_v46 }
0x1647   :  { %v4487_v50 = vpop.eup %4486 }
0x1648   :  { %v2916_v59 = vmul.f32 %v4487_v50, %v2793_v25  ;;  %v2958_v25 = vsel %vm4987_vm2, %v5402_v63, %v5400_v52 }
0x16ac   :  { %v2919_v55 = vpop.permute.xlu1 %2918 }
0x16ad   :  { %v2921_v48 = vmul.f32 %v4487_v50, %v2919_v55 }
0x16af   :  { %2923 = vrot.lane.b32.xlu0 %v2921_v48, %s4667_s3 }
0x1721   :  { %v2924_v21 = vpop.permute.xlu0 %2923 }
0x1722   :  { %v2926_v26 = vadd.f32 %v2924_v21, %v2916_v59 }
0x1724   :  { %4488 = vtanh.f32 %v2926_v26 }
0x1725   :  { %4490 = vpow2.f32 %v3885_v35 }
0x172e   :  { %v4489_v28 = vpop.eup %4488 }
0x172f   :  { %2929 = vrot.lane.b32.xlu1 %v4489_v28, %s4667_s3  ;;  %v4491_v31 = vpop.eup %4490 }
0x1730   :  { %v2910_v37 = vadd.f32 1.0, %v4491_v31  ;;  %v3092_v31 = vsel %vm4917_vm1, %v5424_v12, %v5428_v14 }
0x1732   :  { %4492 = vrcp.f32 %v2910_v37 }
0x173c   :  { %v4493_v45 = vpop.eup %4492 }
0x17a1   :  { %v2930_v23 = vpop.permute.xlu1 %2929 }
0x17a2   :  { %v2932_v24 = vmul.f32 %v4493_v45, %v2930_v23 }
0x17a4   :  { %2933 = vst.msk [vmem:[#allocation3 + $0x2] sm:$0x3] %vm966_vm3, %v2932_v24  ;;  %3888 = vmatmul.mubr.msk.f32.vlgmr.msra.gmra.mrb[26].mxu0 %vm859_vm4, %v2932_v24 }
0x17a5   :  { %4303 = vmatpush1.bf16.msra.mxu0 %v5298_v13  ;;  %3293 = vmatprep.mubr.f32.mxu0 %v4666_v0 }
0x17a6   :  { %4305 = vmatprep.subr.bf16.mxu0 %v5302_v16 }
0x17a9   :  { %4307 = vmatpush1.bf16.msra.mxu0 %v5308_v22 }
0x17aa   :  { %4309 = vmatprep.subr.bf16.mxu0 %v5311_v57 }
0x17ad   :  { %4311 = vmatpush1.bf16.msra.mxu0 %v5316_v47 }
0x17ae   :  { %4313 = vmatprep.subr.bf16.mxu0 %v5319_v61 }
0x17b1   :  { %4315 = vmatpush1.bf16.msra.mxu0 %v5324_v49 }
0x17b2   :  { %4333 = vmatprep.subr.bf16.mxu0 %v5285_v62 }
0x1877   :  { %v3029_v40 = vpop.f32.mrb[26].mxu0 }
0x1878   :  { %v3034_v44 = vadd.f32 %v3029_v40, %v2958_v25  ;;  %v3031_v36 = vpop.f32.mrb[27].mxu0 }
0x1879   :  { %v3035_v56 = vadd.f32 %v3031_v36, %v2959_v32 }
0x187a   :  { %v3889_v3 = vmul.f32 -1.442695, %v3034_v44 }
0x187b   :  { %4494 = vtanh.f32 %v3035_v56  ;;  %v3890_v46 = vmul.f32 -1.442695, %v3035_v56 }
0x187c   :  { %4496 = vpow2.f32 %v3889_v3 }
0x1885   :  { %v4495_v43 = vpop.eup %4494 }
0x1886   :  { %3051 = vrot.lane.b32.xlu0 %v4495_v43, %s4667_s3  ;;  %v4497_v4 = vpop.eup %4496 }
0x1887   :  { %v3042_v6 = vadd.f32 1.0, %v4497_v4 }
0x1889   :  { %4498 = vrcp.f32 %v3042_v6 }
0x1893   :  { %v4499_v5 = vpop.eup %4498 }
0x1894   :  { %v3049_v18 = vmul.f32 %v4499_v5, %v2926_v26  ;;  %v3091_v26 = vsel %vm4987_vm2, %v5418_v9, %v5420_v10 }
0x18f8   :  { %v3052_v8 = vpop.permute.xlu0 %3051 }
0x18f9   :  { %v3054_v15 = vmul.f32 %v4499_v5, %v3052_v8 }
0x18fb   :  { %3056 = vrot.lane.b32.xlu1 %v3054_v15, %s4667_s3 }
0x196d   :  { %v3057_v51 = vpop.permute.xlu1 %3056 }
0x196e   :  { %v3059_v53 = vadd.f32 %v3057_v51, %v3049_v18  ;;  %v3224_v51 = vsel %vm4987_vm2, %v5420_v10, %v5418_v9 }
0x1970   :  { %4500 = vtanh.f32 %v3059_v53 }
0x1971   :  { %4502 = vpow2.f32 %v3890_v46 }
0x197a   :  { %v4501_v58 = vpop.eup %4500 }
0x197b   :  { %3062 = vrot.lane.b32.xlu0 %v4501_v58, %s4667_s3  ;;  %v4503_v50 = vpop.eup %4502 }
0x197c   :  { %v3043_v55 = vadd.f32 1.0, %v4503_v50 }
0x197e   :  { %4504 = vrcp.f32 %v3043_v55 }
0x1988   :  { %v4505_v48 = vpop.eup %4504 }
0x19ed   :  { %v3063_v59 = vpop.permute.xlu0 %3062 }
0x19ee   :  { %v3065_v21 = vmul.f32 %v4505_v48, %v3063_v59 }
0x19f0   :  { %3066 = vst.msk [vmem:[#allocation3 + $0x4] sm:$0x3] %vm966_vm3, %v3065_v21  ;;  %3893 = vmatmul.mubr.msk.f32.vlgmr.msra.gmra.mrb[26].mxu1 %vm859_vm4, %v3065_v21 }
0x19f1   :  { %4319 = vmatpush1.bf16.msra.mxu1 %v5298_v13  ;;  %3426 = vmatprep.mubr.f32.mxu1 %v4666_v0 }
0x19f2   :  { %4321 = vmatprep.subr.bf16.mxu1 %v5302_v16 }
0x19f5   :  { %4323 = vmatpush1.bf16.msra.mxu1 %v5308_v22 }
0x19f6   :  { %4325 = vmatprep.subr.bf16.mxu1 %v5311_v57 }
0x19f9   :  { %4327 = vmatpush1.bf16.msra.mxu1 %v5316_v47 }
0x19fa   :  { %4329 = vmatprep.subr.bf16.mxu1 %v5319_v61 }
0x19fd   :  { %4331 = vmatpush1.bf16.msra.mxu1 %v5324_v49 }
0x19fe   :  { %4349 = vmatprep.subr.bf16.mxu1 %v5285_v62 }
0x1ac3   :  { %v3162_v28 = vpop.f32.mrb[26].mxu1 }
0x1ac4   :  { %v3167_v35 = vadd.f32 %v3162_v28, %v3091_v26  ;;  %v3164_v37 = vpop.f32.mrb[27].mxu1 }
0x1ac5   :  { %v3168_v45 = vadd.f32 %v3164_v37, %v3092_v31 }
0x1ac6   :  { %v3894_v24 = vmul.f32 -1.442695, %v3167_v35 }
0x1ac7   :  { %4506 = vtanh.f32 %v3168_v45  ;;  %v3895_v4 = vmul.f32 -1.442695, %v3168_v45 }
0x1ac8   :  { %4508 = vpow2.f32 %v3894_v24 }
0x1ad1   :  { %v4507_v23 = vpop.eup %4506 }
0x1ad2   :  { %3184 = vrot.lane.b32.xlu1 %v4507_v23, %s4667_s3  ;;  %v4509_v62 = vpop.eup %4508 }
0x1ad3   :  { %v3175_v25 = vadd.f32 1.0, %v4509_v62 }
0x1ad5   :  { %4510 = vrcp.f32 %v3175_v25 }
0x1adf   :  { %v4511_v40 = vpop.eup %4510 }
0x1ae0   :  { %v3182_v36 = vmul.f32 %v4511_v40, %v3059_v53 }
0x1b44   :  { %v3185_v44 = vpop.permute.xlu1 %3184 }
0x1b45   :  { %v3187_v32 = vmul.f32 %v4511_v40, %v3185_v44 }
0x1b47   :  { %3189 = vrot.lane.b32.xlu0 %v3187_v32, %s4667_s3 }
0x1bb9   :  { %v3190_v56 = vpop.permute.xlu0 %3189 }
0x1bba   :  { %v3192_v43 = vadd.f32 %v3190_v56, %v3182_v36 }
0x1bbc   :  { %4512 = vtanh.f32 %v3192_v43 }
0x1bbd   :  { %4514 = vpow2.f32 %v3895_v4 }
0x1bc6   :  { %v4513_v3 = vpop.eup %4512 }
0x1bc7   :  { %3195 = vrot.lane.b32.xlu1 %v4513_v3, %s4667_s3  ;;  %v4515_v6 = vpop.eup %4514 }
0x1bc8   :  { %v3176_v5 = vadd.f32 1.0, %v4515_v6 }
0x1bca   :  { %4516 = vrcp.f32 %v3176_v5 }
0x1bd4   :  { %v4517_v8 = vpop.eup %4516 }
0x1c39   :  { %v3196_v15 = vpop.permute.xlu1 %3195 }
0x1c3a   :  { %v3198_v18 = vmul.f32 %v4517_v8, %v3196_v15  ;;  %v3749_v15 = vld [vmem:[#allocation3 + $0x4] sm:$0x3] }
0x1c3c   :  { %3199 = vst.msk [vmem:[#allocation3 + $0x6] sm:$0x3] %vm966_vm3, %v3198_v18  ;;  %3898 = vmatmul.mubr.msk.f32.vlgmr.msra.gmra.mrb[28].mxu0 %vm859_vm4, %v3198_v18 }
0x1c3d   :  { %4335 = vmatpush1.bf16.msra.mxu0 %v5298_v13  ;;  %3559 = vmatprep.mubr.f32.mxu0 %v4666_v0 }
0x1c3e   :  { %4337 = vmatprep.subr.bf16.mxu0 %v5302_v16 }
0x1c41   :  { %4339 = vmatpush1.bf16.msra.mxu0 %v5308_v22 }
0x1c42   :  { %4341 = vmatprep.subr.bf16.mxu0 %v5311_v57 }
0x1c43   :  { %v3757_v62 = vld [vmem:[#allocation3 + $0x6] sm:$0x3] }
0x1c45   :  { %4343 = vmatpush1.bf16.msra.mxu0 %v5316_v47 }
0x1c46   :  { %4345 = vmatprep.subr.bf16.mxu0 %v5319_v61 }
0x1c49   :  { %4347 = vmatpush1.bf16.msra.mxu0 %v5324_v49 }
0x1d0f   :  { %v3295_v53 = vpop.f32.mrb[28].mxu0 }
0x1d10   :  { %v3300_v58 = vadd.f32 %v3295_v53, %v3224_v51  ;;  %v3297_v46 = vpop.f32.mrb[29].mxu0 }
0x1d11   :  { %v3301_v50 = vadd.f32 %v3297_v46, %v3225_v17 }
0x1d12   :  { %v3899_v48 = vmul.f32 -1.442695, %v3300_v58  ;;  %v3490_v58 = vsel %vm4987_vm2, %v5438_v19, %v5436_v1 }
0x1d13   :  { %4518 = vtanh.f32 %v3301_v50  ;;  %v3900_v14 = vmul.f32 -1.442695, %v3301_v50 }
0x1d14   :  { %4520 = vpow2.f32 %v3899_v48 }
0x1d1d   :  { %v4519_v55 = vpop.eup %4518 }
0x1d1e   :  { %3317 = vrot.lane.b32.xlu0 %v4519_v55, %s4667_s3  ;;  %v4521_v59 = vpop.eup %4520 }
0x1d1f   :  { %v3308_v21 = vadd.f32 1.0, %v4521_v59 }
0x1d21   :  { %4522 = vrcp.f32 %v3308_v21 }
0x1d2b   :  { %v4523_v26 = vpop.eup %4522 }
0x1d2c   :  { %v3315_v28 = vmul.f32 %v4523_v26, %v3192_v43 }
0x1d90   :  { %v3318_v9 = vpop.permute.xlu0 %3317 }
0x1d91   :  { %v3320_v10 = vmul.f32 %v4523_v26, %v3318_v9 }
0x1d93   :  { %3322 = vrot.lane.b32.xlu1 %v3320_v10, %s4667_s3 }
0x1e05   :  { %v3323_v35 = vpop.permute.xlu1 %3322 }
0x1e06   :  { %v3325_v31 = vadd.f32 %v3323_v35, %v3315_v28 }
0x1e08   :  { %4524 = vtanh.f32 %v3325_v31 }
0x1e09   :  { %4526 = vpow2.f32 %v3900_v14 }
0x1e12   :  { %v4525_v12 = vpop.eup %4524 }
0x1e13   :  { %3328 = vrot.lane.b32.xlu0 %v4525_v12, %s4667_s3  ;;  %v4527_v17 = vpop.eup %4526 }
0x1e14   :  { %v3309_v37 = vadd.f32 1.0, %v4527_v17 }
0x1e16   :  { %4528 = vrcp.f32 %v3309_v37 }
0x1e20   :  { %v4529_v45 = vpop.eup %4528 }
0x1e85   :  { %v3329_v23 = vpop.permute.xlu0 %3328 }
0x1e86   :  { %v3331_v24 = vmul.f32 %v4529_v45, %v3329_v23  ;;  %v3741_v45 = vld [vmem:[#allocation3 + $0x2] sm:$0x3] }
0x1e88   :  { %3332 = vst.msk [vmem:[#allocation3 + $0x8] sm:$0x3] %vm966_vm3, %v3331_v24  ;;  %3903 = vmatmul.mubr.msk.f32.vlgmr.msra.gmra.mrb[28].mxu1 %vm859_vm4, %v3331_v24 }
0x1e89   :  { %4351 = vmatpush1.bf16.msra.mxu1 %v5298_v13  ;;  %3692 = vmatprep.mubr.f32.mxu1 %v4666_v0  ;;  %v3357_v0 = vsel %vm4987_vm2, %v5400_v52, %v5402_v63 }
0x1e8a   :  { %4353 = vmatprep.subr.bf16.mxu1 %v5302_v16 }
0x1e8d   :  { %4355 = vmatpush1.bf16.msra.mxu1 %v5308_v22 }
0x1e8e   :  { %4357 = vmatprep.subr.bf16.mxu1 %v5311_v57 }
0x1e8f   :  { %v3758_v25 = vld [vmem:[#allocation3 + $0x8] sm:$0x3] }
0x1e90   :  { %v3759_v40 = vsel %vm85_vm5, %v3757_v62, %v3758_v25  ;;  %v3762_v44 = vsel %vm85_vm5, %v3758_v25, %v3757_v62 }
0x1e91   :  { %4359 = vmatpush1.bf16.msra.mxu1 %v5316_v47  ;;  %3761 = vst.msk [vmem:[#allocation9 + $0x6] sm:$0x3] %vm966_vm3, %v3759_v40  ;;  %3764 = vst.msk [vmem:[#allocation9 + $0x8] sm:$0x3] %vm966_vm3, %v3762_v44 }
0x1e92   :  { %4361 = vmatprep.subr.bf16.mxu1 %v5319_v61 }
0x1e95   :  { %4363 = vmatpush1.bf16.msra.mxu1 %v5324_v49 }
0x1f5b   :  { %v3428_v13 = vpop.f32.mrb[28].mxu1 }
0x1f5c   :  { %v3433_v16 = vadd.f32 %v3428_v13, %v3357_v0  ;;  %v3430_v22 = vpop.f32.mrb[29].mxu1 }
0x1f5d   :  { %v3434_v57 = vadd.f32 %v3430_v22, %v3358_v42 }
0x1f5e   :  { %v3904_v61 = vmul.f32 -1.442695, %v3433_v16 }
0x1f5f   :  { %4530 = vtanh.f32 %v3434_v57  ;;  %v3905_v33 = vmul.f32 -1.442695, %v3434_v57 }
0x1f60   :  { %4532 = vpow2.f32 %v3904_v61 }
0x1f69   :  { %v4531_v47 = vpop.eup %4530 }
0x1f6a   :  { %3450 = vrot.lane.b32.xlu1 %v4531_v47, %s4667_s3  ;;  %v4533_v49 = vpop.eup %4532 }
0x1f6b   :  { %v3441_v32 = vadd.f32 1.0, %v4533_v49 }
0x1f6d   :  { %4534 = vrcp.f32 %v3441_v32 }
0x1f77   :  { %v4535_v36 = vpop.eup %4534 }
0x1f78   :  { %v3448_v56 = vmul.f32 %v4535_v36, %v3325_v31 }
0x1fdc   :  { %v3451_v52 = vpop.permute.xlu1 %3450 }
0x1fdd   :  { %v3453_v63 = vmul.f32 %v4535_v36, %v3451_v52 }
0x1fdf   :  { %3455 = vrot.lane.b32.xlu0 %v3453_v63, %s4667_s3 }
0x2051   :  { %v3456_v43 = vpop.permute.xlu0 %3455 }
0x2052   :  { %v3458_v3 = vadd.f32 %v3456_v43, %v3448_v56 }
0x2054   :  { %4536 = vtanh.f32 %v3458_v3 }
0x2055   :  { %4538 = vpow2.f32 %v3905_v33 }
0x205e   :  { %v4537_v2 = vpop.eup %4536 }
0x205f   :  { %3461 = vrot.lane.b32.xlu1 %v4537_v2, %s4667_s3  ;;  %v4539_v42 = vpop.eup %4538 }
0x2060   :  { %v3442_v4 = vadd.f32 1.0, %v4539_v42 }
0x2062   :  { %4540 = vrcp.f32 %v3442_v4 }
0x206c   :  { %v4541_v6 = vpop.eup %4540 }
0x20d1   :  { %v3462_v5 = vpop.permute.xlu1 %3461 }
0x20d2   :  { %v3464_v8 = vmul.f32 %v4541_v6, %v3462_v5 }
0x20d4   :  { %3465 = vst.msk [vmem:[#allocation3 + $0xa] sm:$0x3] %vm966_vm3, %v3464_v8  ;;  %3908 = vmatmul.mubr.msk.f32.vlgmr.msra.gmra.mrb[30].mxu0 %vm859_vm4, %v3464_v8 }
0x20db   :  { %v3750_v18 = vld [vmem:[#allocation3 + $0xa] sm:$0x3] }
0x20dc   :  { %v3751_v51 = vsel %vm85_vm5, %v3749_v15, %v3750_v18  ;;  %v3754_v53 = vsel %vm85_vm5, %v3750_v18, %v3749_v15 }
0x20dd   :  { %3753 = vst.msk [vmem:[#allocation9 + $0x4] sm:$0x3] %vm966_vm3, %v3751_v51  ;;  %3756 = vst.msk [vmem:[#allocation9 + $0xa] sm:$0x3] %vm966_vm3, %v3754_v53 }
0x21a7   :  { %v3561_v46 = vpop.f32.mrb[30].mxu0 }
0x21a8   :  { %v3566_v50 = vadd.f32 %v3561_v46, %v3490_v58  ;;  %v3563_v55 = vpop.f32.mrb[31].mxu0 }
0x21a9   :  { %v3567_v48 = vadd.f32 %v3563_v55, %v3491_v20 }
0x21aa   :  { %v3909_v21 = vmul.f32 -1.442695, %v3566_v50 }
0x21ab   :  { %4542 = vtanh.f32 %v3567_v48  ;;  %v3910_v38 = vmul.f32 -1.442695, %v3567_v48 }
0x21ac   :  { %4544 = vpow2.f32 %v3909_v21 }
0x21b5   :  { %v4543_v59 = vpop.eup %4542 }
0x21b6   :  { %3583 = vrot.lane.b32.xlu0 %v4543_v59, %s4667_s3  ;;  %v4545_v26 = vpop.eup %4544 }
0x21b7   :  { %v3574_v9 = vadd.f32 1.0, %v4545_v26 }
0x21b9   :  { %4546 = vrcp.f32 %v3574_v9 }
0x21c3   :  { %v4547_v10 = vpop.eup %4546 }
0x21c4   :  { %v3581_v28 = vmul.f32 %v4547_v10, %v3458_v3 }
0x2228   :  { %v3584_v1 = vpop.permute.xlu0 %3583 }
0x2229   :  { %v3586_v19 = vmul.f32 %v4547_v10, %v3584_v1 }
0x222b   :  { %3588 = vrot.lane.b32.xlu1 %v3586_v19, %s4667_s3 }
0x229d   :  { %v3589_v35 = vpop.permute.xlu1 %3588 }
0x229e   :  { %v3591_v31 = vadd.f32 %v3589_v35, %v3581_v28 }
0x22a0   :  { %4548 = vtanh.f32 %v3591_v31 }
0x22a1   :  { %4550 = vpow2.f32 %v3910_v38 }
0x22aa   :  { %v4549_v60 = vpop.eup %4548 }
0x22ab   :  { %3594 = vrot.lane.b32.xlu0 %v4549_v60, %s4667_s3  ;;  %v4551_v20 = vpop.eup %4550 }
0x22ac   :  { %v3575_v12 = vadd.f32 1.0, %v4551_v20 }
0x22ae   :  { %4552 = vrcp.f32 %v3575_v12 }
0x22b8   :  { %v4553_v14 = vpop.eup %4552 }
0x231d   :  { %v3595_v17 = vpop.permute.xlu0 %3594 }
0x231e   :  { %v3597_v37 = vmul.f32 %v4553_v14, %v3595_v17 }
0x2320   :  { %3598 = vst.msk [vmem:[#allocation3 + $0xc] sm:$0x3] %vm966_vm3, %v3597_v37  ;;  %3913 = vmatmul.mubr.msk.f32.vlgmr.msra.gmra.mrb[30].mxu1 %vm859_vm4, %v3597_v37 }
0x2327   :  { %v3742_v23 = vld [vmem:[#allocation3 + $0xc] sm:$0x3] }
0x2328   :  { %v3743_v24 = vsel %vm85_vm5, %v3741_v45, %v3742_v23  ;;  %v3746_v62 = vsel %vm85_vm5, %v3742_v23, %v3741_v45 }
0x2329   :  { %3745 = vst.msk [vmem:[#allocation9 + $0x2] sm:$0x3] %vm966_vm3, %v3743_v24  ;;  %3748 = vst.msk [vmem:[#allocation9 + $0xc] sm:$0x3] %vm966_vm3, %v3746_v62 }
0x23f3   :  { %v3694_v25 = vpop.f32.mrb[30].mxu1 }
0x23f4   :  { %v3699_v40 = vadd.f32 %v3694_v25, %v3623_v41  ;;  %v3696_v44 = vpop.f32.mrb[31].mxu1 }
0x23f5   :  { %v3700_v0 = vadd.f32 %v3696_v44, %v3624_v54 }
0x23f6   :  { %v3914_v16 = vmul.f32 -1.442695, %v3699_v40 }
0x23f7   :  { %4554 = vtanh.f32 %v3700_v0  ;;  %v3915_v34 = vmul.f32 -1.442695, %v3700_v0 }
0x23f8   :  { %4556 = vpow2.f32 %v3914_v16 }
0x2401   :  { %v4555_v13 = vpop.eup %4554 }
0x2402   :  { %3716 = vrot.lane.b32.xlu1 %v4555_v13, %s4667_s3  ;;  %v4557_v22 = vpop.eup %4556 }
0x2403   :  { %v3707_v57 = vadd.f32 1.0, %v4557_v22 }
0x2405   :  { %4558 = vrcp.f32 %v3707_v57 }
0x240f   :  { %v4559_v7 = vpop.eup %4558 }
0x2410   :  { %v3714_v30 = vmul.f32 %v4559_v7, %v3591_v31 }
0x2474   :  { %v3717_v47 = vpop.permute.xlu1 %3716 }
0x2475   :  { %v3719_v27 = vmul.f32 %v4559_v7, %v3717_v47 }
0x2477   :  { %3721 = vrot.lane.b32.xlu0 %v3719_v27, %s4667_s3 }
0x24e9   :  { %v3722_v39 = vpop.permute.xlu0 %3721 }
0x24ea   :  { %v3724_v41 = vadd.f32 %v3722_v39, %v3714_v30 }
0x24ec   :  { %4560 = vtanh.f32 %v3724_v41 }
0x24ed   :  { %4562 = vpow2.f32 %v3915_v34 }
0x24f6   :  { %v4561_v29 = vpop.eup %4560 }
0x24f7   :  { %3727 = vrot.lane.b32.xlu1 %v4561_v29, %s4667_s3  ;;  %v4563_v54 = vpop.eup %4562 }
0x24f8   :  { %v3708_v61 = vadd.f32 1.0, %v4563_v54 }
0x24fa   :  { %4564 = vrcp.f32 %v3708_v61 }
0x2504   :  { %v4565_v49 = vpop.eup %4564 }
0x2569   :  { %v3728_v32 = vpop.permute.xlu1 %3727 }
0x256a   :  { %v3730_v36 = vmul.f32 %v4565_v49, %v3728_v32 }
0x256c   :  { %3731 = vst.msk [vmem:[#allocation3 + $0xe] sm:$0x3] %vm966_vm3, %v3730_v36  ;;  %3733 = vst.msk [vmem:[#allocation10 + $0x2] sm:$0x3] %vm966_vm3, %v3730_v36 }
0x256d   :  { %4621 = shalt.err (!%p4618_p6)
}
0x256e   :  { %s4622_s29 = scalar_lea.hbm %s5656_s8, 64 }
0x256f   :  { %p4623_p7 = scmp.ne.s32.totalorder %s5656_s8, %s4622_s29  ;;  %p4626_p8 = scmp.lt.u32.totalorder %s4622_s29, %s5656_s8 }
0x2571   :  { %p4628_p9 = pnand %p4626_p8, %p4623_p7 }
0x2573   :  { %4631 = shalt.err (!%p4628_p9)
}
0x2574   :  { %s4669_s9 = smov 32   ;;  %s4670_s10 = smov 2   ;;  %v3734_v52 = vld [vmem:[#allocation3] sm:$0x3]  ;;  %v3735_v63 = vld [vmem:[#allocation3 + $0xe] sm:$0x3] }
0x2575   :  { %3788 = dma.vmem_to_hbm [thread:$0]  %s3783_s26, 64, %s5656_s8, [#allocation11], %s4669_s9, %s4669_s9, %s4670_s10   ;;  %v3736_v56 = vsel %vm85_vm5, %v3734_v52, %v3735_v63  ;;  %v3738_v43 = vsel %vm85_vm5, %v3735_v63, %v3734_v52 }
0x2576   :  { %s4671_s13 = smov [#allocation9]   ;;  %3737 = vst.msk [vmem:[#allocation9] sm:$0x3] %vm966_vm3, %v3736_v56  ;;  %3740 = vst.msk [vmem:[#allocation9 + $0xe] sm:$0x3] %vm966_vm3, %v3738_v43 }
0x2577   :  { %s3770_s6 = sshll.u32 %s4671_s13, 4  ;;  %s3771_s6 = int_to_ptr.vmem [resolvable:$true] %s3770_s6 }
0x2578   :  { %s4632_s14 = scalar_lea.vmem %s3771_s6, 256  ;;  %p4637_p11 = scmp.lt.s32.totalorder %s3771_s6, %s3771_s6 }
0x2579   :  { %p4633_p10 = scmp.ne.s32.totalorder %s3771_s6, %s4632_s14  ;;  %p4638_p12 = scmp.lt.s32.totalorder %s4632_s14, %s4632_s14 }
0x257b   :  { %p4639_p13 = por %p4638_p12, %p4637_p11 }
0x257d   :  { %p4640_p0 = pnand %p4639_p13, %p4633_p10 }
0x257f   :  { %4643 = shalt.err (!%p4640_p0)
}
0x2580   :  { %s4644_s16 = scalar_lea.hbm %s5655_s7, 256 }
0x2581   :  { %p4645_p1 = scmp.ne.s32.totalorder %s5655_s7, %s4644_s16  ;;  %p4648_p2 = scmp.lt.u32.totalorder %s4644_s16, %s5655_s7 }
0x2583   :  { %p4650_p3 = pnand %p4648_p2, %p4645_p1 }
0x2585   :  { %4653 = shalt.err (!%p4650_p3)
}
0x2586   :  { %3776 = dma.vmem_to_hbm [thread:$0]  %s3771_s6, 256, %s5655_s7, [#allocation6], %s4669_s9, %s4669_s9, %s4670_s10  }
0x2587   :  { %4658 = dma.done.wait [#allocation6], 256  }
0x2588   :  { %4659 = vsyncadd [#allocation6], 4294967040 }
0x2589   :  { %4660 = dma.done.wait [#allocation11], 64  }
0x258a   :  { %4661 = vsyncadd [#allocation11], 4294967232 }
0x258b   :  { %3795 = vsyncpa [#allocation5], 1 }
0x258c   :  { %3796 = vsyncpa [#allocation8], 1 }
0x258d   :  { %3797 = vsyncpa [#allocation6], 1 }
0x258e   :  { %3798 = vsyncpa [#allocation11], 1 }

</bundles_post_ra>
